<compile_context>
chip_gen: v5e
topology: v5e:2x2
jax: 0.10.0
libtpu: 0.0.40
codegen_flags: <defaults>
</compile_context>

<pallas_src>
import functools

import jax
import jax.numpy as jnp
from jax.experimental import pallas as pl
from jax.experimental.pallas import tpu as pltpu


def _round_up(a, b):
    return (a + b - 1) // b * b


def _pick_depth_tile(D, cap=4):
    # Largest divisor of D not exceeding `cap` (keeps VMEM per step bounded).
    for td in range(min(cap, D), 0, -1):
        if D % td == 0:
            return td
    return 1


# --------------------------------------------------------------------------
# Kernel 1: conv3d via in-kernel tap accumulation (TD output depth planes per
# grid step) + fused per-channel sum / sum-of-squares for BatchNorm.
# The (TD + ker - 1) depth-shifted input planes arrive as separate BlockSpec'd
# views of the same padded input array.
# --------------------------------------------------------------------------
def _make_conv_kernel(ker, td, Wp, QL, Cout):
    K2 = ker * ker
    n_views = td + ker - 1

    def kernel(*refs):
        x_refs = refs[:n_views]                   # n_views x (Cin_p, L) bf16
        w_ref = refs[n_views]                     # (ker^3, Cout, Cin_p) bf16
        mask_ref = refs[n_views + 1]              # (1, QL) f32, 1.0 on valid voxels
        y_ref = refs[n_views + 2]                 # (td, Cout, QL) bf16
        sum_ref = refs[n_views + 3]               # (Cout, 1) f32 resident accumulators
        sq_ref = refs[n_views + 4]
        db = pl.program_id(1)

        # Hoist loads reused by every output plane in the depth tile.
        w_taps = [w_ref[i] for i in range(ker ** 3)]
        xs_all = [x_refs[j][...] for j in range(n_views)]
        mask = mask_ref[...]

        psum = jnp.zeros((Cout, 1), jnp.float32)
        psq = jnp.zeros((Cout, 1), jnp.float32)
        for t in range(td):
            acc = jnp.zeros((Cout, QL), jnp.float32)
            for kd in range(ker):
                xs = xs_all[t + kd]               # padded depth plane (db*td + t) + kd
                for kh in range(ker):
                    for kw in range(ker):
                        off = kh * Wp + kw        # static in-plane lane shift of the tap
                        acc = acc + jnp.dot(
                            w_taps[kd * K2 + kh * ker + kw],
                            xs[:, off:off + QL],
                            preferred_element_type=jnp.float32)
            y_ref[t] = acc.astype(y_ref.dtype)    # bf16 intermediate (halves HBM bytes)

            # fused BN statistics over the valid voxels (f32, from the f32 accumulator)
            masked = acc * mask
            psum = psum + jnp.sum(masked, axis=1, keepdims=True)
            psq = psq + jnp.sum(masked * acc, axis=1, keepdims=True)

        @pl.when(db == 0)
        def _():
            sum_ref[...] = jnp.zeros_like(sum_ref)
            sq_ref[...] = jnp.zeros_like(sq_ref)

        sum_ref[...] += psum
        sq_ref[...] += psq

    return kernel


# --------------------------------------------------------------------------
# Kernel 2: BatchNorm apply (precomputed per-channel scale/shift) + activation.
# Reads bf16 y in (D, Cout, QL)-major layout, writes lane-dense f32 output in
# (Cout, D*QL)-major layout -- the layout change is done by the block index
# maps, not by an in-kernel transpose.
# --------------------------------------------------------------------------
def _make_bn_act_kernel(td, QL, act, slope):
    def kernel(y_ref, scale_ref, shift_ref, o_ref):
        scale = scale_ref[...]
        shift = shift_ref[...]
        for t in range(td):
            z = y_ref[t].astype(jnp.float32) * scale + shift
            if act == "relu":
                r = jnp.maximum(z, 0.0)
            else:  # leaky_relu
                r = jnp.where(z >= 0.0, z, slope * z)
            o_ref[:, t * QL:(t + 1) * QL] = r     # 128-aligned static lane slice
    return kernel


# --------------------------------------------------------------------------
# Wrapper: PyTorch-semantics forward  act(bn(conv3d(x)))
# --------------------------------------------------------------------------
def conv3d_block_forward(x, weight, bias, gamma, beta, *, ker, act, slope,
                         eps=1e-5):
    # Training-mode BatchNorm batch statistics cancel a per-channel additive bias
    # exactly, so the conv bias is dropped from the compute path.
    del bias

    N, Cin, D, H, W = x.shape
    Cout = weight.shape[0]
    p = ker // 2
    Dp, Hp, Wp = D + 2 * p, H + 2 * p, W + 2 * p
    Cin_p = _round_up(max(Cin, 8), 8)             # sublane-friendly channel pad
    QL = _round_up(Hp * Wp, 128)                  # lanes computed per output depth plane
    max_off = (ker - 1) * (Wp + 1)                # largest in-plane tap shift
    L = _round_up(QL + max_off, 128)              # padded lane length per input plane
    TD = _pick_depth_tile(D, 4)                   # output depth planes per grid step
    n_views = TD + ker - 1

    # ---- cheap XLA prep (~1x input bytes, no transposes) --------------------
    xb = x.astype(jnp.bfloat16)
    xb = jnp.pad(xb, ((0, 0), (0, Cin_p - Cin), (p, p), (p, p), (p, p)))
    xb = xb.reshape(N, Cin_p, Dp, Hp * Wp)
    xb = jnp.pad(xb, ((0, 0), (0, 0), (0, 0), (0, L - Hp * Wp)))
    xp = xb.reshape(N, Cin_p, Dp * L)             # channels on sublanes, flat DHW on lanes

    wpd = jnp.pad(weight, ((0, 0), (0, Cin_p - Cin), (0, 0), (0, 0), (0, 0)))
    w_mat = wpd.transpose(2, 3, 4, 0, 1).reshape(ker ** 3, Cout, Cin_p)
    w_mat = w_mat.astype(jnp.bfloat16)

    q = jnp.arange(QL)
    mask = ((q // Wp < H) & (q % Wp < W)).astype(jnp.float32).reshape(1, QL)

    # ---- Pallas kernel 1: conv + fused BN statistics ------------------------
    x_specs = [
        pl.BlockSpec((None, Cin_p, L), (lambda n, db, j=j: (n, 0, db * TD + j)))
        for j in range(n_views)
    ]
    y, ssum, ssq = pl.pallas_call(
        _make_conv_kernel(ker, TD, Wp, QL, Cout),
        grid=(N, D // TD),
        in_specs=x_specs + [
            pl.BlockSpec((ker ** 3, Cout, Cin_p), lambda n, db: (0, 0, 0)),
            pl.BlockSpec((1, QL), lambda n, db: (0, 0)),
        ],
        out_specs=[
            pl.BlockSpec((None, TD, Cout, QL), lambda n, db: (n, db, 0, 0)),
            pl.BlockSpec((None, Cout, 1), lambda n, db: (n, 0, 0)),
            pl.BlockSpec((None, Cout, 1), lambda n, db: (n, 0, 0)),
        ],
        out_shape=(
            jax.ShapeDtypeStruct((N, D, Cout, QL), jnp.bfloat16),
            jax.ShapeDtypeStruct((N, Cout, 1), jnp.float32),
            jax.ShapeDtypeStruct((N, Cout, 1), jnp.float32),
        ),
        compiler_params=pltpu.CompilerParams(
            dimension_semantics=("parallel", "arbitrary"),
            vmem_limit_bytes=32 * 1024 * 1024),
    )(*([xp] * n_views), w_mat, mask)

    # ---- tiny XLA: per-channel batch mean/var -> affine scale & shift -------
    count = float(N * D * H * W)
    tsum = jnp.sum(ssum[:, :, 0], axis=0)                    # (Cout,)
    tsq = jnp.sum(ssq[:, :, 0], axis=0)
    mean = tsum / count
    var = jnp.maximum(tsq / count - mean * mean, 0.0)        # biased variance, f32 sums
    scale = gamma * jax.lax.rsqrt(var + eps)
    shift = beta - mean * scale

    # ---- Pallas kernel 2: normalize + affine + activation -------------------
    z = pl.pallas_call(
        _make_bn_act_kernel(TD, QL, act, slope),
        grid=(N, D // TD),
        in_specs=[
            pl.BlockSpec((None, TD, Cout, QL), lambda n, db: (n, db, 0, 0)),
            pl.BlockSpec((Cout, 1), lambda n, db: (0, 0)),
            pl.BlockSpec((Cout, 1), lambda n, db: (0, 0)),
        ],
        out_specs=pl.BlockSpec((None, Cout, TD * QL), lambda n, db: (n, 0, db)),
        out_shape=jax.ShapeDtypeStruct((N, Cout, D * QL), jnp.float32),
        compiler_params=pltpu.CompilerParams(
            dimension_semantics=("parallel", "parallel"),
            vmem_limit_bytes=32 * 1024 * 1024),
    )(y, scale.reshape(Cout, 1), shift.reshape(Cout, 1))

    # ---- strided slice back to NCDHW (no transpose pass) --------------------
    z = z.reshape(N, Cout, D, QL)[:, :, :, :H * Wp]
    z = z.reshape(N, Cout, D, H, Wp)[:, :, :, :, :W]
    return z


# --------------------------------------------------------------------------
# Pure-JAX reference for validation
# --------------------------------------------------------------------------
def reference(x, weight, bias, gamma, beta, *, ker, act, slope, eps=1e-5):
    p = ker // 2
    y = jax.lax.conv_general_dilated(
        x, weight, window_strides=(1, 1, 1), padding=[(p, p)] * 3,
        dimension_numbers=("NCDHW", "OIDHW", "NCDHW"))
    y = y + bias.reshape(1, -1, 1, 1, 1)
    mean = jnp.mean(y, axis=(0, 2, 3, 4), keepdims=True)
    var = jnp.mean((y - mean) ** 2, axis=(0, 2, 3, 4), keepdims=True)
    yn = (y - mean) / jnp.sqrt(var + eps)
    yn = yn * gamma.reshape(1, -1, 1, 1, 1) + beta.reshape(1, -1, 1, 1, 1)
    if act == "relu":
        return jnp.maximum(yn, 0.0)
    return jnp.where(yn >= 0.0, yn, slope * yn)


if __name__ == "__main__":
    # Small shapes consistent with the module: Conv3d(c_in=4, c_out=8, ker=3,
    # act_func='leaky_relu', slope=0.1), input [N=2, C=4, D=H=W=8].
    N, Cin, Cout, D, H, W = 2, 4, 8, 8, 8, 8
    ker, slope, eps, act = 3, 0.1, 1e-5, "leaky_relu"

    key = jax.random.PRNGKey(0)
    k1, k2, k3, k4, k5 = jax.random.split(key, 5)

    x = jax.random.normal(k1, (N, Cin, D, H, W), jnp.float32)

    # Deterministic synthetic parameter init (xavier_uniform for conv weight).
    fan_in = Cin * ker ** 3
    fan_out = Cout * ker ** 3
    bound = (6.0 / (fan_in + fan_out)) ** 0.5
    weight = jax.random.uniform(k2, (Cout, Cin, ker, ker, ker), jnp.float32,
                                -bound, bound)
    bias = jax.random.uniform(k3, (Cout,), jnp.float32,
                              -1.0 / fan_in ** 0.5, 1.0 / fan_in ** 0.5)
    gamma = jax.random.uniform(k4, (Cout,), jnp.float32, 0.5, 1.5)
    beta = jax.random.uniform(k5, (Cout,), jnp.float32, -0.5, 0.5)

    fwd = jax.jit(functools.partial(conv3d_block_forward, ker=ker, act=act,
                                    slope=slope, eps=eps))
    out = jax.block_until_ready(fwd(x, weight, bias, gamma, beta))
    assert out.shape == (N, Cout, D, H, W), out.shape

    ref = reference(x, weight, bias, gamma, beta, ker=ker, act=act,
                    slope=slope, eps=eps)
    err = float(jnp.max(jnp.abs(out - ref)))
    if err > 5e-2:
        raise AssertionError(f"max abs error vs reference too large: {err}")

    print("KERNEL_OK")
</pallas_src>

<mosaic_0001>
module attributes {stable_mosaic.version = 11 : i64} {
  func.func @kernel(%arg0: i32, %arg1: i32, %arg2: memref<1x4x8x128xbf16, #tpu.memory_space<vmem>>, %arg3: memref<8x1xf32, #tpu.memory_space<vmem>>, %arg4: memref<8x1xf32, #tpu.memory_space<vmem>>, %arg5: memref<1x8x512xf32, #tpu.memory_space<vmem>>) attributes {dimension_semantics = [#tpu.dimension_semantics<parallel>, #tpu.dimension_semantics<parallel>], iteration_bounds = array<i64: 2, 2>, scalar_prefetch = 0 : i64, scratch_operands = 0 : i64, tpu.core_type = #tpu.core_type<tc>, window_params = [{transform_indices = @transform_0, window_bounds = array<i64: 1, 4, 8, 128>}, {pipeline_mode = #tpu.pipeline_mode<synchronous>, transform_indices = @transform_1, window_bounds = array<i64: 8, 1>}, {pipeline_mode = #tpu.pipeline_mode<synchronous>, transform_indices = @transform_2, window_bounds = array<i64: 8, 1>}, {transform_indices = @transform_3, window_bounds = array<i64: 1, 8, 512>}]} {
    %c0 = arith.constant 0 : index
    %c0_0 = arith.constant 0 : index
    %0 = vector.load %arg3[%c0, %c0_0] : memref<8x1xf32, #tpu.memory_space<vmem>>, vector<8x1xf32>
    %c0_1 = arith.constant 0 : index
    %c0_2 = arith.constant 0 : index
    %1 = vector.load %arg4[%c0_1, %c0_2] : memref<8x1xf32, #tpu.memory_space<vmem>>, vector<8x1xf32>
    %c0_3 = arith.constant 0 : index
    %c0_4 = arith.constant 0 : index
    %c0_5 = arith.constant 0 : index
    %c0_6 = arith.constant 0 : index
    %2 = vector.load %arg2[%c0_3, %c0_4, %c0_5, %c0_6] : memref<1x4x8x128xbf16, #tpu.memory_space<vmem>>, vector<1x1x8x128xbf16>
    %3 = vector.shape_cast %2 : vector<1x1x8x128xbf16> to vector<8x128xbf16>
    %4 = arith.extf %3 : vector<8x128xbf16> to vector<8x128xf32>
    %5 = vector.broadcast %0 : vector<8x1xf32> to vector<8x128xf32>
    %6 = arith.mulf %4, %5 : vector<8x128xf32>
    %7 = vector.broadcast %1 : vector<8x1xf32> to vector<8x128xf32>
    %8 = arith.addf %6, %7 : vector<8x128xf32>
    %cst = arith.constant 0.000000e+00 : f32
    %9 = vector.broadcast %cst : f32 to vector<8x128xf32>
    %10 = arith.cmpf oge, %8, %9 : vector<8x128xf32>
    %cst_7 = arith.constant 1.000000e-01 : f32
    %11 = vector.broadcast %cst_7 : f32 to vector<8x128xf32>
    %12 = arith.mulf %11, %8 : vector<8x128xf32>
    %13 = arith.select %10, %8, %12 : vector<8x128xi1>, vector<8x128xf32>
    %c0_8 = arith.constant 0 : index
    %c0_9 = arith.constant 0 : index
    %c0_10 = arith.constant 0 : index
    %14 = vector.load %arg5[%c0_8, %c0_9, %c0_10] : memref<1x8x512xf32, #tpu.memory_space<vmem>>, vector<1x8x128xf32>
    %15 = vector.shape_cast %14 : vector<1x8x128xf32> to vector<8x128xf32>
    %16 = vector.shape_cast %13 : vector<8x128xf32> to vector<1x8x128xf32>
    tpu.vector_store %arg5[%c0_8, %c0_9, %c0_10], %16 {strides = array<i32>} : memref<1x8x512xf32, #tpu.memory_space<vmem>>, vector<1x8x128xf32>,
    %c0_11 = arith.constant 0 : index
    %c1 = arith.constant 1 : index
    %c0_12 = arith.constant 0 : index
    %c0_13 = arith.constant 0 : index
    %17 = vector.load %arg2[%c0_11, %c1, %c0_12, %c0_13] : memref<1x4x8x128xbf16, #tpu.memory_space<vmem>>, vector<1x1x8x128xbf16>
    %18 = vector.shape_cast %17 : vector<1x1x8x128xbf16> to vector<8x128xbf16>
    %19 = arith.extf %18 : vector<8x128xbf16> to vector<8x128xf32>
    %20 = vector.broadcast %0 : vector<8x1xf32> to vector<8x128xf32>
    %21 = arith.mulf %19, %20 : vector<8x128xf32>
    %22 = vector.broadcast %1 : vector<8x1xf32> to vector<8x128xf32>
    %23 = arith.addf %21, %22 : vector<8x128xf32>
    %cst_14 = arith.constant 0.000000e+00 : f32
    %24 = vector.broadcast %cst_14 : f32 to vector<8x128xf32>
    %25 = arith.cmpf oge, %23, %24 : vector<8x128xf32>
    %cst_15 = arith.constant 1.000000e-01 : f32
    %26 = vector.broadcast %cst_15 : f32 to vector<8x128xf32>
    %27 = arith.mulf %26, %23 : vector<8x128xf32>
    %28 = arith.select %25, %23, %27 : vector<8x128xi1>, vector<8x128xf32>
    %c0_16 = arith.constant 0 : index
    %c0_17 = arith.constant 0 : index
    %c128 = arith.constant 128 : index
    %29 = vector.load %arg5[%c0_16, %c0_17, %c128] : memref<1x8x512xf32, #tpu.memory_space<vmem>>, vector<1x8x128xf32>
    %30 = vector.shape_cast %29 : vector<1x8x128xf32> to vector<8x128xf32>
    %31 = vector.shape_cast %28 : vector<8x128xf32> to vector<1x8x128xf32>
    tpu.vector_store %arg5[%c0_16, %c0_17, %c128], %31 {strides = array<i32>} : memref<1x8x512xf32, #tpu.memory_space<vmem>>, vector<1x8x128xf32>,
    %c0_18 = arith.constant 0 : index
    %c2 = arith.constant 2 : index
    %c0_19 = arith.constant 0 : index
    %c0_20 = arith.constant 0 : index
    %32 = vector.load %arg2[%c0_18, %c2, %c0_19, %c0_20] : memref<1x4x8x128xbf16, #tpu.memory_space<vmem>>, vector<1x1x8x128xbf16>
    %33 = vector.shape_cast %32 : vector<1x1x8x128xbf16> to vector<8x128xbf16>
    %34 = arith.extf %33 : vector<8x128xbf16> to vector<8x128xf32>
    %35 = vector.broadcast %0 : vector<8x1xf32> to vector<8x128xf32>
    %36 = arith.mulf %34, %35 : vector<8x128xf32>
    %37 = vector.broadcast %1 : vector<8x1xf32> to vector<8x128xf32>
    %38 = arith.addf %36, %37 : vector<8x128xf32>
    %cst_21 = arith.constant 0.000000e+00 : f32
    %39 = vector.broadcast %cst_21 : f32 to vector<8x128xf32>
    %40 = arith.cmpf oge, %38, %39 : vector<8x128xf32>
    %cst_22 = arith.constant 1.000000e-01 : f32
    %41 = vector.broadcast %cst_22 : f32 to vector<8x128xf32>
    %42 = arith.mulf %41, %38 : vector<8x128xf32>
    %43 = arith.select %40, %38, %42 : vector<8x128xi1>, vector<8x128xf32>
    %c0_23 = arith.constant 0 : index
    %c0_24 = arith.constant 0 : index
    %c256 = arith.constant 256 : index
    %44 = vector.load %arg5[%c0_23, %c0_24, %c256] : memref<1x8x512xf32, #tpu.memory_space<vmem>>, vector<1x8x128xf32>
    %45 = vector.shape_cast %44 : vector<1x8x128xf32> to vector<8x128xf32>
    %46 = vector.shape_cast %43 : vector<8x128xf32> to vector<1x8x128xf32>
    tpu.vector_store %arg5[%c0_23, %c0_24, %c256], %46 {strides = array<i32>} : memref<1x8x512xf32, #tpu.memory_space<vmem>>, vector<1x8x128xf32>,
    %c0_25 = arith.constant 0 : index
    %c3 = arith.constant 3 : index
    %c0_26 = arith.constant 0 : index
    %c0_27 = arith.constant 0 : index
    %47 = vector.load %arg2[%c0_25, %c3, %c0_26, %c0_27] : memref<1x4x8x128xbf16, #tpu.memory_space<vmem>>, vector<1x1x8x128xbf16>
    %48 = vector.shape_cast %47 : vector<1x1x8x128xbf16> to vector<8x128xbf16>
    %49 = arith.extf %48 : vector<8x128xbf16> to vector<8x128xf32>
    %50 = vector.broadcast %0 : vector<8x1xf32> to vector<8x128xf32>
    %51 = arith.mulf %49, %50 : vector<8x128xf32>
    %52 = vector.broadcast %1 : vector<8x1xf32> to vector<8x128xf32>
    %53 = arith.addf %51, %52 : vector<8x128xf32>
    %cst_28 = arith.constant 0.000000e+00 : f32
    %54 = vector.broadcast %cst_28 : f32 to vector<8x128xf32>
    %55 = arith.cmpf oge, %53, %54 : vector<8x128xf32>
    %cst_29 = arith.constant 1.000000e-01 : f32
    %56 = vector.broadcast %cst_29 : f32 to vector<8x128xf32>
    %57 = arith.mulf %56, %53 : vector<8x128xf32>
    %58 = arith.select %55, %53, %57 : vector<8x128xi1>, vector<8x128xf32>
    %c0_30 = arith.constant 0 : index
    %c0_31 = arith.constant 0 : index
    %c384 = arith.constant 384 : index
    %59 = vector.load %arg5[%c0_30, %c0_31, %c384] : memref<1x8x512xf32, #tpu.memory_space<vmem>>, vector<1x8x128xf32>
    %60 = vector.shape_cast %59 : vector<1x8x128xf32> to vector<8x128xf32>
    %61 = vector.shape_cast %58 : vector<8x128xf32> to vector<1x8x128xf32>
    tpu.vector_store %arg5[%c0_30, %c0_31, %c384], %61 {strides = array<i32>} : memref<1x8x512xf32, #tpu.memory_space<vmem>>, vector<1x8x128xf32>,
    return
  }
  func.func @transform_0(%arg0: i32, %arg1: i32) -> (i32, i32, i32, i32) {
    %c0_i32 = arith.constant 0 : i32
    %c0_i32_0 = arith.constant 0 : i32
    %c0_i32_1 = arith.constant 0 : i32
    return %arg0, %arg1, %c0_i32, %c0_i32_0 : i32, i32, i32, i32
  }
  func.func @transform_1(%arg0: i32, %arg1: i32) -> (i32, i32) {
    %c0_i32 = arith.constant 0 : i32
    %c0_i32_0 = arith.constant 0 : i32
    %c0_i32_1 = arith.constant 0 : i32
    return %c0_i32, %c0_i32_0 : i32, i32
  }
  func.func @transform_2(%arg0: i32, %arg1: i32) -> (i32, i32) {
    %c0_i32 = arith.constant 0 : i32
    %c0_i32_0 = arith.constant 0 : i32
    %c0_i32_1 = arith.constant 0 : i32
    return %c0_i32, %c0_i32_0 : i32, i32
  }
  func.func @transform_3(%arg0: i32, %arg1: i32) -> (i32, i32, i32) {
    %c0_i32 = arith.constant 0 : i32
    %c0_i32_0 = arith.constant 0 : i32
    return %arg0, %c0_i32, %arg1 : i32, i32, i32
  }
}

module attributes {stable_mosaic.version = 11 : i64} {
  func.func @kernel(%arg0: i32, %arg1: i32, %arg2: memref<1x8x256xbf16, #tpu.memory_space<vmem>>, %arg3: memref<1x8x256xbf16, #tpu.memory_space<vmem>>, %arg4: memref<1x8x256xbf16, #tpu.memory_space<vmem>>, %arg5: memref<1x8x256xbf16, #tpu.memory_space<vmem>>, %arg6: memref<1x8x256xbf16, #tpu.memory_space<vmem>>, %arg7: memref<1x8x256xbf16, #tpu.memory_space<vmem>>, %arg8: memref<27x8x8xbf16, #tpu.memory_space<vmem>>, %arg9: memref<1x128xf32, #tpu.memory_space<vmem>>, %arg10: memref<1x4x8x128xbf16, #tpu.memory_space<vmem>>, %arg11: memref<1x8x1xf32, #tpu.memory_space<vmem>>, %arg12: memref<1x8x1xf32, #tpu.memory_space<vmem>>) attributes {dimension_semantics = [#tpu.dimension_semantics<parallel>, #tpu.dimension_semantics<arbitrary>], iteration_bounds = array<i64: 2, 2>, scalar_prefetch = 0 : i64, scratch_operands = 0 : i64, tpu.core_type = #tpu.core_type<tc>, window_params = [{transform_indices = @transform_0, window_bounds = array<i64: 1, 8, 256>}, {transform_indices = @transform_1, window_bounds = array<i64: 1, 8, 256>}, {transform_indices = @transform_2, window_bounds = array<i64: 1, 8, 256>}, {transform_indices = @transform_3, window_bounds = array<i64: 1, 8, 256>}, {transform_indices = @transform_4, window_bounds = array<i64: 1, 8, 256>}, {transform_indices = @transform_5, window_bounds = array<i64: 1, 8, 256>}, {pipeline_mode = #tpu.pipeline_mode<synchronous>, transform_indices = @transform_6, window_bounds = array<i64: 27, 8, 8>}, {pipeline_mode = #tpu.pipeline_mode<synchronous>, transform_indices = @transform_7, window_bounds = array<i64: 1, 128>}, {transform_indices = @transform_8, window_bounds = array<i64: 1, 4, 8, 128>}, {transform_indices = @transform_9, window_bounds = array<i64: 1, 8, 1>}, {transform_indices = @transform_10, window_bounds = array<i64: 1, 8, 1>}]} {
    %c0 = arith.constant 0 : index
    %c0_0 = arith.constant 0 : index
    %c0_1 = arith.constant 0 : index
    %0 = vector.load %arg8[%c0, %c0_0, %c0_1] : memref<27x8x8xbf16, #tpu.memory_space<vmem>>, vector<1x8x8xbf16>
    %1 = vector.shape_cast %0 : vector<1x8x8xbf16> to vector<8x8xbf16>
    %c1 = arith.constant 1 : index
    %c0_2 = arith.constant 0 : index
    %c0_3 = arith.constant 0 : index
    %2 = vector.load %arg8[%c1, %c0_2, %c0_3] : memref<27x8x8xbf16, #tpu.memory_space<vmem>>, vector<1x8x8xbf16>
    %3 = vector.shape_cast %2 : vector<1x8x8xbf16> to vector<8x8xbf16>
    %c2 = arith.constant 2 : index
    %c0_4 = arith.constant 0 : index
    %c0_5 = arith.constant 0 : index
    %4 = vector.load %arg8[%c2, %c0_4, %c0_5] : memref<27x8x8xbf16, #tpu.memory_space<vmem>>, vector<1x8x8xbf16>
    %5 = vector.shape_cast %4 : vector<1x8x8xbf16> to vector<8x8xbf16>
    %c3 = arith.constant 3 : index
    %c0_6 = arith.constant 0 : index
    %c0_7 = arith.constant 0 : index
    %6 = vector.load %arg8[%c3, %c0_6, %c0_7] : memref<27x8x8xbf16, #tpu.memory_space<vmem>>, vector<1x8x8xbf16>
    %7 = vector.shape_cast %6 : vector<1x8x8xbf16> to vector<8x8xbf16>
    %c4 = arith.constant 4 : index
    %c0_8 = arith.constant 0 : index
    %c0_9 = arith.constant 0 : index
    %8 = vector.load %arg8[%c4, %c0_8, %c0_9] : memref<27x8x8xbf16, #tpu.memory_space<vmem>>, vector<1x8x8xbf16>
    %9 = vector.shape_cast %8 : vector<1x8x8xbf16> to vector<8x8xbf16>
    %c5 = arith.constant 5 : index
    %c0_10 = arith.constant 0 : index
    %c0_11 = arith.constant 0 : index
    %10 = vector.load %arg8[%c5, %c0_10, %c0_11] : memref<27x8x8xbf16, #tpu.memory_space<vmem>>, vector<1x8x8xbf16>
    %11 = vector.shape_cast %10 : vector<1x8x8xbf16> to vector<8x8xbf16>
    %c6 = arith.constant 6 : index
    %c0_12 = arith.constant 0 : index
    %c0_13 = arith.constant 0 : index
    %12 = vector.load %arg8[%c6, %c0_12, %c0_13] : memref<27x8x8xbf16, #tpu.memory_space<vmem>>, vector<1x8x8xbf16>
    %13 = vector.shape_cast %12 : vector<1x8x8xbf16> to vector<8x8xbf16>
    %c7 = arith.constant 7 : index
    %c0_14 = arith.constant 0 : index
    %c0_15 = arith.constant 0 : index
    %14 = vector.load %arg8[%c7, %c0_14, %c0_15] : memref<27x8x8xbf16, #tpu.memory_space<vmem>>, vector<1x8x8xbf16>
    %15 = vector.shape_cast %14 : vector<1x8x8xbf16> to vector<8x8xbf16>
    %c8 = arith.constant 8 : index
    %c0_16 = arith.constant 0 : index
    %c0_17 = arith.constant 0 : index
    %16 = vector.load %arg8[%c8, %c0_16, %c0_17] : memref<27x8x8xbf16, #tpu.memory_space<vmem>>, vector<1x8x8xbf16>
    %17 = vector.shape_cast %16 : vector<1x8x8xbf16> to vector<8x8xbf16>
    %c9 = arith.constant 9 : index
    %c0_18 = arith.constant 0 : index
    %c0_19 = arith.constant 0 : index
    %18 = vector.load %arg8[%c9, %c0_18, %c0_19] : memref<27x8x8xbf16, #tpu.memory_space<vmem>>, vector<1x8x8xbf16>
    %19 = vector.shape_cast %18 : vector<1x8x8xbf16> to vector<8x8xbf16>
    %c10 = arith.constant 10 : index
    %c0_20 = arith.constant 0 : index
    %c0_21 = arith.constant 0 : index
    %20 = vector.load %arg8[%c10, %c0_20, %c0_21] : memref<27x8x8xbf16, #tpu.memory_space<vmem>>, vector<1x8x8xbf16>
    %21 = vector.shape_cast %20 : vector<1x8x8xbf16> to vector<8x8xbf16>
    %c11 = arith.constant 11 : index
    %c0_22 = arith.constant 0 : index
    %c0_23 = arith.constant 0 : index
    %22 = vector.load %arg8[%c11, %c0_22, %c0_23] : memref<27x8x8xbf16, #tpu.memory_space<vmem>>, vector<1x8x8xbf16>
    %23 = vector.shape_cast %22 : vector<1x8x8xbf16> to vector<8x8xbf16>
    %c12 = arith.constant 12 : index
    %c0_24 = arith.constant 0 : index
    %c0_25 = arith.constant 0 : index
    %24 = vector.load %arg8[%c12, %c0_24, %c0_25] : memref<27x8x8xbf16, #tpu.memory_space<vmem>>, vector<1x8x8xbf16>
    %25 = vector.shape_cast %24 : vector<1x8x8xbf16> to vector<8x8xbf16>
    %c13 = arith.constant 13 : index
    %c0_26 = arith.constant 0 : index
    %c0_27 = arith.constant 0 : index
    %26 = vector.load %arg8[%c13, %c0_26, %c0_27] : memref<27x8x8xbf16, #tpu.memory_space<vmem>>, vector<1x8x8xbf16>
    %27 = vector.shape_cast %26 : vector<1x8x8xbf16> to vector<8x8xbf16>
    %c14 = arith.constant 14 : index
    %c0_28 = arith.constant 0 : index
    %c0_29 = arith.constant 0 : index
    %28 = vector.load %arg8[%c14, %c0_28, %c0_29] : memref<27x8x8xbf16, #tpu.memory_space<vmem>>, vector<1x8x8xbf16>
    %29 = vector.shape_cast %28 : vector<1x8x8xbf16> to vector<8x8xbf16>
    %c15 = arith.constant 15 : index
    %c0_30 = arith.constant 0 : index
    %c0_31 = arith.constant 0 : index
    %30 = vector.load %arg8[%c15, %c0_30, %c0_31] : memref<27x8x8xbf16, #tpu.memory_space<vmem>>, vector<1x8x8xbf16>
    %31 = vector.shape_cast %30 : vector<1x8x8xbf16> to vector<8x8xbf16>
    %c16 = arith.constant 16 : index
    %c0_32 = arith.constant 0 : index
    %c0_33 = arith.constant 0 : index
    %32 = vector.load %arg8[%c16, %c0_32, %c0_33] : memref<27x8x8xbf16, #tpu.memory_space<vmem>>, vector<1x8x8xbf16>
    %33 = vector.shape_cast %32 : vector<1x8x8xbf16> to vector<8x8xbf16>
    %c17 = arith.constant 17 : index
    %c0_34 = arith.constant 0 : index
    %c0_35 = arith.constant 0 : index
    %34 = vector.load %arg8[%c17, %c0_34, %c0_35] : memref<27x8x8xbf16, #tpu.memory_space<vmem>>, vector<1x8x8xbf16>
    %35 = vector.shape_cast %34 : vector<1x8x8xbf16> to vector<8x8xbf16>
    %c18 = arith.constant 18 : index
    %c0_36 = arith.constant 0 : index
    %c0_37 = arith.constant 0 : index
    %36 = vector.load %arg8[%c18, %c0_36, %c0_37] : memref<27x8x8xbf16, #tpu.memory_space<vmem>>, vector<1x8x8xbf16>
    %37 = vector.shape_cast %36 : vector<1x8x8xbf16> to vector<8x8xbf16>
    %c19 = arith.constant 19 : index
    %c0_38 = arith.constant 0 : index
    %c0_39 = arith.constant 0 : index
    %38 = vector.load %arg8[%c19, %c0_38, %c0_39] : memref<27x8x8xbf16, #tpu.memory_space<vmem>>, vector<1x8x8xbf16>
    %39 = vector.shape_cast %38 : vector<1x8x8xbf16> to vector<8x8xbf16>
    %c20 = arith.constant 20 : index
    %c0_40 = arith.constant 0 : index
    %c0_41 = arith.constant 0 : index
    %40 = vector.load %arg8[%c20, %c0_40, %c0_41] : memref<27x8x8xbf16, #tpu.memory_space<vmem>>, vector<1x8x8xbf16>
    %41 = vector.shape_cast %40 : vector<1x8x8xbf16> to vector<8x8xbf16>
    %c21 = arith.constant 21 : index
    %c0_42 = arith.constant 0 : index
    %c0_43 = arith.constant 0 : index
    %42 = vector.load %arg8[%c21, %c0_42, %c0_43] : memref<27x8x8xbf16, #tpu.memory_space<vmem>>, vector<1x8x8xbf16>
    %43 = vector.shape_cast %42 : vector<1x8x8xbf16> to vector<8x8xbf16>
    %c22 = arith.constant 22 : index
    %c0_44 = arith.constant 0 : index
    %c0_45 = arith.constant 0 : index
    %44 = vector.load %arg8[%c22, %c0_44, %c0_45] : memref<27x8x8xbf16, #tpu.memory_space<vmem>>, vector<1x8x8xbf16>
    %45 = vector.shape_cast %44 : vector<1x8x8xbf16> to vector<8x8xbf16>
    %c23 = arith.constant 23 : index
    %c0_46 = arith.constant 0 : index
    %c0_47 = arith.constant 0 : index
    %46 = vector.load %arg8[%c23, %c0_46, %c0_47] : memref<27x8x8xbf16, #tpu.memory_space<vmem>>, vector<1x8x8xbf16>
    %47 = vector.shape_cast %46 : vector<1x8x8xbf16> to vector<8x8xbf16>
    %c24 = arith.constant 24 : index
    %c0_48 = arith.constant 0 : index
    %c0_49 = arith.constant 0 : index
    %48 = vector.load %arg8[%c24, %c0_48, %c0_49] : memref<27x8x8xbf16, #tpu.memory_space<vmem>>, vector<1x8x8xbf16>
    %49 = vector.shape_cast %48 : vector<1x8x8xbf16> to vector<8x8xbf16>
    %c25 = arith.constant 25 : index
    %c0_50 = arith.constant 0 : index
    %c0_51 = arith.constant 0 : index
    %50 = vector.load %arg8[%c25, %c0_50, %c0_51] : memref<27x8x8xbf16, #tpu.memory_space<vmem>>, vector<1x8x8xbf16>
    %51 = vector.shape_cast %50 : vector<1x8x8xbf16> to vector<8x8xbf16>
    %c26 = arith.constant 26 : index
    %c0_52 = arith.constant 0 : index
    %c0_53 = arith.constant 0 : index
    %52 = vector.load %arg8[%c26, %c0_52, %c0_53] : memref<27x8x8xbf16, #tpu.memory_space<vmem>>, vector<1x8x8xbf16>
    %53 = vector.shape_cast %52 : vector<1x8x8xbf16> to vector<8x8xbf16>
    %c0_54 = arith.constant 0 : index
    %c0_55 = arith.constant 0 : index
    %c0_56 = arith.constant 0 : index
    %54 = vector.load %arg2[%c0_54, %c0_55, %c0_56] : memref<1x8x256xbf16, #tpu.memory_space<vmem>>, vector<1x8x256xbf16>
    %55 = vector.shape_cast %54 : vector<1x8x256xbf16> to vector<8x256xbf16>
    %c0_57 = arith.constant 0 : index
    %c0_58 = arith.constant 0 : index
    %c0_59 = arith.constant 0 : index
    %56 = vector.load %arg3[%c0_57, %c0_58, %c0_59] : memref<1x8x256xbf16, #tpu.memory_space<vmem>>, vector<1x8x256xbf16>
    %57 = vector.shape_cast %56 : vector<1x8x256xbf16> to vector<8x256xbf16>
    %c0_60 = arith.constant 0 : index
    %c0_61 = arith.constant 0 : index
    %c0_62 = arith.constant 0 : index
    %58 = vector.load %arg4[%c0_60, %c0_61, %c0_62] : memref<1x8x256xbf16, #tpu.memory_space<vmem>>, vector<1x8x256xbf16>
    %59 = vector.shape_cast %58 : vector<1x8x256xbf16> to vector<8x256xbf16>
    %c0_63 = arith.constant 0 : index
    %c0_64 = arith.constant 0 : index
    %c0_65 = arith.constant 0 : index
    %60 = vector.load %arg5[%c0_63, %c0_64, %c0_65] : memref<1x8x256xbf16, #tpu.memory_space<vmem>>, vector<1x8x256xbf16>
    %61 = vector.shape_cast %60 : vector<1x8x256xbf16> to vector<8x256xbf16>
    %c0_66 = arith.constant 0 : index
    %c0_67 = arith.constant 0 : index
    %c0_68 = arith.constant 0 : index
    %62 = vector.load %arg6[%c0_66, %c0_67, %c0_68] : memref<1x8x256xbf16, #tpu.memory_space<vmem>>, vector<1x8x256xbf16>
    %63 = vector.shape_cast %62 : vector<1x8x256xbf16> to vector<8x256xbf16>
    %c0_69 = arith.constant 0 : index
    %c0_70 = arith.constant 0 : index
    %c0_71 = arith.constant 0 : index
    %64 = vector.load %arg7[%c0_69, %c0_70, %c0_71] : memref<1x8x256xbf16, #tpu.memory_space<vmem>>, vector<1x8x256xbf16>
    %65 = vector.shape_cast %64 : vector<1x8x256xbf16> to vector<8x256xbf16>
    %c0_72 = arith.constant 0 : index
    %c0_73 = arith.constant 0 : index
    %66 = vector.load %arg9[%c0_72, %c0_73] : memref<1x128xf32, #tpu.memory_space<vmem>>, vector<1x128xf32>
    %cst = arith.constant 0.000000e+00 : f32
    %67 = vector.broadcast %cst : f32 to vector<8x1xf32>
    %cst_74 = arith.constant 0.000000e+00 : f32
    %68 = vector.broadcast %cst_74 : f32 to vector<8x1xf32>
    %cst_75 = arith.constant 0.000000e+00 : f32
    %69 = vector.broadcast %cst_75 : f32 to vector<8x128xf32>
    %70 = vector.extract_strided_slice %55 {offsets = [0, 0], sizes = [8, 128], strides = [1, 1]} : vector<8x256xbf16> to vector<8x128xbf16>
    %cst_76 = arith.constant dense<0.000000e+00> : vector<8x128xf32>
    %71 = tpu.matmul %1, %70, %cst_76 {dimension_numbers = #tpu.dot_dimension_numbers<[1], [0], [0], [1], [0, 0, 1, 1], [], []>} : vector<8x8xbf16>, vector<8x128xbf16>, vector<8x128xf32> -> vector<8x128xf32>
    %72 = arith.addf %69, %71 : vector<8x128xf32>
    %73 = vector.extract_strided_slice %55 {offsets = [0, 1], sizes = [8, 128], strides = [1, 1]} : vector<8x256xbf16> to vector<8x128xbf16>
    %cst_77 = arith.constant dense<0.000000e+00> : vector<8x128xf32>
    %74 = tpu.matmul %3, %73, %cst_77 {dimension_numbers = #tpu.dot_dimension_numbers<[1], [0], [0], [1], [0, 0, 1, 1], [], []>} : vector<8x8xbf16>, vector<8x128xbf16>, vector<8x128xf32> -> vector<8x128xf32>
    %75 = arith.addf %72, %74 : vector<8x128xf32>
    %76 = vector.extract_strided_slice %55 {offsets = [0, 2], sizes = [8, 128], strides = [1, 1]} : vector<8x256xbf16> to vector<8x128xbf16>
    %cst_78 = arith.constant dense<0.000000e+00> : vector<8x128xf32>
    %77 = tpu.matmul %5, %76, %cst_78 {dimension_numbers = #tpu.dot_dimension_numbers<[1], [0], [0], [1], [0, 0, 1, 1], [], []>} : vector<8x8xbf16>, vector<8x128xbf16>, vector<8x128xf32> -> vector<8x128xf32>
    %78 = arith.addf %75, %77 : vector<8x128xf32>
    %79 = vector.extract_strided_slice %55 {offsets = [0, 10], sizes = [8, 128], strides = [1, 1]} : vector<8x256xbf16> to vector<8x128xbf16>
    %cst_79 = arith.constant dense<0.000000e+00> : vector<8x128xf32>
    %80 = tpu.matmul %7, %79, %cst_79 {dimension_numbers = #tpu.dot_dimension_numbers<[1], [0], [0], [1], [0, 0, 1, 1], [], []>} : vector<8x8xbf16>, vector<8x128xbf16>, vector<8x128xf32> -> vector<8x128xf32>
    %81 = arith.addf %78, %80 : vector<8x128xf32>
    %82 = vector.extract_strided_slice %55 {offsets = [0, 11], sizes = [8, 128], strides = [1, 1]} : vector<8x256xbf16> to vector<8x128xbf16>
    %cst_80 = arith.constant dense<0.000000e+00> : vector<8x128xf32>
    %83 = tpu.matmul %9, %82, %cst_80 {dimension_numbers = #tpu.dot_dimension_numbers<[1], [0], [0], [1], [0, 0, 1, 1], [], []>} : vector<8x8xbf16>, vector<8x128xbf16>, vector<8x128xf32> -> vector<8x128xf32>
    %84 = arith.addf %81, %83 : vector<8x128xf32>
    %85 = vector.extract_strided_slice %55 {offsets = [0, 12], sizes = [8, 128], strides = [1, 1]} : vector<8x256xbf16> to vector<8x128xbf16>
    %cst_81 = arith.constant dense<0.000000e+00> : vector<8x128xf32>
    %86 = tpu.matmul %11, %85, %cst_81 {dimension_numbers = #tpu.dot_dimension_numbers<[1], [0], [0], [1], [0, 0, 1, 1], [], []>} : vector<8x8xbf16>, vector<8x128xbf16>, vector<8x128xf32> -> vector<8x128xf32>
    %87 = arith.addf %84, %86 : vector<8x128xf32>
    %88 = vector.extract_strided_slice %55 {offsets = [0, 20], sizes = [8, 128], strides = [1, 1]} : vector<8x256xbf16> to vector<8x128xbf16>
    %cst_82 = arith.constant dense<0.000000e+00> : vector<8x128xf32>
    %89 = tpu.matmul %13, %88, %cst_82 {dimension_numbers = #tpu.dot_dimension_numbers<[1], [0], [0], [1], [0, 0, 1, 1], [], []>} : vector<8x8xbf16>, vector<8x128xbf16>, vector<8x128xf32> -> vector<8x128xf32>
    %90 = arith.addf %87, %89 : vector<8x128xf32>
    %91 = vector.extract_strided_slice %55 {offsets = [0, 21], sizes = [8, 128], strides = [1, 1]} : vector<8x256xbf16> to vector<8x128xbf16>
    %cst_83 = arith.constant dense<0.000000e+00> : vector<8x128xf32>
    %92 = tpu.matmul %15, %91, %cst_83 {dimension_numbers = #tpu.dot_dimension_numbers<[1], [0], [0], [1], [0, 0, 1, 1], [], []>} : vector<8x8xbf16>, vector<8x128xbf16>, vector<8x128xf32> -> vector<8x128xf32>
    %93 = arith.addf %90, %92 : vector<8x128xf32>
    %94 = vector.extract_strided_slice %55 {offsets = [0, 22], sizes = [8, 128], strides = [1, 1]} : vector<8x256xbf16> to vector<8x128xbf16>
    %cst_84 = arith.constant dense<0.000000e+00> : vector<8x128xf32>
    %95 = tpu.matmul %17, %94, %cst_84 {dimension_numbers = #tpu.dot_dimension_numbers<[1], [0], [0], [1], [0, 0, 1, 1], [], []>} : vector<8x8xbf16>, vector<8x128xbf16>, vector<8x128xf32> -> vector<8x128xf32>
    %96 = arith.addf %93, %95 : vector<8x128xf32>
    %97 = vector.extract_strided_slice %57 {offsets = [0, 0], sizes = [8, 128], strides = [1, 1]} : vector<8x256xbf16> to vector<8x128xbf16>
    %cst_85 = arith.constant dense<0.000000e+00> : vector<8x128xf32>
    %98 = tpu.matmul %19, %97, %cst_85 {dimension_numbers = #tpu.dot_dimension_numbers<[1], [0], [0], [1], [0, 0, 1, 1], [], []>} : vector<8x8xbf16>, vector<8x128xbf16>, vector<8x128xf32> -> vector<8x128xf32>
    %99 = arith.addf %96, %98 : vector<8x128xf32>
    %100 = vector.extract_strided_slice %57 {offsets = [0, 1], sizes = [8, 128], strides = [1, 1]} : vector<8x256xbf16> to vector<8x128xbf16>
    %cst_86 = arith.constant dense<0.000000e+00> : vector<8x128xf32>
    %101 = tpu.matmul %21, %100, %cst_86 {dimension_numbers = #tpu.dot_dimension_numbers<[1], [0], [0], [1], [0, 0, 1, 1], [], []>} : vector<8x8xbf16>, vector<8x128xbf16>, vector<8x128xf32> -> vector<8x128xf32>
    %102 = arith.addf %99, %101 : vector<8x128xf32>
    %103 = vector.extract_strided_slice %57 {offsets = [0, 2], sizes = [8, 128], strides = [1, 1]} : vector<8x256xbf16> to vector<8x128xbf16>
    %cst_87 = arith.constant dense<0.000000e+00> : vector<8x128xf32>
    %104 = tpu.matmul %23, %103, %cst_87 {dimension_numbers = #tpu.dot_dimension_numbers<[1], [0], [0], [1], [0, 0, 1, 1], [], []>} : vector<8x8xbf16>, vector<8x128xbf16>, vector<8x128xf32> -> vector<8x128xf32>
    %105 = arith.addf %102, %104 : vector<8x128xf32>
    %106 = vector.extract_strided_slice %57 {offsets = [0, 10], sizes = [8, 128], strides = [1, 1]} : vector<8x256xbf16> to vector<8x128xbf16>
    %cst_88 = arith.constant dense<0.000000e+00> : vector<8x128xf32>
    %107 = tpu.matmul %25, %106, %cst_88 {dimension_numbers = #tpu.dot_dimension_numbers<[1], [0], [0], [1], [0, 0, 1, 1], [], []>} : vector<8x8xbf16>, vector<8x128xbf16>, vector<8x128xf32> -> vector<8x128xf32>
    %108 = arith.addf %105, %107 : vector<8x128xf32>
    %109 = vector.extract_strided_slice %57 {offsets = [0, 11], sizes = [8, 128], strides = [1, 1]} : vector<8x256xbf16> to vector<8x128xbf16>
    %cst_89 = arith.constant dense<0.000000e+00> : vector<8x128xf32>
    %110 = tpu.matmul %27, %109, %cst_89 {dimension_numbers = #tpu.dot_dimension_numbers<[1], [0], [0], [1], [0, 0, 1, 1], [], []>} : vector<8x8xbf16>, vector<8x128xbf16>, vector<8x128xf32> -> vector<8x128xf32>
    %111 = arith.addf %108, %110 : vector<8x128xf32>
    %112 = vector.extract_strided_slice %57 {offsets = [0, 12], sizes = [8, 128], strides = [1, 1]} : vector<8x256xbf16> to vector<8x128xbf16>
    %cst_90 = arith.constant dense<0.000000e+00> : vector<8x128xf32>
    %113 = tpu.matmul %29, %112, %cst_90 {dimension_numbers = #tpu.dot_dimension_numbers<[1], [0], [0], [1], [0, 0, 1, 1], [], []>} : vector<8x8xbf16>, vector<8x128xbf16>, vector<8x128xf32> -> vector<8x128xf32>
    %114 = arith.addf %111, %113 : vector<8x128xf32>
    %115 = vector.extract_strided_slice %57 {offsets = [0, 20], sizes = [8, 128], strides = [1, 1]} : vector<8x256xbf16> to vector<8x128xbf16>
    %cst_91 = arith.constant dense<0.000000e+00> : vector<8x128xf32>
    %116 = tpu.matmul %31, %115, %cst_91 {dimension_numbers = #tpu.dot_dimension_numbers<[1], [0], [0], [1], [0, 0, 1, 1], [], []>} : vector<8x8xbf16>, vector<8x128xbf16>, vector<8x128xf32> -> vector<8x128xf32>
    %117 = arith.addf %114, %116 : vector<8x128xf32>
    %118 = vector.extract_strided_slice %57 {offsets = [0, 21], sizes = [8, 128], strides = [1, 1]} : vector<8x256xbf16> to vector<8x128xbf16>
    %cst_92 = arith.constant dense<0.000000e+00> : vector<8x128xf32>
    %119 = tpu.matmul %33, %118, %cst_92 {dimension_numbers = #tpu.dot_dimension_numbers<[1], [0], [0], [1], [0, 0, 1, 1], [], []>} : vector<8x8xbf16>, vector<8x128xbf16>, vector<8x128xf32> -> vector<8x128xf32>
    %120 = arith.addf %117, %119 : vector<8x128xf32>
    %121 = vector.extract_strided_slice %57 {offsets = [0, 22], sizes = [8, 128], strides = [1, 1]} : vector<8x256xbf16> to vector<8x128xbf16>
    %cst_93 = arith.constant dense<0.000000e+00> : vector<8x128xf32>
    %122 = tpu.matmul %35, %121, %cst_93 {dimension_numbers = #tpu.dot_dimension_numbers<[1], [0], [0], [1], [0, 0, 1, 1], [], []>} : vector<8x8xbf16>, vector<8x128xbf16>, vector<8x128xf32> -> vector<8x128xf32>
    %123 = arith.addf %120, %122 : vector<8x128xf32>
    %124 = vector.extract_strided_slice %59 {offsets = [0, 0], sizes = [8, 128], strides = [1, 1]} : vector<8x256xbf16> to vector<8x128xbf16>
    %cst_94 = arith.constant dense<0.000000e+00> : vector<8x128xf32>
    %125 = tpu.matmul %37, %124, %cst_94 {dimension_numbers = #tpu.dot_dimension_numbers<[1], [0], [0], [1], [0, 0, 1, 1], [], []>} : vector<8x8xbf16>, vector<8x128xbf16>, vector<8x128xf32> -> vector<8x128xf32>
    %126 = arith.addf %123, %125 : vector<8x128xf32>
    %127 = vector.extract_strided_slice %59 {offsets = [0, 1], sizes = [8, 128], strides = [1, 1]} : vector<8x256xbf16> to vector<8x128xbf16>
    %cst_95 = arith.constant dense<0.000000e+00> : vector<8x128xf32>
    %128 = tpu.matmul %39, %127, %cst_95 {dimension_numbers = #tpu.dot_dimension_numbers<[1], [0], [0], [1], [0, 0, 1, 1], [], []>} : vector<8x8xbf16>, vector<8x128xbf16>, vector<8x128xf32> -> vector<8x128xf32>
    %129 = arith.addf %126, %128 : vector<8x128xf32>
    %130 = vector.extract_strided_slice %59 {offsets = [0, 2], sizes = [8, 128], strides = [1, 1]} : vector<8x256xbf16> to vector<8x128xbf16>
    %cst_96 = arith.constant dense<0.000000e+00> : vector<8x128xf32>
    %131 = tpu.matmul %41, %130, %cst_96 {dimension_numbers = #tpu.dot_dimension_numbers<[1], [0], [0], [1], [0, 0, 1, 1], [], []>} : vector<8x8xbf16>, vector<8x128xbf16>, vector<8x128xf32> -> vector<8x128xf32>
    %132 = arith.addf %129, %131 : vector<8x128xf32>
    %133 = vector.extract_strided_slice %59 {offsets = [0, 10], sizes = [8, 128], strides = [1, 1]} : vector<8x256xbf16> to vector<8x128xbf16>
    %cst_97 = arith.constant dense<0.000000e+00> : vector<8x128xf32>
    %134 = tpu.matmul %43, %133, %cst_97 {dimension_numbers = #tpu.dot_dimension_numbers<[1], [0], [0], [1], [0, 0, 1, 1], [], []>} : vector<8x8xbf16>, vector<8x128xbf16>, vector<8x128xf32> -> vector<8x128xf32>
    %135 = arith.addf %132, %134 : vector<8x128xf32>
    %136 = vector.extract_strided_slice %59 {offsets = [0, 11], sizes = [8, 128], strides = [1, 1]} : vector<8x256xbf16> to vector<8x128xbf16>
    %cst_98 = arith.constant dense<0.000000e+00> : vector<8x128xf32>
    %137 = tpu.matmul %45, %136, %cst_98 {dimension_numbers = #tpu.dot_dimension_numbers<[1], [0], [0], [1], [0, 0, 1, 1], [], []>} : vector<8x8xbf16>, vector<8x128xbf16>, vector<8x128xf32> -> vector<8x128xf32>
    %138 = arith.addf %135, %137 : vector<8x128xf32>
    %139 = vector.extract_strided_slice %59 {offsets = [0, 12], sizes = [8, 128], strides = [1, 1]} : vector<8x256xbf16> to vector<8x128xbf16>
    %cst_99 = arith.constant dense<0.000000e+00> : vector<8x128xf32>
    %140 = tpu.matmul %47, %139, %cst_99 {dimension_numbers = #tpu.dot_dimension_numbers<[1], [0], [0], [1], [0, 0, 1, 1], [], []>} : vector<8x8xbf16>, vector<8x128xbf16>, vector<8x128xf32> -> vector<8x128xf32>
    %141 = arith.addf %138, %140 : vector<8x128xf32>
    %142 = vector.extract_strided_slice %59 {offsets = [0, 20], sizes = [8, 128], strides = [1, 1]} : vector<8x256xbf16> to vector<8x128xbf16>
    %cst_100 = arith.constant dense<0.000000e+00> : vector<8x128xf32>
    %143 = tpu.matmul %49, %142, %cst_100 {dimension_numbers = #tpu.dot_dimension_numbers<[1], [0], [0], [1], [0, 0, 1, 1], [], []>} : vector<8x8xbf16>, vector<8x128xbf16>, vector<8x128xf32> -> vector<8x128xf32>
    %144 = arith.addf %141, %143 : vector<8x128xf32>
    %145 = vector.extract_strided_slice %59 {offsets = [0, 21], sizes = [8, 128], strides = [1, 1]} : vector<8x256xbf16> to vector<8x128xbf16>
    %cst_101 = arith.constant dense<0.000000e+00> : vector<8x128xf32>
    %146 = tpu.matmul %51, %145, %cst_101 {dimension_numbers = #tpu.dot_dimension_numbers<[1], [0], [0], [1], [0, 0, 1, 1], [], []>} : vector<8x8xbf16>, vector<8x128xbf16>, vector<8x128xf32> -> vector<8x128xf32>
    %147 = arith.addf %144, %146 : vector<8x128xf32>
    %148 = vector.extract_strided_slice %59 {offsets = [0, 22], sizes = [8, 128], strides = [1, 1]} : vector<8x256xbf16> to vector<8x128xbf16>
    %cst_102 = arith.constant dense<0.000000e+00> : vector<8x128xf32>
    %149 = tpu.matmul %53, %148, %cst_102 {dimension_numbers = #tpu.dot_dimension_numbers<[1], [0], [0], [1], [0, 0, 1, 1], [], []>} : vector<8x8xbf16>, vector<8x128xbf16>, vector<8x128xf32> -> vector<8x128xf32>
    %150 = arith.addf %147, %149 : vector<8x128xf32>
    %151 = arith.truncf %150 : vector<8x128xf32> to vector<8x128xbf16>
    %c0_103 = arith.constant 0 : index
    %c0_104 = arith.constant 0 : index
    %c0_105 = arith.constant 0 : index
    %c0_106 = arith.constant 0 : index
    %152 = vector.load %arg10[%c0_103, %c0_104, %c0_105, %c0_106] : memref<1x4x8x128xbf16, #tpu.memory_space<vmem>>, vector<1x1x8x128xbf16>
    %153 = vector.shape_cast %152 : vector<1x1x8x128xbf16> to vector<8x128xbf16>
    %154 = vector.shape_cast %151 : vector<8x128xbf16> to vector<1x1x8x128xbf16>
    tpu.vector_store %arg10[%c0_103, %c0_104, %c0_105, %c0_106], %154 {strides = array<i32>} : memref<1x4x8x128xbf16, #tpu.memory_space<vmem>>, vector<1x1x8x128xbf16>,
    %155 = vector.broadcast %66 : vector<1x128xf32> to vector<8x128xf32>
    %156 = arith.mulf %150, %155 : vector<8x128xf32>
    %cst_107 = arith.constant dense<0.000000e+00> : vector<8xf32>
    %157 = vector.multi_reduction <add>, %156, %cst_107 [1] : vector<8x128xf32> to vector<8xf32>
    %158 = vector.shape_cast %157 : vector<8xf32> to vector<8x1xf32>
    %159 = arith.addf %67, %158 : vector<8x1xf32>
    %160 = arith.mulf %156, %150 : vector<8x128xf32>
    %cst_108 = arith.constant dense<0.000000e+00> : vector<8xf32>
    %161 = vector.multi_reduction <add>, %160, %cst_108 [1] : vector<8x128xf32> to vector<8xf32>
    %162 = vector.shape_cast %161 : vector<8xf32> to vector<8x1xf32>
    %163 = arith.addf %68, %162 : vector<8x1xf32>
    %cst_109 = arith.constant 0.000000e+00 : f32
    %164 = vector.broadcast %cst_109 : f32 to vector<8x128xf32>
    %165 = vector.extract_strided_slice %57 {offsets = [0, 0], sizes = [8, 128], strides = [1, 1]} : vector<8x256xbf16> to vector<8x128xbf16>
    %cst_110 = arith.constant dense<0.000000e+00> : vector<8x128xf32>
    %166 = tpu.matmul %1, %165, %cst_110 {dimension_numbers = #tpu.dot_dimension_numbers<[1], [0], [0], [1], [0, 0, 1, 1], [], []>} : vector<8x8xbf16>, vector<8x128xbf16>, vector<8x128xf32> -> vector<8x128xf32>
    %167 = arith.addf %164, %166 : vector<8x128xf32>
    %168 = vector.extract_strided_slice %57 {offsets = [0, 1], sizes = [8, 128], strides = [1, 1]} : vector<8x256xbf16> to vector<8x128xbf16>
    %cst_111 = arith.constant dense<0.000000e+00> : vector<8x128xf32>
    %169 = tpu.matmul %3, %168, %cst_111 {dimension_numbers = #tpu.dot_dimension_numbers<[1], [0], [0], [1], [0, 0, 1, 1], [], []>} : vector<8x8xbf16>, vector<8x128xbf16>, vector<8x128xf32> -> vector<8x128xf32>
    %170 = arith.addf %167, %169 : vector<8x128xf32>
    %171 = vector.extract_strided_slice %57 {offsets = [0, 2], sizes = [8, 128], strides = [1, 1]} : vector<8x256xbf16> to vector<8x128xbf16>
    %cst_112 = arith.constant dense<0.000000e+00> : vector<8x128xf32>
    %172 = tpu.matmul %5, %171, %cst_112 {dimension_numbers = #tpu.dot_dimension_numbers<[1], [0], [0], [1], [0, 0, 1, 1], [], []>} : vector<8x8xbf16>, vector<8x128xbf16>, vector<8x128xf32> -> vector<8x128xf32>
    %173 = arith.addf %170, %172 : vector<8x128xf32>
    %174 = vector.extract_strided_slice %57 {offsets = [0, 10], sizes = [8, 128], strides = [1, 1]} : vector<8x256xbf16> to vector<8x128xbf16>
    %cst_113 = arith.constant dense<0.000000e+00> : vector<8x128xf32>
    %175 = tpu.matmul %7, %174, %cst_113 {dimension_numbers = #tpu.dot_dimension_numbers<[1], [0], [0], [1], [0, 0, 1, 1], [], []>} : vector<8x8xbf16>, vector<8x128xbf16>, vector<8x128xf32> -> vector<8x128xf32>
    %176 = arith.addf %173, %175 : vector<8x128xf32>
    %177 = vector.extract_strided_slice %57 {offsets = [0, 11], sizes = [8, 128], strides = [1, 1]} : vector<8x256xbf16> to vector<8x128xbf16>
    %cst_114 = arith.constant dense<0.000000e+00> : vector<8x128xf32>
    %178 = tpu.matmul %9, %177, %cst_114 {dimension_numbers = #tpu.dot_dimension_numbers<[1], [0], [0], [1], [0, 0, 1, 1], [], []>} : vector<8x8xbf16>, vector<8x128xbf16>, vector<8x128xf32> -> vector<8x128xf32>
    %179 = arith.addf %176, %178 : vector<8x128xf32>
    %180 = vector.extract_strided_slice %57 {offsets = [0, 12], sizes = [8, 128], strides = [1, 1]} : vector<8x256xbf16> to vector<8x128xbf16>
    %cst_115 = arith.constant dense<0.000000e+00> : vector<8x128xf32>
    %181 = tpu.matmul %11, %180, %cst_115 {dimension_numbers = #tpu.dot_dimension_numbers<[1], [0], [0], [1], [0, 0, 1, 1], [], []>} : vector<8x8xbf16>, vector<8x128xbf16>, vector<8x128xf32> -> vector<8x128xf32>
    %182 = arith.addf %179, %181 : vector<8x128xf32>
    %183 = vector.extract_strided_slice %57 {offsets = [0, 20], sizes = [8, 128], strides = [1, 1]} : vector<8x256xbf16> to vector<8x128xbf16>
    %cst_116 = arith.constant dense<0.000000e+00> : vector<8x128xf32>
    %184 = tpu.matmul %13, %183, %cst_116 {dimension_numbers = #tpu.dot_dimension_numbers<[1], [0], [0], [1], [0, 0, 1, 1], [], []>} : vector<8x8xbf16>, vector<8x128xbf16>, vector<8x128xf32> -> vector<8x128xf32>
    %185 = arith.addf %182, %184 : vector<8x128xf32>
    %186 = vector.extract_strided_slice %57 {offsets = [0, 21], sizes = [8, 128], strides = [1, 1]} : vector<8x256xbf16> to vector<8x128xbf16>
    %cst_117 = arith.constant dense<0.000000e+00> : vector<8x128xf32>
    %187 = tpu.matmul %15, %186, %cst_117 {dimension_numbers = #tpu.dot_dimension_numbers<[1], [0], [0], [1], [0, 0, 1, 1], [], []>} : vector<8x8xbf16>, vector<8x128xbf16>, vector<8x128xf32> -> vector<8x128xf32>
    %188 = arith.addf %185, %187 : vector<8x128xf32>
    %189 = vector.extract_strided_slice %57 {offsets = [0, 22], sizes = [8, 128], strides = [1, 1]} : vector<8x256xbf16> to vector<8x128xbf16>
    %cst_118 = arith.constant dense<0.000000e+00> : vector<8x128xf32>
    %190 = tpu.matmul %17, %189, %cst_118 {dimension_numbers = #tpu.dot_dimension_numbers<[1], [0], [0], [1], [0, 0, 1, 1], [], []>} : vector<8x8xbf16>, vector<8x128xbf16>, vector<8x128xf32> -> vector<8x128xf32>
    %191 = arith.addf %188, %190 : vector<8x128xf32>
    %192 = vector.extract_strided_slice %59 {offsets = [0, 0], sizes = [8, 128], strides = [1, 1]} : vector<8x256xbf16> to vector<8x128xbf16>
    %cst_119 = arith.constant dense<0.000000e+00> : vector<8x128xf32>
    %193 = tpu.matmul %19, %192, %cst_119 {dimension_numbers = #tpu.dot_dimension_numbers<[1], [0], [0], [1], [0, 0, 1, 1], [], []>} : vector<8x8xbf16>, vector<8x128xbf16>, vector<8x128xf32> -> vector<8x128xf32>
    %194 = arith.addf %191, %193 : vector<8x128xf32>
    %195 = vector.extract_strided_slice %59 {offsets = [0, 1], sizes = [8, 128], strides = [1, 1]} : vector<8x256xbf16> to vector<8x128xbf16>
    %cst_120 = arith.constant dense<0.000000e+00> : vector<8x128xf32>
    %196 = tpu.matmul %21, %195, %cst_120 {dimension_numbers = #tpu.dot_dimension_numbers<[1], [0], [0], [1], [0, 0, 1, 1], [], []>} : vector<8x8xbf16>, vector<8x128xbf16>, vector<8x128xf32> -> vector<8x128xf32>
    %197 = arith.addf %194, %196 : vector<8x128xf32>
    %198 = vector.extract_strided_slice %59 {offsets = [0, 2], sizes = [8, 128], strides = [1, 1]} : vector<8x256xbf16> to vector<8x128xbf16>
    %cst_121 = arith.constant dense<0.000000e+00> : vector<8x128xf32>
    %199 = tpu.matmul %23, %198, %cst_121 {dimension_numbers = #tpu.dot_dimension_numbers<[1], [0], [0], [1], [0, 0, 1, 1], [], []>} : vector<8x8xbf16>, vector<8x128xbf16>, vector<8x128xf32> -> vector<8x128xf32>
    %200 = arith.addf %197, %199 : vector<8x128xf32>
    %201 = vector.extract_strided_slice %59 {offsets = [0, 10], sizes = [8, 128], strides = [1, 1]} : vector<8x256xbf16> to vector<8x128xbf16>
    %cst_122 = arith.constant dense<0.000000e+00> : vector<8x128xf32>
    %202 = tpu.matmul %25, %201, %cst_122 {dimension_numbers = #tpu.dot_dimension_numbers<[1], [0], [0], [1], [0, 0, 1, 1], [], []>} : vector<8x8xbf16>, vector<8x128xbf16>, vector<8x128xf32> -> vector<8x128xf32>
    %203 = arith.addf %200, %202 : vector<8x128xf32>
    %204 = vector.extract_strided_slice %59 {offsets = [0, 11], sizes = [8, 128], strides = [1, 1]} : vector<8x256xbf16> to vector<8x128xbf16>
    %cst_123 = arith.constant dense<0.000000e+00> : vector<8x128xf32>
    %205 = tpu.matmul %27, %204, %cst_123 {dimension_numbers = #tpu.dot_dimension_numbers<[1], [0], [0], [1], [0, 0, 1, 1], [], []>} : vector<8x8xbf16>, vector<8x128xbf16>, vector<8x128xf32> -> vector<8x128xf32>
    %206 = arith.addf %203, %205 : vector<8x128xf32>
    %207 = vector.extract_strided_slice %59 {offsets = [0, 12], sizes = [8, 128], strides = [1, 1]} : vector<8x256xbf16> to vector<8x128xbf16>
    %cst_124 = arith.constant dense<0.000000e+00> : vector<8x128xf32>
    %208 = tpu.matmul %29, %207, %cst_124 {dimension_numbers = #tpu.dot_dimension_numbers<[1], [0], [0], [1], [0, 0, 1, 1], [], []>} : vector<8x8xbf16>, vector<8x128xbf16>, vector<8x128xf32> -> vector<8x128xf32>
    %209 = arith.addf %206, %208 : vector<8x128xf32>
    %210 = vector.extract_strided_slice %59 {offsets = [0, 20], sizes = [8, 128], strides = [1, 1]} : vector<8x256xbf16> to vector<8x128xbf16>
    %cst_125 = arith.constant dense<0.000000e+00> : vector<8x128xf32>
    %211 = tpu.matmul %31, %210, %cst_125 {dimension_numbers = #tpu.dot_dimension_numbers<[1], [0], [0], [1], [0, 0, 1, 1], [], []>} : vector<8x8xbf16>, vector<8x128xbf16>, vector<8x128xf32> -> vector<8x128xf32>
    %212 = arith.addf %209, %211 : vector<8x128xf32>
    %213 = vector.extract_strided_slice %59 {offsets = [0, 21], sizes = [8, 128], strides = [1, 1]} : vector<8x256xbf16> to vector<8x128xbf16>
    %cst_126 = arith.constant dense<0.000000e+00> : vector<8x128xf32>
    %214 = tpu.matmul %33, %213, %cst_126 {dimension_numbers = #tpu.dot_dimension_numbers<[1], [0], [0], [1], [0, 0, 1, 1], [], []>} : vector<8x8xbf16>, vector<8x128xbf16>, vector<8x128xf32> -> vector<8x128xf32>
    %215 = arith.addf %212, %214 : vector<8x128xf32>
    %216 = vector.extract_strided_slice %59 {offsets = [0, 22], sizes = [8, 128], strides = [1, 1]} : vector<8x256xbf16> to vector<8x128xbf16>
    %cst_127 = arith.constant dense<0.000000e+00> : vector<8x128xf32>
    %217 = tpu.matmul %35, %216, %cst_127 {dimension_numbers = #tpu.dot_dimension_numbers<[1], [0], [0], [1], [0, 0, 1, 1], [], []>} : vector<8x8xbf16>, vector<8x128xbf16>, vector<8x128xf32> -> vector<8x128xf32>
    %218 = arith.addf %215, %217 : vector<8x128xf32>
    %219 = vector.extract_strided_slice %61 {offsets = [0, 0], sizes = [8, 128], strides = [1, 1]} : vector<8x256xbf16> to vector<8x128xbf16>
    %cst_128 = arith.constant dense<0.000000e+00> : vector<8x128xf32>
    %220 = tpu.matmul %37, %219, %cst_128 {dimension_numbers = #tpu.dot_dimension_numbers<[1], [0], [0], [1], [0, 0, 1, 1], [], []>} : vector<8x8xbf16>, vector<8x128xbf16>, vector<8x128xf32> -> vector<8x128xf32>
    %221 = arith.addf %218, %220 : vector<8x128xf32>
    %222 = vector.extract_strided_slice %61 {offsets = [0, 1], sizes = [8, 128], strides = [1, 1]} : vector<8x256xbf16> to vector<8x128xbf16>
    %cst_129 = arith.constant dense<0.000000e+00> : vector<8x128xf32>
    %223 = tpu.matmul %39, %222, %cst_129 {dimension_numbers = #tpu.dot_dimension_numbers<[1], [0], [0], [1], [0, 0, 1, 1], [], []>} : vector<8x8xbf16>, vector<8x128xbf16>, vector<8x128xf32> -> vector<8x128xf32>
    %224 = arith.addf %221, %223 : vector<8x128xf32>
    %225 = vector.extract_strided_slice %61 {offsets = [0, 2], sizes = [8, 128], strides = [1, 1]} : vector<8x256xbf16> to vector<8x128xbf16>
    %cst_130 = arith.constant dense<0.000000e+00> : vector<8x128xf32>
    %226 = tpu.matmul %41, %225, %cst_130 {dimension_numbers = #tpu.dot_dimension_numbers<[1], [0], [0], [1], [0, 0, 1, 1], [], []>} : vector<8x8xbf16>, vector<8x128xbf16>, vector<8x128xf32> -> vector<8x128xf32>
    %227 = arith.addf %224, %226 : vector<8x128xf32>
    %228 = vector.extract_strided_slice %61 {offsets = [0, 10], sizes = [8, 128], strides = [1, 1]} : vector<8x256xbf16> to vector<8x128xbf16>
    %cst_131 = arith.constant dense<0.000000e+00> : vector<8x128xf32>
    %229 = tpu.matmul %43, %228, %cst_131 {dimension_numbers = #tpu.dot_dimension_numbers<[1], [0], [0], [1], [0, 0, 1, 1], [], []>} : vector<8x8xbf16>, vector<8x128xbf16>, vector<8x128xf32> -> vector<8x128xf32>
    %230 = arith.addf %227, %229 : vector<8x128xf32>
    %231 = vector.extract_strided_slice %61 {offsets = [0, 11], sizes = [8, 128], strides = [1, 1]} : vector<8x256xbf16> to vector<8x128xbf16>
    %cst_132 = arith.constant dense<0.000000e+00> : vector<8x128xf32>
    %232 = tpu.matmul %45, %231, %cst_132 {dimension_numbers = #tpu.dot_dimension_numbers<[1], [0], [0], [1], [0, 0, 1, 1], [], []>} : vector<8x8xbf16>, vector<8x128xbf16>, vector<8x128xf32> -> vector<8x128xf32>
    %233 = arith.addf %230, %232 : vector<8x128xf32>
    %234 = vector.extract_strided_slice %61 {offsets = [0, 12], sizes = [8, 128], strides = [1, 1]} : vector<8x256xbf16> to vector<8x128xbf16>
    %cst_133 = arith.constant dense<0.000000e+00> : vector<8x128xf32>
    %235 = tpu.matmul %47, %234, %cst_133 {dimension_numbers = #tpu.dot_dimension_numbers<[1], [0], [0], [1], [0, 0, 1, 1], [], []>} : vector<8x8xbf16>, vector<8x128xbf16>, vector<8x128xf32> -> vector<8x128xf32>
    %236 = arith.addf %233, %235 : vector<8x128xf32>
    %237 = vector.extract_strided_slice %61 {offsets = [0, 20], sizes = [8, 128], strides = [1, 1]} : vector<8x256xbf16> to vector<8x128xbf16>
    %cst_134 = arith.constant dense<0.000000e+00> : vector<8x128xf32>
    %238 = tpu.matmul %49, %237, %cst_134 {dimension_numbers = #tpu.dot_dimension_numbers<[1], [0], [0], [1], [0, 0, 1, 1], [], []>} : vector<8x8xbf16>, vector<8x128xbf16>, vector<8x128xf32> -> vector<8x128xf32>
    %239 = arith.addf %236, %238 : vector<8x128xf32>
    %240 = vector.extract_strided_slice %61 {offsets = [0, 21], sizes = [8, 128], strides = [1, 1]} : vector<8x256xbf16> to vector<8x128xbf16>
    %cst_135 = arith.constant dense<0.000000e+00> : vector<8x128xf32>
    %241 = tpu.matmul %51, %240, %cst_135 {dimension_numbers = #tpu.dot_dimension_numbers<[1], [0], [0], [1], [0, 0, 1, 1], [], []>} : vector<8x8xbf16>, vector<8x128xbf16>, vector<8x128xf32> -> vector<8x128xf32>
    %242 = arith.addf %239, %241 : vector<8x128xf32>
    %243 = vector.extract_strided_slice %61 {offsets = [0, 22], sizes = [8, 128], strides = [1, 1]} : vector<8x256xbf16> to vector<8x128xbf16>
    %cst_136 = arith.constant dense<0.000000e+00> : vector<8x128xf32>
    %244 = tpu.matmul %53, %243, %cst_136 {dimension_numbers = #tpu.dot_dimension_numbers<[1], [0], [0], [1], [0, 0, 1, 1], [], []>} : vector<8x8xbf16>, vector<8x128xbf16>, vector<8x128xf32> -> vector<8x128xf32>
    %245 = arith.addf %242, %244 : vector<8x128xf32>
    %246 = arith.truncf %245 : vector<8x128xf32> to vector<8x128xbf16>
    %c0_137 = arith.constant 0 : index
    %c1_138 = arith.constant 1 : index
    %c0_139 = arith.constant 0 : index
    %c0_140 = arith.constant 0 : index
    %247 = vector.load %arg10[%c0_137, %c1_138, %c0_139, %c0_140] : memref<1x4x8x128xbf16, #tpu.memory_space<vmem>>, vector<1x1x8x128xbf16>
    %248 = vector.shape_cast %247 : vector<1x1x8x128xbf16> to vector<8x128xbf16>
    %249 = vector.shape_cast %246 : vector<8x128xbf16> to vector<1x1x8x128xbf16>
    tpu.vector_store %arg10[%c0_137, %c1_138, %c0_139, %c0_140], %249 {strides = array<i32>} : memref<1x4x8x128xbf16, #tpu.memory_space<vmem>>, vector<1x1x8x128xbf16>,
    %250 = vector.broadcast %66 : vector<1x128xf32> to vector<8x128xf32>
    %251 = arith.mulf %245, %250 : vector<8x128xf32>
    %cst_141 = arith.constant dense<0.000000e+00> : vector<8xf32>
    %252 = vector.multi_reduction <add>, %251, %cst_141 [1] : vector<8x128xf32> to vector<8xf32>
    %253 = vector.shape_cast %252 : vector<8xf32> to vector<8x1xf32>
    %254 = arith.addf %159, %253 : vector<8x1xf32>
    %255 = arith.mulf %251, %245 : vector<8x128xf32>
    %cst_142 = arith.constant dense<0.000000e+00> : vector<8xf32>
    %256 = vector.multi_reduction <add>, %255, %cst_142 [1] : vector<8x128xf32> to vector<8xf32>
    %257 = vector.shape_cast %256 : vector<8xf32> to vector<8x1xf32>
    %258 = arith.addf %163, %257 : vector<8x1xf32>
    %cst_143 = arith.constant 0.000000e+00 : f32
    %259 = vector.broadcast %cst_143 : f32 to vector<8x128xf32>
    %260 = vector.extract_strided_slice %59 {offsets = [0, 0], sizes = [8, 128], strides = [1, 1]} : vector<8x256xbf16> to vector<8x128xbf16>
    %cst_144 = arith.constant dense<0.000000e+00> : vector<8x128xf32>
    %261 = tpu.matmul %1, %260, %cst_144 {dimension_numbers = #tpu.dot_dimension_numbers<[1], [0], [0], [1], [0, 0, 1, 1], [], []>} : vector<8x8xbf16>, vector<8x128xbf16>, vector<8x128xf32> -> vector<8x128xf32>
    %262 = arith.addf %259, %261 : vector<8x128xf32>
    %263 = vector.extract_strided_slice %59 {offsets = [0, 1], sizes = [8, 128], strides = [1, 1]} : vector<8x256xbf16> to vector<8x128xbf16>
    %cst_145 = arith.constant dense<0.000000e+00> : vector<8x128xf32>
    %264 = tpu.matmul %3, %263, %cst_145 {dimension_numbers = #tpu.dot_dimension_numbers<[1], [0], [0], [1], [0, 0, 1, 1], [], []>} : vector<8x8xbf16>, vector<8x128xbf16>, vector<8x128xf32> -> vector<8x128xf32>
    %265 = arith.addf %262, %264 : vector<8x128xf32>
    %266 = vector.extract_strided_slice %59 {offsets = [0, 2], sizes = [8, 128], strides = [1, 1]} : vector<8x256xbf16> to vector<8x128xbf16>
    %cst_146 = arith.constant dense<0.000000e+00> : vector<8x128xf32>
    %267 = tpu.matmul %5, %266, %cst_146 {dimension_numbers = #tpu.dot_dimension_numbers<[1], [0], [0], [1], [0, 0, 1, 1], [], []>} : vector<8x8xbf16>, vector<8x128xbf16>, vector<8x128xf32> -> vector<8x128xf32>
    %268 = arith.addf %265, %267 : vector<8x128xf32>
    %269 = vector.extract_strided_slice %59 {offsets = [0, 10], sizes = [8, 128], strides = [1, 1]} : vector<8x256xbf16> to vector<8x128xbf16>
    %cst_147 = arith.constant dense<0.000000e+00> : vector<8x128xf32>
    %270 = tpu.matmul %7, %269, %cst_147 {dimension_numbers = #tpu.dot_dimension_numbers<[1], [0], [0], [1], [0, 0, 1, 1], [], []>} : vector<8x8xbf16>, vector<8x128xbf16>, vector<8x128xf32> -> vector<8x128xf32>
    %271 = arith.addf %268, %270 : vector<8x128xf32>
    %272 = vector.extract_strided_slice %59 {offsets = [0, 11], sizes = [8, 128], strides = [1, 1]} : vector<8x256xbf16> to vector<8x128xbf16>
    %cst_148 = arith.constant dense<0.000000e+00> : vector<8x128xf32>
    %273 = tpu.matmul %9, %272, %cst_148 {dimension_numbers = #tpu.dot_dimension_numbers<[1], [0], [0], [1], [0, 0, 1, 1], [], []>} : vector<8x8xbf16>, vector<8x128xbf16>, vector<8x128xf32> -> vector<8x128xf32>
    %274 = arith.addf %271, %273 : vector<8x128xf32>
    %275 = vector.extract_strided_slice %59 {offsets = [0, 12], sizes = [8, 128], strides = [1, 1]} : vector<8x256xbf16> to vector<8x128xbf16>
    %cst_149 = arith.constant dense<0.000000e+00> : vector<8x128xf32>
    %276 = tpu.matmul %11, %275, %cst_149 {dimension_numbers = #tpu.dot_dimension_numbers<[1], [0], [0], [1], [0, 0, 1, 1], [], []>} : vector<8x8xbf16>, vector<8x128xbf16>, vector<8x128xf32> -> vector<8x128xf32>
    %277 = arith.addf %274, %276 : vector<8x128xf32>
    %278 = vector.extract_strided_slice %59 {offsets = [0, 20], sizes = [8, 128], strides = [1, 1]} : vector<8x256xbf16> to vector<8x128xbf16>
    %cst_150 = arith.constant dense<0.000000e+00> : vector<8x128xf32>
    %279 = tpu.matmul %13, %278, %cst_150 {dimension_numbers = #tpu.dot_dimension_numbers<[1], [0], [0], [1], [0, 0, 1, 1], [], []>} : vector<8x8xbf16>, vector<8x128xbf16>, vector<8x128xf32> -> vector<8x128xf32>
    %280 = arith.addf %277, %279 : vector<8x128xf32>
    %281 = vector.extract_strided_slice %59 {offsets = [0, 21], sizes = [8, 128], strides = [1, 1]} : vector<8x256xbf16> to vector<8x128xbf16>
    %cst_151 = arith.constant dense<0.000000e+00> : vector<8x128xf32>
    %282 = tpu.matmul %15, %281, %cst_151 {dimension_numbers = #tpu.dot_dimension_numbers<[1], [0], [0], [1], [0, 0, 1, 1], [], []>} : vector<8x8xbf16>, vector<8x128xbf16>, vector<8x128xf32> -> vector<8x128xf32>
    %283 = arith.addf %280, %282 : vector<8x128xf32>
    %284 = vector.extract_strided_slice %59 {offsets = [0, 22], sizes = [8, 128], strides = [1, 1]} : vector<8x256xbf16> to vector<8x128xbf16>
    %cst_152 = arith.constant dense<0.000000e+00> : vector<8x128xf32>
    %285 = tpu.matmul %17, %284, %cst_152 {dimension_numbers = #tpu.dot_dimension_numbers<[1], [0], [0], [1], [0, 0, 1, 1], [], []>} : vector<8x8xbf16>, vector<8x128xbf16>, vector<8x128xf32> -> vector<8x128xf32>
    %286 = arith.addf %283, %285 : vector<8x128xf32>
    %287 = vector.extract_strided_slice %61 {offsets = [0, 0], sizes = [8, 128], strides = [1, 1]} : vector<8x256xbf16> to vector<8x128xbf16>
    %cst_153 = arith.constant dense<0.000000e+00> : vector<8x128xf32>
    %288 = tpu.matmul %19, %287, %cst_153 {dimension_numbers = #tpu.dot_dimension_numbers<[1], [0], [0], [1], [0, 0, 1, 1], [], []>} : vector<8x8xbf16>, vector<8x128xbf16>, vector<8x128xf32> -> vector<8x128xf32>
    %289 = arith.addf %286, %288 : vector<8x128xf32>
    %290 = vector.extract_strided_slice %61 {offsets = [0, 1], sizes = [8, 128], strides = [1, 1]} : vector<8x256xbf16> to vector<8x128xbf16>
    %cst_154 = arith.constant dense<0.000000e+00> : vector<8x128xf32>
    %291 = tpu.matmul %21, %290, %cst_154 {dimension_numbers = #tpu.dot_dimension_numbers<[1], [0], [0], [1], [0, 0, 1, 1], [], []>} : vector<8x8xbf16>, vector<8x128xbf16>, vector<8x128xf32> -> vector<8x128xf32>
    %292 = arith.addf %289, %291 : vector<8x128xf32>
    %293 = vector.extract_strided_slice %61 {offsets = [0, 2], sizes = [8, 128], strides = [1, 1]} : vector<8x256xbf16> to vector<8x128xbf16>
    %cst_155 = arith.constant dense<0.000000e+00> : vector<8x128xf32>
    %294 = tpu.matmul %23, %293, %cst_155 {dimension_numbers = #tpu.dot_dimension_numbers<[1], [0], [0], [1], [0, 0, 1, 1], [], []>} : vector<8x8xbf16>, vector<8x128xbf16>, vector<8x128xf32> -> vector<8x128xf32>
    %295 = arith.addf %292, %294 : vector<8x128xf32>
    %296 = vector.extract_strided_slice %61 {offsets = [0, 10], sizes = [8, 128], strides = [1, 1]} : vector<8x256xbf16> to vector<8x128xbf16>
    %cst_156 = arith.constant dense<0.000000e+00> : vector<8x128xf32>
    %297 = tpu.matmul %25, %296, %cst_156 {dimension_numbers = #tpu.dot_dimension_numbers<[1], [0], [0], [1], [0, 0, 1, 1], [], []>} : vector<8x8xbf16>, vector<8x128xbf16>, vector<8x128xf32> -> vector<8x128xf32>
    %298 = arith.addf %295, %297 : vector<8x128xf32>
    %299 = vector.extract_strided_slice %61 {offsets = [0, 11], sizes = [8, 128], strides = [1, 1]} : vector<8x256xbf16> to vector<8x128xbf16>
    %cst_157 = arith.constant dense<0.000000e+00> : vector<8x128xf32>
    %300 = tpu.matmul %27, %299, %cst_157 {dimension_numbers = #tpu.dot_dimension_numbers<[1], [0], [0], [1], [0, 0, 1, 1], [], []>} : vector<8x8xbf16>, vector<8x128xbf16>, vector<8x128xf32> -> vector<8x128xf32>
    %301 = arith.addf %298, %300 : vector<8x128xf32>
    %302 = vector.extract_strided_slice %61 {offsets = [0, 12], sizes = [8, 128], strides = [1, 1]} : vector<8x256xbf16> to vector<8x128xbf16>
    %cst_158 = arith.constant dense<0.000000e+00> : vector<8x128xf32>
    %303 = tpu.matmul %29, %302, %cst_158 {dimension_numbers = #tpu.dot_dimension_numbers<[1], [0], [0], [1], [0, 0, 1, 1], [], []>} : vector<8x8xbf16>, vector<8x128xbf16>, vector<8x128xf32> -> vector<8x128xf32>
    %304 = arith.addf %301, %303 : vector<8x128xf32>
    %305 = vector.extract_strided_slice %61 {offsets = [0, 20], sizes = [8, 128], strides = [1, 1]} : vector<8x256xbf16> to vector<8x128xbf16>
    %cst_159 = arith.constant dense<0.000000e+00> : vector<8x128xf32>
    %306 = tpu.matmul %31, %305, %cst_159 {dimension_numbers = #tpu.dot_dimension_numbers<[1], [0], [0], [1], [0, 0, 1, 1], [], []>} : vector<8x8xbf16>, vector<8x128xbf16>, vector<8x128xf32> -> vector<8x128xf32>
    %307 = arith.addf %304, %306 : vector<8x128xf32>
    %308 = vector.extract_strided_slice %61 {offsets = [0, 21], sizes = [8, 128], strides = [1, 1]} : vector<8x256xbf16> to vector<8x128xbf16>
    %cst_160 = arith.constant dense<0.000000e+00> : vector<8x128xf32>
    %309 = tpu.matmul %33, %308, %cst_160 {dimension_numbers = #tpu.dot_dimension_numbers<[1], [0], [0], [1], [0, 0, 1, 1], [], []>} : vector<8x8xbf16>, vector<8x128xbf16>, vector<8x128xf32> -> vector<8x128xf32>
    %310 = arith.addf %307, %309 : vector<8x128xf32>
    %311 = vector.extract_strided_slice %61 {offsets = [0, 22], sizes = [8, 128], strides = [1, 1]} : vector<8x256xbf16> to vector<8x128xbf16>
    %cst_161 = arith.constant dense<0.000000e+00> : vector<8x128xf32>
    %312 = tpu.matmul %35, %311, %cst_161 {dimension_numbers = #tpu.dot_dimension_numbers<[1], [0], [0], [1], [0, 0, 1, 1], [], []>} : vector<8x8xbf16>, vector<8x128xbf16>, vector<8x128xf32> -> vector<8x128xf32>
    %313 = arith.addf %310, %312 : vector<8x128xf32>
    %314 = vector.extract_strided_slice %63 {offsets = [0, 0], sizes = [8, 128], strides = [1, 1]} : vector<8x256xbf16> to vector<8x128xbf16>
    %cst_162 = arith.constant dense<0.000000e+00> : vector<8x128xf32>
    %315 = tpu.matmul %37, %314, %cst_162 {dimension_numbers = #tpu.dot_dimension_numbers<[1], [0], [0], [1], [0, 0, 1, 1], [], []>} : vector<8x8xbf16>, vector<8x128xbf16>, vector<8x128xf32> -> vector<8x128xf32>
    %316 = arith.addf %313, %315 : vector<8x128xf32>
    %317 = vector.extract_strided_slice %63 {offsets = [0, 1], sizes = [8, 128], strides = [1, 1]} : vector<8x256xbf16> to vector<8x128xbf16>
    %cst_163 = arith.constant dense<0.000000e+00> : vector<8x128xf32>
    %318 = tpu.matmul %39, %317, %cst_163 {dimension_numbers = #tpu.dot_dimension_numbers<[1], [0], [0], [1], [0, 0, 1, 1], [], []>} : vector<8x8xbf16>, vector<8x128xbf16>, vector<8x128xf32> -> vector<8x128xf32>
    %319 = arith.addf %316, %318 : vector<8x128xf32>
    %320 = vector.extract_strided_slice %63 {offsets = [0, 2], sizes = [8, 128], strides = [1, 1]} : vector<8x256xbf16> to vector<8x128xbf16>
    %cst_164 = arith.constant dense<0.000000e+00> : vector<8x128xf32>
    %321 = tpu.matmul %41, %320, %cst_164 {dimension_numbers = #tpu.dot_dimension_numbers<[1], [0], [0], [1], [0, 0, 1, 1], [], []>} : vector<8x8xbf16>, vector<8x128xbf16>, vector<8x128xf32> -> vector<8x128xf32>
    %322 = arith.addf %319, %321 : vector<8x128xf32>
    %323 = vector.extract_strided_slice %63 {offsets = [0, 10], sizes = [8, 128], strides = [1, 1]} : vector<8x256xbf16> to vector<8x128xbf16>
    %cst_165 = arith.constant dense<0.000000e+00> : vector<8x128xf32>
    %324 = tpu.matmul %43, %323, %cst_165 {dimension_numbers = #tpu.dot_dimension_numbers<[1], [0], [0], [1], [0, 0, 1, 1], [], []>} : vector<8x8xbf16>, vector<8x128xbf16>, vector<8x128xf32> -> vector<8x128xf32>
    %325 = arith.addf %322, %324 : vector<8x128xf32>
    %326 = vector.extract_strided_slice %63 {offsets = [0, 11], sizes = [8, 128], strides = [1, 1]} : vector<8x256xbf16> to vector<8x128xbf16>
    %cst_166 = arith.constant dense<0.000000e+00> : vector<8x128xf32>
    %327 = tpu.matmul %45, %326, %cst_166 {dimension_numbers = #tpu.dot_dimension_numbers<[1], [0], [0], [1], [0, 0, 1, 1], [], []>} : vector<8x8xbf16>, vector<8x128xbf16>, vector<8x128xf32> -> vector<8x128xf32>
    %328 = arith.addf %325, %327 : vector<8x128xf32>
    %329 = vector.extract_strided_slice %63 {offsets = [0, 12], sizes = [8, 128], strides = [1, 1]} : vector<8x256xbf16> to vector<8x128xbf16>
    %cst_167 = arith.constant dense<0.000000e+00> : vector<8x128xf32>
    %330 = tpu.matmul %47, %329, %cst_167 {dimension_numbers = #tpu.dot_dimension_numbers<[1], [0], [0], [1], [0, 0, 1, 1], [], []>} : vector<8x8xbf16>, vector<8x128xbf16>, vector<8x128xf32> -> vector<8x128xf32>
    %331 = arith.addf %328, %330 : vector<8x128xf32>
    %332 = vector.extract_strided_slice %63 {offsets = [0, 20], sizes = [8, 128], strides = [1, 1]} : vector<8x256xbf16> to vector<8x128xbf16>
    %cst_168 = arith.constant dense<0.000000e+00> : vector<8x128xf32>
    %333 = tpu.matmul %49, %332, %cst_168 {dimension_numbers = #tpu.dot_dimension_numbers<[1], [0], [0], [1], [0, 0, 1, 1], [], []>} : vector<8x8xbf16>, vector<8x128xbf16>, vector<8x128xf32> -> vector<8x128xf32>
    %334 = arith.addf %331, %333 : vector<8x128xf32>
    %335 = vector.extract_strided_slice %63 {offsets = [0, 21], sizes = [8, 128], strides = [1, 1]} : vector<8x256xbf16> to vector<8x128xbf16>
    %cst_169 = arith.constant dense<0.000000e+00> : vector<8x128xf32>
    %336 = tpu.matmul %51, %335, %cst_169 {dimension_numbers = #tpu.dot_dimension_numbers<[1], [0], [0], [1], [0, 0, 1, 1], [], []>} : vector<8x8xbf16>, vector<8x128xbf16>, vector<8x128xf32> -> vector<8x128xf32>
    %337 = arith.addf %334, %336 : vector<8x128xf32>
    %338 = vector.extract_strided_slice %63 {offsets = [0, 22], sizes = [8, 128], strides = [1, 1]} : vector<8x256xbf16> to vector<8x128xbf16>
    %cst_170 = arith.constant dense<0.000000e+00> : vector<8x128xf32>
    %339 = tpu.matmul %53, %338, %cst_170 {dimension_numbers = #tpu.dot_dimension_numbers<[1], [0], [0], [1], [0, 0, 1, 1], [], []>} : vector<8x8xbf16>, vector<8x128xbf16>, vector<8x128xf32> -> vector<8x128xf32>
    %340 = arith.addf %337, %339 : vector<8x128xf32>
    %341 = arith.truncf %340 : vector<8x128xf32> to vector<8x128xbf16>
    %c0_171 = arith.constant 0 : index
    %c2_172 = arith.constant 2 : index
    %c0_173 = arith.constant 0 : index
    %c0_174 = arith.constant 0 : index
    %342 = vector.load %arg10[%c0_171, %c2_172, %c0_173, %c0_174] : memref<1x4x8x128xbf16, #tpu.memory_space<vmem>>, vector<1x1x8x128xbf16>
    %343 = vector.shape_cast %342 : vector<1x1x8x128xbf16> to vector<8x128xbf16>
    %344 = vector.shape_cast %341 : vector<8x128xbf16> to vector<1x1x8x128xbf16>
    tpu.vector_store %arg10[%c0_171, %c2_172, %c0_173, %c0_174], %344 {strides = array<i32>} : memref<1x4x8x128xbf16, #tpu.memory_space<vmem>>, vector<1x1x8x128xbf16>,
    %345 = vector.broadcast %66 : vector<1x128xf32> to vector<8x128xf32>
    %346 = arith.mulf %340, %345 : vector<8x128xf32>
    %cst_175 = arith.constant dense<0.000000e+00> : vector<8xf32>
    %347 = vector.multi_reduction <add>, %346, %cst_175 [1] : vector<8x128xf32> to vector<8xf32>
    %348 = vector.shape_cast %347 : vector<8xf32> to vector<8x1xf32>
    %349 = arith.addf %254, %348 : vector<8x1xf32>
    %350 = arith.mulf %346, %340 : vector<8x128xf32>
    %cst_176 = arith.constant dense<0.000000e+00> : vector<8xf32>
    %351 = vector.multi_reduction <add>, %350, %cst_176 [1] : vector<8x128xf32> to vector<8xf32>
    %352 = vector.shape_cast %351 : vector<8xf32> to vector<8x1xf32>
    %353 = arith.addf %258, %352 : vector<8x1xf32>
    %cst_177 = arith.constant 0.000000e+00 : f32
    %354 = vector.broadcast %cst_177 : f32 to vector<8x128xf32>
    %355 = vector.extract_strided_slice %61 {offsets = [0, 0], sizes = [8, 128], strides = [1, 1]} : vector<8x256xbf16> to vector<8x128xbf16>
    %cst_178 = arith.constant dense<0.000000e+00> : vector<8x128xf32>
    %356 = tpu.matmul %1, %355, %cst_178 {dimension_numbers = #tpu.dot_dimension_numbers<[1], [0], [0], [1], [0, 0, 1, 1], [], []>} : vector<8x8xbf16>, vector<8x128xbf16>, vector<8x128xf32> -> vector<8x128xf32>
    %357 = arith.addf %354, %356 : vector<8x128xf32>
    %358 = vector.extract_strided_slice %61 {offsets = [0, 1], sizes = [8, 128], strides = [1, 1]} : vector<8x256xbf16> to vector<8x128xbf16>
    %cst_179 = arith.constant dense<0.000000e+00> : vector<8x128xf32>
    %359 = tpu.matmul %3, %358, %cst_179 {dimension_numbers = #tpu.dot_dimension_numbers<[1], [0], [0], [1], [0, 0, 1, 1], [], []>} : vector<8x8xbf16>, vector<8x128xbf16>, vector<8x128xf32> -> vector<8x128xf32>
    %360 = arith.addf %357, %359 : vector<8x128xf32>
    %361 = vector.extract_strided_slice %61 {offsets = [0, 2], sizes = [8, 128], strides = [1, 1]} : vector<8x256xbf16> to vector<8x128xbf16>
    %cst_180 = arith.constant dense<0.000000e+00> : vector<8x128xf32>
    %362 = tpu.matmul %5, %361, %cst_180 {dimension_numbers = #tpu.dot_dimension_numbers<[1], [0], [0], [1], [0, 0, 1, 1], [], []>} : vector<8x8xbf16>, vector<8x128xbf16>, vector<8x128xf32> -> vector<8x128xf32>
    %363 = arith.addf %360, %362 : vector<8x128xf32>
    %364 = vector.extract_strided_slice %61 {offsets = [0, 10], sizes = [8, 128], strides = [1, 1]} : vector<8x256xbf16> to vector<8x128xbf16>
    %cst_181 = arith.constant dense<0.000000e+00> : vector<8x128xf32>
    %365 = tpu.matmul %7, %364, %cst_181 {dimension_numbers = #tpu.dot_dimension_numbers<[1], [0], [0], [1], [0, 0, 1, 1], [], []>} : vector<8x8xbf16>, vector<8x128xbf16>, vector<8x128xf32> -> vector<8x128xf32>
    %366 = arith.addf %363, %365 : vector<8x128xf32>
    %367 = vector.extract_strided_slice %61 {offsets = [0, 11], sizes = [8, 128], strides = [1, 1]} : vector<8x256xbf16> to vector<8x128xbf16>
    %cst_182 = arith.constant dense<0.000000e+00> : vector<8x128xf32>
    %368 = tpu.matmul %9, %367, %cst_182 {dimension_numbers = #tpu.dot_dimension_numbers<[1], [0], [0], [1], [0, 0, 1, 1], [], []>} : vector<8x8xbf16>, vector<8x128xbf16>, vector<8x128xf32> -> vector<8x128xf32>
    %369 = arith.addf %366, %368 : vector<8x128xf32>
    %370 = vector.extract_strided_slice %61 {offsets = [0, 12], sizes = [8, 128], strides = [1, 1]} : vector<8x256xbf16> to vector<8x128xbf16>
    %cst_183 = arith.constant dense<0.000000e+00> : vector<8x128xf32>
    %371 = tpu.matmul %11, %370, %cst_183 {dimension_numbers = #tpu.dot_dimension_numbers<[1], [0], [0], [1], [0, 0, 1, 1], [], []>} : vector<8x8xbf16>, vector<8x128xbf16>, vector<8x128xf32> -> vector<8x128xf32>
    %372 = arith.addf %369, %371 : vector<8x128xf32>
    %373 = vector.extract_strided_slice %61 {offsets = [0, 20], sizes = [8, 128], strides = [1, 1]} : vector<8x256xbf16> to vector<8x128xbf16>
    %cst_184 = arith.constant dense<0.000000e+00> : vector<8x128xf32>
    %374 = tpu.matmul %13, %373, %cst_184 {dimension_numbers = #tpu.dot_dimension_numbers<[1], [0], [0], [1], [0, 0, 1, 1], [], []>} : vector<8x8xbf16>, vector<8x128xbf16>, vector<8x128xf32> -> vector<8x128xf32>
    %375 = arith.addf %372, %374 : vector<8x128xf32>
    %376 = vector.extract_strided_slice %61 {offsets = [0, 21], sizes = [8, 128], strides = [1, 1]} : vector<8x256xbf16> to vector<8x128xbf16>
    %cst_185 = arith.constant dense<0.000000e+00> : vector<8x128xf32>
    %377 = tpu.matmul %15, %376, %cst_185 {dimension_numbers = #tpu.dot_dimension_numbers<[1], [0], [0], [1], [0, 0, 1, 1], [], []>} : vector<8x8xbf16>, vector<8x128xbf16>, vector<8x128xf32> -> vector<8x128xf32>
    %378 = arith.addf %375, %377 : vector<8x128xf32>
    %379 = vector.extract_strided_slice %61 {offsets = [0, 22], sizes = [8, 128], strides = [1, 1]} : vector<8x256xbf16> to vector<8x128xbf16>
    %cst_186 = arith.constant dense<0.000000e+00> : vector<8x128xf32>
    %380 = tpu.matmul %17, %379, %cst_186 {dimension_numbers = #tpu.dot_dimension_numbers<[1], [0], [0], [1], [0, 0, 1, 1], [], []>} : vector<8x8xbf16>, vector<8x128xbf16>, vector<8x128xf32> -> vector<8x128xf32>
    %381 = arith.addf %378, %380 : vector<8x128xf32>
    %382 = vector.extract_strided_slice %63 {offsets = [0, 0], sizes = [8, 128], strides = [1, 1]} : vector<8x256xbf16> to vector<8x128xbf16>
    %cst_187 = arith.constant dense<0.000000e+00> : vector<8x128xf32>
    %383 = tpu.matmul %19, %382, %cst_187 {dimension_numbers = #tpu.dot_dimension_numbers<[1], [0], [0], [1], [0, 0, 1, 1], [], []>} : vector<8x8xbf16>, vector<8x128xbf16>, vector<8x128xf32> -> vector<8x128xf32>
    %384 = arith.addf %381, %383 : vector<8x128xf32>
    %385 = vector.extract_strided_slice %63 {offsets = [0, 1], sizes = [8, 128], strides = [1, 1]} : vector<8x256xbf16> to vector<8x128xbf16>
    %cst_188 = arith.constant dense<0.000000e+00> : vector<8x128xf32>
    %386 = tpu.matmul %21, %385, %cst_188 {dimension_numbers = #tpu.dot_dimension_numbers<[1], [0], [0], [1], [0, 0, 1, 1], [], []>} : vector<8x8xbf16>, vector<8x128xbf16>, vector<8x128xf32> -> vector<8x128xf32>
    %387 = arith.addf %384, %386 : vector<8x128xf32>
    %388 = vector.extract_strided_slice %63 {offsets = [0, 2], sizes = [8, 128], strides = [1, 1]} : vector<8x256xbf16> to vector<8x128xbf16>
    %cst_189 = arith.constant dense<0.000000e+00> : vector<8x128xf32>
    %389 = tpu.matmul %23, %388, %cst_189 {dimension_numbers = #tpu.dot_dimension_numbers<[1], [0], [0], [1], [0, 0, 1, 1], [], []>} : vector<8x8xbf16>, vector<8x128xbf16>, vector<8x128xf32> -> vector<8x128xf32>
    %390 = arith.addf %387, %389 : vector<8x128xf32>
    %391 = vector.extract_strided_slice %63 {offsets = [0, 10], sizes = [8, 128], strides = [1, 1]} : vector<8x256xbf16> to vector<8x128xbf16>
    %cst_190 = arith.constant dense<0.000000e+00> : vector<8x128xf32>
    %392 = tpu.matmul %25, %391, %cst_190 {dimension_numbers = #tpu.dot_dimension_numbers<[1], [0], [0], [1], [0, 0, 1, 1], [], []>} : vector<8x8xbf16>, vector<8x128xbf16>, vector<8x128xf32> -> vector<8x128xf32>
    %393 = arith.addf %390, %392 : vector<8x128xf32>
    %394 = vector.extract_strided_slice %63 {offsets = [0, 11], sizes = [8, 128], strides = [1, 1]} : vector<8x256xbf16> to vector<8x128xbf16>
    %cst_191 = arith.constant dense<0.000000e+00> : vector<8x128xf32>
    %395 = tpu.matmul %27, %394, %cst_191 {dimension_numbers = #tpu.dot_dimension_numbers<[1], [0], [0], [1], [0, 0, 1, 1], [], []>} : vector<8x8xbf16>, vector<8x128xbf16>, vector<8x128xf32> -> vector<8x128xf32>
    %396 = arith.addf %393, %395 : vector<8x128xf32>
    %397 = vector.extract_strided_slice %63 {offsets = [0, 12], sizes = [8, 128], strides = [1, 1]} : vector<8x256xbf16> to vector<8x128xbf16>
    %cst_192 = arith.constant dense<0.000000e+00> : vector<8x128xf32>
    %398 = tpu.matmul %29, %397, %cst_192 {dimension_numbers = #tpu.dot_dimension_numbers<[1], [0], [0], [1], [0, 0, 1, 1], [], []>} : vector<8x8xbf16>, vector<8x128xbf16>, vector<8x128xf32> -> vector<8x128xf32>
    %399 = arith.addf %396, %398 : vector<8x128xf32>
    %400 = vector.extract_strided_slice %63 {offsets = [0, 20], sizes = [8, 128], strides = [1, 1]} : vector<8x256xbf16> to vector<8x128xbf16>
    %cst_193 = arith.constant dense<0.000000e+00> : vector<8x128xf32>
    %401 = tpu.matmul %31, %400, %cst_193 {dimension_numbers = #tpu.dot_dimension_numbers<[1], [0], [0], [1], [0, 0, 1, 1], [], []>} : vector<8x8xbf16>, vector<8x128xbf16>, vector<8x128xf32> -> vector<8x128xf32>
    %402 = arith.addf %399, %401 : vector<8x128xf32>
    %403 = vector.extract_strided_slice %63 {offsets = [0, 21], sizes = [8, 128], strides = [1, 1]} : vector<8x256xbf16> to vector<8x128xbf16>
    %cst_194 = arith.constant dense<0.000000e+00> : vector<8x128xf32>
    %404 = tpu.matmul %33, %403, %cst_194 {dimension_numbers = #tpu.dot_dimension_numbers<[1], [0], [0], [1], [0, 0, 1, 1], [], []>} : vector<8x8xbf16>, vector<8x128xbf16>, vector<8x128xf32> -> vector<8x128xf32>
    %405 = arith.addf %402, %404 : vector<8x128xf32>
    %406 = vector.extract_strided_slice %63 {offsets = [0, 22], sizes = [8, 128], strides = [1, 1]} : vector<8x256xbf16> to vector<8x128xbf16>
    %cst_195 = arith.constant dense<0.000000e+00> : vector<8x128xf32>
    %407 = tpu.matmul %35, %406, %cst_195 {dimension_numbers = #tpu.dot_dimension_numbers<[1], [0], [0], [1], [0, 0, 1, 1], [], []>} : vector<8x8xbf16>, vector<8x128xbf16>, vector<8x128xf32> -> vector<8x128xf32>
    %408 = arith.addf %405, %407 : vector<8x128xf32>
    %409 = vector.extract_strided_slice %65 {offsets = [0, 0], sizes = [8, 128], strides = [1, 1]} : vector<8x256xbf16> to vector<8x128xbf16>
    %cst_196 = arith.constant dense<0.000000e+00> : vector<8x128xf32>
    %410 = tpu.matmul %37, %409, %cst_196 {dimension_numbers = #tpu.dot_dimension_numbers<[1], [0], [0], [1], [0, 0, 1, 1], [], []>} : vector<8x8xbf16>, vector<8x128xbf16>, vector<8x128xf32> -> vector<8x128xf32>
    %411 = arith.addf %408, %410 : vector<8x128xf32>
    %412 = vector.extract_strided_slice %65 {offsets = [0, 1], sizes = [8, 128], strides = [1, 1]} : vector<8x256xbf16> to vector<8x128xbf16>
    %cst_197 = arith.constant dense<0.000000e+00> : vector<8x128xf32>
    %413 = tpu.matmul %39, %412, %cst_197 {dimension_numbers = #tpu.dot_dimension_numbers<[1], [0], [0], [1], [0, 0, 1, 1], [], []>} : vector<8x8xbf16>, vector<8x128xbf16>, vector<8x128xf32> -> vector<8x128xf32>
    %414 = arith.addf %411, %413 : vector<8x128xf32>
    %415 = vector.extract_strided_slice %65 {offsets = [0, 2], sizes = [8, 128], strides = [1, 1]} : vector<8x256xbf16> to vector<8x128xbf16>
    %cst_198 = arith.constant dense<0.000000e+00> : vector<8x128xf32>
    %416 = tpu.matmul %41, %415, %cst_198 {dimension_numbers = #tpu.dot_dimension_numbers<[1], [0], [0], [1], [0, 0, 1, 1], [], []>} : vector<8x8xbf16>, vector<8x128xbf16>, vector<8x128xf32> -> vector<8x128xf32>
    %417 = arith.addf %414, %416 : vector<8x128xf32>
    %418 = vector.extract_strided_slice %65 {offsets = [0, 10], sizes = [8, 128], strides = [1, 1]} : vector<8x256xbf16> to vector<8x128xbf16>
    %cst_199 = arith.constant dense<0.000000e+00> : vector<8x128xf32>
    %419 = tpu.matmul %43, %418, %cst_199 {dimension_numbers = #tpu.dot_dimension_numbers<[1], [0], [0], [1], [0, 0, 1, 1], [], []>} : vector<8x8xbf16>, vector<8x128xbf16>, vector<8x128xf32> -> vector<8x128xf32>
    %420 = arith.addf %417, %419 : vector<8x128xf32>
    %421 = vector.extract_strided_slice %65 {offsets = [0, 11], sizes = [8, 128], strides = [1, 1]} : vector<8x256xbf16> to vector<8x128xbf16>
    %cst_200 = arith.constant dense<0.000000e+00> : vector<8x128xf32>
    %422 = tpu.matmul %45, %421, %cst_200 {dimension_numbers = #tpu.dot_dimension_numbers<[1], [0], [0], [1], [0, 0, 1, 1], [], []>} : vector<8x8xbf16>, vector<8x128xbf16>, vector<8x128xf32> -> vector<8x128xf32>
    %423 = arith.addf %420, %422 : vector<8x128xf32>
    %424 = vector.extract_strided_slice %65 {offsets = [0, 12], sizes = [8, 128], strides = [1, 1]} : vector<8x256xbf16> to vector<8x128xbf16>
    %cst_201 = arith.constant dense<0.000000e+00> : vector<8x128xf32>
    %425 = tpu.matmul %47, %424, %cst_201 {dimension_numbers = #tpu.dot_dimension_numbers<[1], [0], [0], [1], [0, 0, 1, 1], [], []>} : vector<8x8xbf16>, vector<8x128xbf16>, vector<8x128xf32> -> vector<8x128xf32>
    %426 = arith.addf %423, %425 : vector<8x128xf32>
    %427 = vector.extract_strided_slice %65 {offsets = [0, 20], sizes = [8, 128], strides = [1, 1]} : vector<8x256xbf16> to vector<8x128xbf16>
    %cst_202 = arith.constant dense<0.000000e+00> : vector<8x128xf32>
    %428 = tpu.matmul %49, %427, %cst_202 {dimension_numbers = #tpu.dot_dimension_numbers<[1], [0], [0], [1], [0, 0, 1, 1], [], []>} : vector<8x8xbf16>, vector<8x128xbf16>, vector<8x128xf32> -> vector<8x128xf32>
    %429 = arith.addf %426, %428 : vector<8x128xf32>
    %430 = vector.extract_strided_slice %65 {offsets = [0, 21], sizes = [8, 128], strides = [1, 1]} : vector<8x256xbf16> to vector<8x128xbf16>
    %cst_203 = arith.constant dense<0.000000e+00> : vector<8x128xf32>
    %431 = tpu.matmul %51, %430, %cst_203 {dimension_numbers = #tpu.dot_dimension_numbers<[1], [0], [0], [1], [0, 0, 1, 1], [], []>} : vector<8x8xbf16>, vector<8x128xbf16>, vector<8x128xf32> -> vector<8x128xf32>
    %432 = arith.addf %429, %431 : vector<8x128xf32>
    %433 = vector.extract_strided_slice %65 {offsets = [0, 22], sizes = [8, 128], strides = [1, 1]} : vector<8x256xbf16> to vector<8x128xbf16>
    %cst_204 = arith.constant dense<0.000000e+00> : vector<8x128xf32>
    %434 = tpu.matmul %53, %433, %cst_204 {dimension_numbers = #tpu.dot_dimension_numbers<[1], [0], [0], [1], [0, 0, 1, 1], [], []>} : vector<8x8xbf16>, vector<8x128xbf16>, vector<8x128xf32> -> vector<8x128xf32>
    %435 = arith.addf %432, %434 : vector<8x128xf32>
    %436 = arith.truncf %435 : vector<8x128xf32> to vector<8x128xbf16>
    %c0_205 = arith.constant 0 : index
    %c3_206 = arith.constant 3 : index
    %c0_207 = arith.constant 0 : index
    %c0_208 = arith.constant 0 : index
    %437 = vector.load %arg10[%c0_205, %c3_206, %c0_207, %c0_208] : memref<1x4x8x128xbf16, #tpu.memory_space<vmem>>, vector<1x1x8x128xbf16>
    %438 = vector.shape_cast %437 : vector<1x1x8x128xbf16> to vector<8x128xbf16>
    %439 = vector.shape_cast %436 : vector<8x128xbf16> to vector<1x1x8x128xbf16>
    tpu.vector_store %arg10[%c0_205, %c3_206, %c0_207, %c0_208], %439 {strides = array<i32>} : memref<1x4x8x128xbf16, #tpu.memory_space<vmem>>, vector<1x1x8x128xbf16>,
    %440 = vector.broadcast %66 : vector<1x128xf32> to vector<8x128xf32>
    %441 = arith.mulf %435, %440 : vector<8x128xf32>
    %cst_209 = arith.constant dense<0.000000e+00> : vector<8xf32>
    %442 = vector.multi_reduction <add>, %441, %cst_209 [1] : vector<8x128xf32> to vector<8xf32>
    %443 = vector.shape_cast %442 : vector<8xf32> to vector<8x1xf32>
    %444 = arith.addf %349, %443 : vector<8x1xf32>
    %445 = arith.mulf %441, %435 : vector<8x128xf32>
    %cst_210 = arith.constant dense<0.000000e+00> : vector<8xf32>
    %446 = vector.multi_reduction <add>, %445, %cst_210 [1] : vector<8x128xf32> to vector<8xf32>
    %447 = vector.shape_cast %446 : vector<8xf32> to vector<8x1xf32>
    %448 = arith.addf %353, %447 : vector<8x1xf32>
    %c0_i32 = arith.constant 0 : i32
    %449 = arith.cmpi eq, %arg1, %c0_i32 : i32
    %450 = arith.extui %449 : i1 to i32
    %c0_i32_211 = arith.constant 0 : i32
    %451 = arith.cmpi ne, %450, %c0_i32_211 : i32
    scf.if %451 {
      %cst_224 = arith.constant 0.000000e+00 : f32
      %464 = vector.broadcast %cst_224 : f32 to vector<8x1xf32>
      %c0_225 = arith.constant 0 : index
      %c0_226 = arith.constant 0 : index
      %c0_227 = arith.constant 0 : index
      %465 = vector.load %arg11[%c0_225, %c0_226, %c0_227] : memref<1x8x1xf32, #tpu.memory_space<vmem>>, vector<1x8x1xf32>
      %466 = vector.shape_cast %465 : vector<1x8x1xf32> to vector<8x1xf32>
      %467 = vector.shape_cast %464 : vector<8x1xf32> to vector<1x8x1xf32>
      tpu.vector_store %arg11[%c0_225, %c0_226, %c0_227], %467 {strides = array<i32>} : memref<1x8x1xf32, #tpu.memory_space<vmem>>, vector<1x8x1xf32>,
      %cst_228 = arith.constant 0.000000e+00 : f32
      %468 = vector.broadcast %cst_228 : f32 to vector<8x1xf32>
      %c0_229 = arith.constant 0 : index
      %c0_230 = arith.constant 0 : index
      %c0_231 = arith.constant 0 : index
      %469 = vector.load %arg12[%c0_229, %c0_230, %c0_231] : memref<1x8x1xf32, #tpu.memory_space<vmem>>, vector<1x8x1xf32>
      %470 = vector.shape_cast %469 : vector<1x8x1xf32> to vector<8x1xf32>
      %471 = vector.shape_cast %468 : vector<8x1xf32> to vector<1x8x1xf32>
      tpu.vector_store %arg12[%c0_229, %c0_230, %c0_231], %471 {strides = array<i32>} : memref<1x8x1xf32, #tpu.memory_space<vmem>>, vector<1x8x1xf32>,
    } else {
    }
    %c0_212 = arith.constant 0 : index
    %c0_213 = arith.constant 0 : index
    %c0_214 = arith.constant 0 : index
    %452 = vector.load %arg11[%c0_212, %c0_213, %c0_214] : memref<1x8x1xf32, #tpu.memory_space<vmem>>, vector<1x8x1xf32>
    %453 = vector.shape_cast %452 : vector<1x8x1xf32> to vector<8x1xf32>
    %454 = arith.addf %453, %444 : vector<8x1xf32>
    %c0_215 = arith.constant 0 : index
    %c0_216 = arith.constant 0 : index
    %c0_217 = arith.constant 0 : index
    %455 = vector.load %arg11[%c0_215, %c0_216, %c0_217] : memref<1x8x1xf32, #tpu.memory_space<vmem>>, vector<1x8x1xf32>
    %456 = vector.shape_cast %455 : vector<1x8x1xf32> to vector<8x1xf32>
    %457 = vector.shape_cast %454 : vector<8x1xf32> to vector<1x8x1xf32>
    tpu.vector_store %arg11[%c0_215, %c0_216, %c0_217], %457 {strides = array<i32>} : memref<1x8x1xf32, #tpu.memory_space<vmem>>, vector<1x8x1xf32>,
    %c0_218 = arith.constant 0 : index
    %c0_219 = arith.constant 0 : index
    %c0_220 = arith.constant 0 : index
    %458 = vector.load %arg12[%c0_218, %c0_219, %c0_220] : memref<1x8x1xf32, #tpu.memory_space<vmem>>, vector<1x8x1xf32>
    %459 = vector.shape_cast %458 : vector<1x8x1xf32> to vector<8x1xf32>
    %460 = arith.addf %459, %448 : vector<8x1xf32>
    %c0_221 = arith.constant 0 : index
    %c0_222 = arith.constant 0 : index
    %c0_223 = arith.constant 0 : index
    %461 = vector.load %arg12[%c0_221, %c0_222, %c0_223] : memref<1x8x1xf32, #tpu.memory_space<vmem>>, vector<1x8x1xf32>
    %462 = vector.shape_cast %461 : vector<1x8x1xf32> to vector<8x1xf32>
    %463 = vector.shape_cast %460 : vector<8x1xf32> to vector<1x8x1xf32>
    tpu.vector_store %arg12[%c0_221, %c0_222, %c0_223], %463 {strides = array<i32>} : memref<1x8x1xf32, #tpu.memory_space<vmem>>, vector<1x8x1xf32>,
    return
  }
  func.func @transform_0(%arg0: i32, %arg1: i32) -> (i32, i32, i32) {
    %c4_i32 = arith.constant 4 : i32
    %0 = arith.muli %arg1, %c4_i32 : i32
    %c0_i32 = arith.constant 0 : i32
    %1 = arith.addi %0, %c0_i32 : i32
    %c0_i32_0 = arith.constant 0 : i32
    %c0_i32_1 = arith.constant 0 : i32
    return %arg0, %c0_i32_0, %1 : i32, i32, i32
  }
  func.func @transform_1(%arg0: i32, %arg1: i32) -> (i32, i32, i32) {
    %c4_i32 = arith.constant 4 : i32
    %0 = arith.muli %arg1, %c4_i32 : i32
    %c1_i32 = arith.constant 1 : i32
    %1 = arith.addi %0, %c1_i32 : i32
    %c0_i32 = arith.constant 0 : i32
    %c0_i32_0 = arith.constant 0 : i32
    return %arg0, %c0_i32, %1 : i32, i32, i32
  }
  func.func @transform_2(%arg0: i32, %arg1: i32) -> (i32, i32, i32) {
    %c4_i32 = arith.constant 4 : i32
    %0 = arith.muli %arg1, %c4_i32 : i32
    %c2_i32 = arith.constant 2 : i32
    %1 = arith.addi %0, %c2_i32 : i32
    %c0_i32 = arith.constant 0 : i32
    %c0_i32_0 = arith.constant 0 : i32
    return %arg0, %c0_i32, %1 : i32, i32, i32
  }
  func.func @transform_3(%arg0: i32, %arg1: i32) -> (i32, i32, i32) {
    %c4_i32 = arith.constant 4 : i32
    %0 = arith.muli %arg1, %c4_i32 : i32
    %c3_i32 = arith.constant 3 : i32
    %1 = arith.addi %0, %c3_i32 : i32
    %c0_i32 = arith.constant 0 : i32
    %c0_i32_0 = arith.constant 0 : i32
    return %arg0, %c0_i32, %1 : i32, i32, i32
  }
  func.func @transform_4(%arg0: i32, %arg1: i32) -> (i32, i32, i32) {
    %c4_i32 = arith.constant 4 : i32
    %0 = arith.muli %arg1, %c4_i32 : i32
    %c4_i32_0 = arith.constant 4 : i32
    %1 = arith.addi %0, %c4_i32_0 : i32
    %c0_i32 = arith.constant 0 : i32
    %c0_i32_1 = arith.constant 0 : i32
    return %arg0, %c0_i32, %1 : i32, i32, i32
  }
  func.func @transform_5(%arg0: i32, %arg1: i32) -> (i32, i32, i32) {
    %c4_i32 = arith.constant 4 : i32
    %0 = arith.muli %arg1, %c4_i32 : i32
    %c5_i32 = arith.constant 5 : i32
    %1 = arith.addi %0, %c5_i32 : i32
    %c0_i32 = arith.constant 0 : i32
    %c0_i32_0 = arith.constant 0 : i32
    return %arg0, %c0_i32, %1 : i32, i32, i32
  }
  func.func @transform_6(%arg0: i32, %arg1: i32) -> (i32, i32, i32) {
    %c0_i32 = arith.constant 0 : i32
    %c0_i32_0 = arith.constant 0 : i32
    %c0_i32_1 = arith.constant 0 : i32
    %c0_i32_2 = arith.constant 0 : i32
    return %c0_i32, %c0_i32_0, %c0_i32_1 : i32, i32, i32
  }
  func.func @transform_7(%arg0: i32, %arg1: i32) -> (i32, i32) {
    %c0_i32 = arith.constant 0 : i32
    %c0_i32_0 = arith.constant 0 : i32
    %c0_i32_1 = arith.constant 0 : i32
    return %c0_i32, %c0_i32_0 : i32, i32
  }
  func.func @transform_8(%arg0: i32, %arg1: i32) -> (i32, i32, i32, i32) {
    %c0_i32 = arith.constant 0 : i32
    %c0_i32_0 = arith.constant 0 : i32
    %c0_i32_1 = arith.constant 0 : i32
    return %arg0, %arg1, %c0_i32, %c0_i32_0 : i32, i32, i32, i32
  }
  func.func @transform_9(%arg0: i32, %arg1: i32) -> (i32, i32, i32) {
    %c0_i32 = arith.constant 0 : i32
    %c0_i32_0 = arith.constant 0 : i32
    %c0_i32_1 = arith.constant 0 : i32
    return %arg0, %c0_i32, %c0_i32_0 : i32, i32, i32
  }
  func.func @transform_10(%arg0: i32, %arg1: i32) -> (i32, i32, i32) {
    %c0_i32 = arith.constant 0 : i32
    %c0_i32_0 = arith.constant 0 : i32
    %c0_i32_1 = arith.constant 0 : i32
    return %arg0, %c0_i32, %c0_i32_0 : i32, i32, i32
  }
}

</mosaic_0001>

<bundles_post_ra>
// kernel: conv3d_block_forward.3
= control target key start
LH: loop header
LB: loop body
LE: loop exit
PB: predicated region body
PF: predicated region fallthrough
CT: control target
= control target key end

     0   :  { %s466_s12 = smov 0   ;;  %s468_s13 = smov 0   ;;  %s523_s0 = inlined_call_operand.vmem [shape: bf16[2,8,8,128], index: 0, kind: input, shape index: {}]   ;;  %s524_s1 = inlined_call_operand.vmem [shape: f32[8,1], index: 1, kind: input, shape index: {}]   ;;  %s525_s2 = inlined_call_operand.vmem [shape: f32[8,1], index: 2, kind: input, shape index: {}]   ;;  %s526_s3 = inlined_call_operand.vmem [shape: f32[2,8,1024], index: 3, kind: output, shape index: {}]  }
   0x1   :  { %s470_s14 = smov 0   ;;  %s472_s15 = smov 0  }
   0x2   :  { %s474_s16 = smov 0  }
   0x3 LB: > { %s22_s17 = sadd.s32 1, %s435_s14  ;;  %s25_s18 = sadd.s32 1, %s439_s15  ;;  %s443_s16 = sphi %s474_s16, %s13_s16   ;;  %s439_s15 = sphi %s472_s15, %s530_s15   ;;  %s435_s14 = sphi %s470_s14, %s529_s14   ;;  %s431_s13 = sphi %s468_s13, %s528_s13   ;;  %s427_s12 = sphi %s466_s12, %s527_s12  }
   0x4   : > { %p23_p0 = scmp.ge.s32.totalorder %s22_s17, 2  ;;  %p351_p1 = scmp.ge.s32.totalorder %s443_s16, 1 }
   0x5   : > { %p158_p2 = scmp.lt.s32.totalorder %s443_s16, 5 }
   0x6   : > { %s532_s17 = smov (%p23_p0, %s22_s17), 0  ;;  %s534_s18 = smov (!%p23_p0, %s25_s18), %s439_s15 }
   0x7   : > { %p159_p3 = pnand %p351_p1, %p158_p2  ;;  %p27_p4 = scmp.ge.s32.totalorder %s534_s18, 2 }
   0x8   : > { %s352_s23 = sshll.u32 (!%p159_p3), %s427_s12, 2  ;;  %p191_p5 = scmp.lt.s32.totalorder (!%p159_p3), %s431_s13, 1 }
   0x9   : > { %s536_s18 = smov (%p27_p4, %s534_s18), 0  ;;  %162 = sbr.rel (%p159_p3) target bundleno = 148 (0x94), region = 32 }
   0xa   : > { %p193_p6 = scmp.lt.s32.totalorder (!%p159_p3), %s352_s23, 7 }
   0xe   : > { %v210_v0 = vld [vmem:[%s524_s1] sm:$0xff]  ;;  %v445_v1 = vmov 0   ;;  %s538_s13 = smov (!%p191_p5, %s431_s13), 1  ;;  %s540_s23 = smov (!%p193_p6, %s352_s23), 7 }
   0xf   : > { %404 = vset.pattern.permute.xlu0 %v445_v1  ;;  %v211_v2 = vld [vmem:[%s525_s2] sm:$0xff]  ;;  %s353_s24 = sshll.u32 %s538_s13, 3 }
  0x10   : > { %216 = vperm.xlu0 %404, %v210_v0   ;;  %s196_s25 = sadd.s32 %s353_s24, %s540_s23 }
  0x11   : > { %s354_s26 = sshll.u32 %s196_s25, 2  ;;  %s357_s30 = sshll.u32 %s196_s25, 3 }
  0x12   : > { %s198_s29 = scalar_lea.vmem %s523_s0, %s354_s26  ;;  %s208_s6 = scalar_lea.vmem %s526_s3, %s357_s30 }
  0x13   : > { %v212_v4 = vld [vmem:[%s198_s29] sm:$0xff]   ;;  %v359_v5 = vld [vmem:[%s198_s29 + $0x8] sm:$0xff]  }
  0x14   : > { %v213_v6 = vunpack.c.l.bf16 %v212_v4  ;;  %v232_v7 = vunpack.c.h.bf16 %v212_v4  ;;  %v241_v8 = vunpack.c.l.bf16 %v359_v5  ;;  %v250_v9 = vunpack.c.h.bf16 %v359_v5 }
  0x18   : > { %222 = vperm.xlu0 %404, %v211_v2  }
  0x82   : > { %v217_v3 = vpop.permute.xlu0 %216 }
  0x83   : > { %v219_v10 = vmul.f32 %v217_v3, %v213_v6  ;;  %v233_v11 = vmul.f32 %v232_v7, %v217_v3  ;;  %v242_v12 = vmul.f32 %v241_v8, %v217_v3  ;;  %v251_v13 = vmul.f32 %v250_v9, %v217_v3 }
  0x8a   : > { %v223_v14 = vpop.permute.xlu0 %222 }
  0x8b   : > { %v225_v15 = vadd.f32 %v223_v14, %v219_v10  ;;  %v234_v16 = vadd.f32 %v233_v11, %v223_v14  ;;  %v243_v17 = vadd.f32 %v242_v12, %v223_v14  ;;  %v252_v18 = vadd.f32 %v251_v13, %v223_v14 }
  0x8d   : > { %vm226_vm0 = vcmp.ge.f32.partialorder %v225_v15, 0.0  ;;  %v227_v19 = vmul.f32 0.1, %v225_v15  ;;  %vm235_vm1 = vcmp.ge.f32.partialorder %v234_v16, 0.0  ;;  %v236_v20 = vmul.f32 0.1, %v234_v16 }
  0x8e   : > { %vm244_vm2 = vcmp.ge.f32.partialorder %v243_v17, 0.0  ;;  %v245_v21 = vmul.f32 0.1, %v243_v17  ;;  %vm253_vm3 = vcmp.ge.f32.partialorder %v252_v18, 0.0  ;;  %v254_v22 = vmul.f32 0.1, %v252_v18 }
  0x8f   : > { %v228_v23 = vsel %vm226_vm0, %v225_v15, %v227_v19  ;;  %v237_v24 = vsel %vm235_vm1, %v234_v16, %v236_v20 }
  0x90   : > { %229 = vst [vmem:[%s208_s6] sm:$0xff] %v228_v23  ;;  %v246_v25 = vsel %vm244_vm2, %v243_v17, %v245_v21  ;;  %v255_v26 = vsel %vm253_vm3, %v252_v18, %v254_v22 }
  0x91   : > { %238 = vst [vmem:[%s208_s6 + $0x8] sm:$0xff] %v237_v24 }
  0x92   : > { %247 = vst [vmem:[%s208_s6 + $0x10] sm:$0xff] %v246_v25 }
  0x93   : > { %256 = vst [vmem:[%s208_s6 + $0x18] sm:$0xff] %v255_v26 }
  0x94 PF: > { %s13_s16 = sadd.s32 1, %s443_s16   ;;  %s527_s12 = smov %s435_s14 }
  0x95   : > { %p10_p7 = scmp.ge.s32.totalorder %s13_s16, 6   ;;  %s528_s13 = smov %s439_s15 }
  0x96   : > { %s529_s14 = smov %s532_s17  ;;  %s530_s15 = smov %s536_s18 }
  0x97   :  { %12 = sbr.rel (!%p10_p7) target bundleno = 3 (0x3), region = 65 }

// kernel: conv3d_block_forward.2
= control target key start
LH: loop header
LB: loop body
LE: loop exit
PB: predicated region body
PF: predicated region fallthrough
CT: control target
= control target key end

     0   :  { %s3445_s13 = smov 0   ;;  %s3447_s14 = smov 0   ;;  %s4442_s0 = inlined_call_operand.vmem [shape: bf16[2,8,2560], index: 0, kind: input, shape index: {}, may-alias: {0,1,2,3,4,5}]   ;;  %s4443_s1 = inlined_call_operand.vmem [shape: bf16[2,8,2560], index: 1, kind: input, shape index: {}, may-alias: {0,1,2,3,4,5}]   ;;  %s4444_s2 = inlined_call_operand.vmem [shape: bf16[2,8,2560], index: 2, kind: input, shape index: {}, may-alias: {0,1,2,3,4,5}]   ;;  %s4445_s3 = inlined_call_operand.vmem [shape: bf16[2,8,2560], index: 3, kind: input, shape index: {}, may-alias: {0,1,2,3,4,5}]   ;;  %s4446_s4 = inlined_call_operand.vmem [shape: bf16[2,8,2560], index: 4, kind: input, shape index: {}, may-alias: {0,1,2,3,4,5}]   ;;  %s4447_s5 = inlined_call_operand.vmem [shape: bf16[2,8,2560], index: 5, kind: input, shape index: {}, may-alias: {0,1,2,3,4,5}]   ;;  %s4448_s6 = inlined_call_operand.vmem [shape: bf16[27,8,8], index: 6, kind: input, shape index: {}]   ;;  %s4449_s7 = inlined_call_operand.vmem [shape: f32[1,128], index: 7, kind: input, shape index: {}]   ;;  %s4450_s8 = inlined_call_operand.vmem [shape: bf16[2,8,8,128], index: 8, kind: output, shape index: {0}]   ;;  %s4451_s9 = inlined_call_operand.vmem [shape: f32[2,8,1], index: 9, kind: output, shape index: {1}]   ;;  %s4452_s10 = inlined_call_operand.vmem [shape: f32[2,8,1], index: 10, kind: output, shape index: {2}]  }
   0x1   :  { %4472 = sst [smem:[#allocation5_spill]] %s4442_s0  ;;  %s3449_s15 = smov 0  }
   0x2   :  { %4473 = sst [smem:[#allocation6_spill]] %s4443_s1  ;;  %s3451_s16 = smov 0  }
   0x3   :  { %4474 = sst [smem:[#allocation7_spill]] %s4444_s2  ;;  %s3453_s17 = smov 0  }
   0x4   :  { %4475 = sst [smem:[#allocation8_spill]] %s4445_s3 }
   0x5   :  { %4476 = sst [smem:[#allocation9_spill]] %s4446_s4 }
   0x6 LB: > { %s30_s18 = sadd.s32 1, %s3371_s15  ;;  %s33_s19 = sadd.s32 1, %s3375_s16  ;;  %s3379_s17 = sphi %s3453_s17, %s21_s17   ;;  %s3375_s16 = sphi %s3451_s16, %s4499_s16   ;;  %s3371_s15 = sphi %s3449_s15, %s4498_s15   ;;  %s3367_s14 = sphi %s3447_s14, %s4497_s14   ;;  %s3363_s13 = sphi %s3445_s13, %s4496_s13  }
   0x7   : > { %p31_p0 = scmp.ge.s32.totalorder %s30_s18, 2  ;;  %p3083_p1 = scmp.ge.s32.totalorder %s3379_s17, 1 }
   0x8   : > { %p467_p2 = scmp.lt.s32.totalorder %s3379_s17, 5 }
   0x9   : > { %s4501_s18 = smov (%p31_p0, %s30_s18), 0  ;;  %s4503_s19 = smov (!%p31_p0, %s33_s19), %s3375_s16 }
   0xa   : > { %p468_p3 = pnand %p3083_p1, %p467_p2  ;;  %p35_p4 = scmp.ge.s32.totalorder %s4503_s19, 2 }
   0xc   : > { %s4505_s19 = smov (%p35_p4, %s4503_s19), 0  ;;  %471 = sbr.rel (%p468_p3) target bundleno = 859 (0x35b), region = 52 }
  0x11   : > { %s3478_s20 = sshll.u32 %s3363_s13, 3  ;;  %p579_p5 = scmp.lt.s32.totalorder %s3367_s14, 1  ;;  %vm819_vm0 = vcmask 965632   ;;  %vm753_vm1 = vcmask 1043456   ;;  %v3559_v20 = vld [vmem:[%s4448_s6 + $0xc] sm:$0xf] }
  0x12   : > { %p581_p6 = scmp.lt.s32.totalorder %s3478_s20, 19  ;;  %s4477_s0 = sld [smem:[#allocation5_spill]]  ;;  %v3564_v21 = vld [vmem:[%s4448_s6] sm:$0xf]  ;;  %vm749_vm2 = vcmask 64512   ;;  %vm747_vm3 = vcmask 1039360  }
  0x13   : > { %s4507_s14 = smov (!%p579_p5, %s3367_s14), 1  ;;  %s4453_s28 = smov 127   ;;  %vm793_vm4 = vcmask 1031168   ;;  %v3589_v33 = vld [vmem:[%s4448_s6 + $0x4] sm:$0xf]  ;;  %vm897_vm5 = vcmask 883712  }
  0x14   : > { %s582_s21 = scalar_select %p581_p6, %s3478_s20, 19  ;;  %v3594_v34 = vld [vmem:[%s4448_s6 + $0x8] sm:$0xf]  ;;  %vm845_vm6 = vcmask 957440   ;;  %vm923_vm7 = vcmask 875520   ;;  %vm871_vm8 = vcmask 949248  }
  0x15   : > { %s3485_s22 = smul.u32 20, %s4507_s14  ;;  %s4457_s29 = smov 126   ;;  %v3613_v46 = vld [vmem:[%s4448_s6 + $0x10] sm:$0xf]  ;;  %v3618_v47 = vld [vmem:[%s4448_s6 + $0x18] sm:$0xf] }
  0x16   : > { %s4465_s30 = smov 118   ;;  %s3249_s11 = sadd.s32 2, %s3478_s20  ;;  %v3625_v50 = vld [vmem:[%s4448_s6 + $0x1c] sm:$0xf]  ;;  %v3649_v58 = vld [vmem:[%s4448_s6 + $0x14] sm:$0xf] }
  0x17   : > { %s584_s23 = sadd.s32 %s3485_s22, %s582_s21  ;;  %p594_p7 = scmp.lt.s32.totalorder %s3249_s11, 19  ;;  %vm949_vm9 = vcmask 867328  }
  0x18   : > { %s3086_s24 = sshll.u32 %s584_s23, 2  ;;  %s4455_s12 = smov 108  }
  0x19   : > { %s586_s27 = scalar_lea.vmem %s4477_s0, %s3086_s24  ;;  %s4509_s11 = smov (!%p594_p7, %s3249_s11), 19 }
  0x1a   : > { %v3491_v0 = vld [vmem:[%s586_s27] sm:$0xff]  ;;  %s4463_s21 = smov 117   ;;  %s597_s23 = sadd.s32 %s3485_s22, %s4509_s11 }
  0x1b   : > { %v739_v1 = vunpack.c.l.b16 %v3491_v0  ;;  %v740_v3 = vunpack.c.h.b16 %v3491_v0  ;;  %s3089_s24 = sshll.u32 %s597_s23, 2  ;;  %s4478_s1 = sld [smem:[#allocation6_spill]]  ;;  %v774_v18 = vsel %vm753_vm1, %v3491_v0, 0 }
  0x1c   : > { %s4479_s11 = smov 127   ;;  %s4459_s23 = smov 106   ;;  %783 = vmatpush.bf16.msra.mxu1 %v774_v18 }
  0x1d   : > { %v741_v2 = vpack.c.b16 %v739_v1, %v739_v1  ;;  %v742_v4 = vpack.c.b16 %v740_v3, %v740_v3  ;;  %s4481_s2 = sld [smem:[#allocation7_spill]]  ;;  %s4482_s0 = smov 107  }
  0x1e   : > { %s4485_s3 = sld [smem:[#allocation8_spill]]  ;;  %p3244_p13 = scmp.ne.s32.totalorder %s3363_s13, 0 }
  0x1f   : > { %743 = vrot.lane.b32.xlu1 %v741_v2, %s4453_s28  ;;  %789 = vrot.lane.b32.xlu0 %v741_v2, %s4457_s29  ;;  %s4491_s4 = sld [smem:[#allocation9_spill]] }
  0x20   : > { %815 = vrot.lane.b32.xlu2 %v741_v2, %s4465_s30  ;;  %3134 = vmatmul.msk.bf16.vlgmr.msra.gmra.mxu1 %vm749_vm2, %v3564_v21 }
  0x21   : > { %s599_s27 = scalar_lea.vmem %s4478_s1, %s3089_s24  ;;  %s3251_s24 = sadd.s32 4, %s3478_s20 }
  0x22   : > { %v3512_v5 = vld [vmem:[%s599_s27] sm:$0xff]  ;;  %p608_p8 = scmp.lt.s32.totalorder %s3251_s24, 19  ;;  %s4480_s27 = smov 108  }
  0x23   : > { %v992_v6 = vunpack.c.l.b16 %v3512_v5  ;;  %v993_v8 = vunpack.c.h.b16 %v3512_v5  ;;  %v3643_v56 = vsel %vm753_vm1, %v3512_v5, 0  ;;  %v3674_v5 = vld [vmem:[%s4448_s6 + $0x28] sm:$0xf] }
  0x24   : > { %s4511_s24 = smov (!%p608_p8, %s3251_s24), 19 }
  0x25   : > { %v994_v7 = vpack.c.b16 %v992_v6, %v992_v6  ;;  %v995_v9 = vpack.c.b16 %v993_v8, %v993_v8  ;;  %s611_s25 = sadd.s32 %s3485_s22, %s4511_s24 }
  0x26   : > { %s3092_s26 = sshll.u32 %s611_s25, 2  ;;  %s4487_s25 = smov 118  }
  0x27   : > { %745 = vrot.lane.b32.xlu1 %v742_v4, %s4453_s28  ;;  %791 = vrot.lane.b32.xlu0 %v742_v4, %s4457_s29  ;;  %s4461_s28 = smov 107  }
  0x28   : > { %817 = vrot.lane.b32.xlu2 %v742_v4, %s4465_s30 }
  0x2f   : > { %895 = vrot.lane.b32.xlu1 %v742_v4, %s4455_s12  ;;  %893 = vrot.lane.b32.xlu0 %v741_v2, %s4455_s12  ;;  %s4467_s12 = smov 116  }
  0x30   : > { %841 = vrot.lane.b32.xlu2 %v741_v2, %s4463_s21 }
  0x37   : > { %919 = vrot.lane.b32.xlu1 %v741_v2, %s4461_s28  ;;  %843 = vrot.lane.b32.xlu0 %v742_v4, %s4463_s21 }
  0x38   : > { %921 = vrot.lane.b32.xlu2 %v742_v4, %s4461_s28  ;;  %s613_s28 = scalar_lea.vmem %s4481_s2, %s3092_s26 }
  0x39   : > { %v3536_v10 = vld [vmem:[%s613_s28] sm:$0xff]  ;;  %s4484_s28 = smov 126  }
  0x3a   : > { %v1218_v11 = vunpack.c.h.b16 %v3536_v10  ;;  %v1217_v12 = vunpack.c.l.b16 %v3536_v10 }
  0x3c   : > { %v1220_v13 = vpack.c.b16 %v1218_v11, %v1218_v11  ;;  %v1219_v14 = vpack.c.b16 %v1217_v12, %v1217_v12  ;;  %v3694_v12 = vld [vmem:[%s4448_s6 + $0x2c] sm:$0xf] }
  0x3d   : > { %4488 = vst [vmem:[#allocation2_spill] sm:$0xff] %v3694_v12 }
  0x3f   : > { %869 = vrot.lane.b32.xlu1 %v742_v4, %s4467_s12  ;;  %867 = vrot.lane.b32.xlu0 %v741_v2, %s4467_s12 }
  0x40   : > { %996 = vrot.lane.b32.xlu2 %v994_v7, %s4479_s11 }
  0x47   : > { %945 = vrot.lane.b32.xlu1 %v741_v2, %s4459_s23  ;;  %998 = vrot.lane.b32.xlu0 %v995_v9, %s4479_s11 }
  0x48   : > { %947 = vrot.lane.b32.xlu2 %v742_v4, %s4459_s23  ;;  %s3253_s23 = sadd.s32 6, %s3478_s20  ;;  %v3669_v4 = vld [vmem:[%s4448_s6 + $0x20] sm:$0xf] }
  0x49   : > { %p622_p9 = scmp.lt.s32.totalorder %s3253_s23, 19 }
  0x4b   : > { %s4513_s23 = smov (!%p622_p9, %s3253_s23), 19 }
  0x4c   : > { %s625_s24 = sadd.s32 %s3485_s22, %s4513_s23  ;;  %s3257_s23 = sadd.s32 10, %s3478_s20 }
  0x4d   : > { %p650_p11 = scmp.lt.s32.totalorder %s3257_s23, 19 }
  0x4f   : > { %1023 = vrot.lane.b32.xlu1 %v995_v9, %s4457_s29  ;;  %1021 = vrot.lane.b32.xlu0 %v994_v7, %s4457_s29  ;;  %s4483_s29 = smov 106   ;;  %s4517_s23 = smov (!%p650_p11, %s3257_s23), 19 }
  0x50   : > { %1096 = vrot.lane.b32.xlu2 %v994_v7, %s4467_s12 }
  0x57   : > { %1046 = vrot.lane.b32.xlu1 %v994_v7, %s4465_s30  ;;  %1098 = vrot.lane.b32.xlu0 %v995_v9, %s4467_s12 }
  0x58   : > { %1048 = vrot.lane.b32.xlu2 %v995_v9, %s4465_s30 }
  0x5f   : > { %1123 = vrot.lane.b32.xlu1 %v995_v9, %s4480_s27  ;;  %1121 = vrot.lane.b32.xlu0 %v994_v7, %s4480_s27 }
  0x60   : > { %1071 = vrot.lane.b32.xlu2 %v994_v7, %s4463_s21 }
  0x67   : > { %1146 = vrot.lane.b32.xlu1 %v994_v7, %s4482_s0  ;;  %1073 = vrot.lane.b32.xlu0 %v995_v9, %s4463_s21 }
  0x68   : > { %1148 = vrot.lane.b32.xlu2 %v995_v9, %s4482_s0 }
  0x6f   : > { %1223 = vrot.lane.b32.xlu1 %v1220_v13, %s4479_s11  ;;  %1221 = vrot.lane.b32.xlu0 %v1219_v14, %s4479_s11 }
  0x70   : > { %1171 = vrot.lane.b32.xlu2 %v994_v7, %s4483_s29 }
  0x77   : > { %1296 = vrot.lane.b32.xlu1 %v1219_v14, %s4463_s21  ;;  %1173 = vrot.lane.b32.xlu0 %v995_v9, %s4483_s29 }
  0x78   : > { %1298 = vrot.lane.b32.xlu2 %v1220_v13, %s4463_s21  ;;  %s3095_s21 = sshll.u32 %s625_s24, 2  ;;  %s4489_s24 = smov 117  }
  0x7a   : > { %v816_v15 = vpop.permute.xlu2 %815 }
  0x7f   : > { %1248 = vrot.lane.b32.xlu1 %v1220_v13, %s4484_s28  ;;  %1246 = vrot.lane.b32.xlu0 %v1219_v14, %s4484_s28 }
  0x80   : > { %1321 = vrot.lane.b32.xlu2 %v1219_v14, %s4467_s12 }
  0x82   : > { %v818_v16 = vpop.permute.xlu2 %817 }
  0x83   : > { %v820_v17 = vsel %vm819_vm0, %v816_v15, %v818_v16 }
  0x84   : > { %v825_v19 = vsel %vm753_vm1, %v820_v17, 0 }
  0x85   : > { %834 = vmatpush.bf16.msra.mxu3 %v825_v19  ;;  %v3712_v19 = vsel %vm753_vm1, %v3536_v10, 0  ;;  %v3730_v10 = vld [vmem:[%s4448_s6 + $0x38] sm:$0xf] }
  0x87   : > { %1271 = vrot.lane.b32.xlu1 %v1219_v14, %s4465_s30  ;;  %1323 = vrot.lane.b32.xlu0 %v1220_v13, %s4467_s12  ;;  %s4486_s12 = smov 116  }
  0x88   : > { %1273 = vrot.lane.b32.xlu2 %v1220_v13, %s4465_s30  ;;  %3136 = vmatmul.msk.bf16.vlgmr.msra.gmra.mxu3 %vm749_vm2, %v3559_v20  ;;  %s627_s30 = scalar_lea.vmem %s4485_s3, %s3095_s21 }
  0x89   : > { %v3620_v49 = vld [vmem:[%s627_s30] sm:$0xff]  ;;  %s3255_s30 = sadd.s32 8, %s3478_s20 }
  0x8a   : > { %v842_v22 = vpop.permute.xlu2 %841  ;;  %v1702_v51 = vunpack.c.l.b16 %v3620_v49  ;;  %v1703_v59 = vunpack.c.h.b16 %v3620_v49  ;;  %p636_p10 = scmp.lt.s32.totalorder %s3255_s30, 19 }
  0x8c   : > { %v3632_v52 = vpack.c.b16 %v1702_v51, %v1702_v51  ;;  %v1705_v61 = vpack.c.b16 %v1703_v59, %v1703_v59  ;;  %v3796_v51 = vld [vmem:[%s4448_s6 + $0x4c] sm:$0xf]  ;;  %s4515_s30 = smov (!%p636_p10, %s3255_s30), 19 }
  0x8d   : > { %s639_s1 = sadd.s32 %s3485_s22, %s4515_s30  ;;  %s3938_s30 = sshll.u32 %s4507_s14, 3 }
  0x8e   : > { %s3098_s3 = sshll.u32 %s639_s1, 2  ;;  %s653_s14 = sadd.s32 %s3485_s22, %s4517_s23 }
  0x8f   : > { %1398 = vrot.lane.b32.xlu1 %v1220_v13, %s4483_s29  ;;  %1396 = vrot.lane.b32.xlu0 %v1219_v14, %s4483_s29  ;;  %s641_s2 = scalar_lea.vmem %s4491_s4, %s3098_s3  ;;  %s3944_s3 = scalar_lea.vmem %s4451_s9, %s3938_s30 }
  0x90   : > { %1346 = vrot.lane.b32.xlu2 %v1219_v14, %s4480_s27  ;;  %s3950_s4 = scalar_lea.vmem %s4452_s10, %s3938_s30  ;;  %s3101_s20 = sshll.u32 %s653_s14, 2 }
  0x91   : > { %v744_v23 = vpop.permute.xlu1 %743  ;;  %v790_v24 = vpop.permute.xlu0 %789  ;;  %s655_s21 = scalar_lea.vmem %s4447_s5, %s3101_s20 }
  0x92   : > { %v922_v25 = vpop.permute.xlu2 %921 }
  0x97   : > { %1371 = vrot.lane.b32.xlu1 %v1219_v14, %s4482_s0  ;;  %1348 = vrot.lane.b32.xlu0 %v1220_v13, %s4480_s27 }
  0x98   : > { %1373 = vrot.lane.b32.xlu2 %v1220_v13, %s4482_s0  ;;  %v3699_v13 = vld [vmem:[%s4448_s6 + $0x24] sm:$0xf] }
  0x99   : > { %v746_v26 = vpop.permute.xlu1 %745  ;;  %v792_v27 = vpop.permute.xlu0 %791 }
  0x9a   : > { %v748_v28 = vsel %vm747_vm3, %v744_v23, %v746_v26  ;;  %v794_v29 = vsel %vm793_vm4, %v790_v24, %v792_v27  ;;  %v3582_v30 = vpop.permute.xlu2 %996  ;;  %v3725_v24 = vld [vmem:[%s4448_s6 + $0x30] sm:$0xf] }
  0x9b   : > { %v755_v31 = vsel %vm753_vm1, %v748_v28, 0  ;;  %v799_v32 = vsel %vm753_vm1, %v794_v29, 0  ;;  %v3751_v29 = vld [vmem:[%s4448_s6 + $0x3c] sm:$0xf] }
  0x9c   : > { %764 = vmatpush.bf16.msra.mxu0 %v755_v31  ;;  %808 = vmatpush.bf16.msra.mxu2 %v799_v32  ;;  %4490 = vst [vmem:[#allocation3_spill] sm:$0xff] %v3751_v29 }
  0x9f   : > { %3133 = vmatmul.msk.bf16.vlgmr.msra.gmra.mxu0 %vm749_vm2, %v3589_v33  ;;  %3135 = vmatmul.msk.bf16.vlgmr.msra.gmra.mxu2 %vm749_vm2, %v3594_v34 }
  0xa0   : > { %1706 = vrot.lane.b32.xlu0 %v3632_v52, %s4479_s11  ;;  %1728 = vrot.lane.b32.xlu2 %v3632_v52, %s4484_s28 }
  0xa1   : > { %v896_v35 = vpop.permute.xlu1 %895  ;;  %v894_v36 = vpop.permute.xlu0 %893  ;;  %1708 = vrot.lane.b32.xlu1 %v1705_v61, %s4479_s11 }
  0xa2   : > { %v898_v37 = vsel %vm897_vm5, %v894_v36, %v896_v35  ;;  %v948_v38 = vpop.permute.xlu2 %947 }
  0xa3   : > { %v903_v39 = vsel %vm753_vm1, %v898_v37, 0 }
  0xa4   : > { %912 = vmatpush.bf16.msrb.mxu2 %v903_v39  ;;  %v3770_v39 = vld [vmem:[%s4448_s6 + $0x34] sm:$0xf] }
  0xa8   : > { %1730 = vrot.lane.b32.xlu0 %v1705_v61, %s4484_s28  ;;  %1796 = vrot.lane.b32.xlu2 %v1705_v61, %s4486_s12 }
  0xa9   : > { %v920_v40 = vpop.permute.xlu1 %919  ;;  %v844_v41 = vpop.permute.xlu0 %843  ;;  %1794 = vrot.lane.b32.xlu1 %v3632_v52, %s4486_s12 }
  0xaa   : > { %v846_v42 = vsel %vm845_vm6, %v842_v22, %v844_v41  ;;  %v924_v43 = vsel %vm923_vm7, %v920_v40, %v922_v25  ;;  %v1097_v48 = vpop.permute.xlu2 %1096  ;;  %v3775_v40 = vld [vmem:[%s4448_s6 + $0x40] sm:$0xf]  ;;  %v3780_v41 = vld [vmem:[%s4448_s6 + $0x48] sm:$0xf] }
  0xab   : > { %v851_v44 = vsel %vm753_vm1, %v846_v42, 0  ;;  %v929_v45 = vsel %vm753_vm1, %v924_v43, 0 }
  0xac   : > { %860 = vmatpush.bf16.msrb.mxu0 %v851_v44  ;;  %938 = vmatpush.bf16.msrb.mxu3 %v929_v45 }
  0xaf   : > { %3137 = vmatmul.msk.bf16.vlgmr.msrb.gmra.mxu0 %vm749_vm2, %v3613_v46  ;;  %3139 = vmatmul.msk.bf16.vlgmr.msrb.gmra.mxu2 %vm749_vm2, %v3618_v47 }
  0xb0   : > { %3140 = vmatmul.msk.bf16.vlgmr.msrb.gmra.mxu3 %vm749_vm2, %v3625_v50  ;;  %1750 = vrot.lane.b32.xlu0 %v3632_v52, %s4487_s25 }
  0xb1   : > { %v870_v53 = vpop.permute.xlu1 %869  ;;  %v868_v54 = vpop.permute.xlu0 %867  ;;  %1816 = vrot.lane.b32.xlu2 %v3632_v52, %s4480_s27  ;;  %1752 = vrot.lane.b32.xlu1 %v1705_v61, %s4487_s25 }
  0xb2   : > { %v872_v55 = vsel %vm871_vm8, %v868_v54, %v870_v53  ;;  %v1049_v60 = vpop.permute.xlu2 %1048 }
  0xb3   : > { %v877_v57 = vsel %vm753_vm1, %v872_v55, 0 }
  0xb4   : > { %886 = vmatpush.bf16.msrb.mxu1 %v877_v57 }
  0xb7   : > { %3138 = vmatmul.msk.bf16.vlgmr.msrb.gmra.mxu1 %vm749_vm2, %v3649_v58 }
  0xb8   : > { %984 = vmatpush.bf16.msra.mxu1 %v3643_v56  ;;  %1818 = vrot.lane.b32.xlu0 %v1705_v61, %s4480_s27 }
  0xb9   : > { %v946_v62 = vpop.permute.xlu1 %945  ;;  %v999_v63 = vpop.permute.xlu0 %998  ;;  %1774 = vrot.lane.b32.xlu2 %v1705_v61, %s4489_s24  ;;  %1772 = vrot.lane.b32.xlu1 %v3632_v52, %s4489_s24 }
  0xba   : > { %v950_v0 = vsel %vm949_vm9, %v946_v62, %v948_v38  ;;  %v1000_v1 = vsel %vm747_vm3, %v3582_v30, %v999_v63  ;;  %v1072_v6 = vpop.permute.xlu2 %1071  ;;  %v3819_v62 = vld [vmem:[%s4448_s6 + $0x58] sm:$0xf] }
  0xbb   : > { %v955_v2 = vsel %vm753_vm1, %v950_v0, 0  ;;  %v3663_v3 = vsel %vm753_vm1, %v1000_v1, 0 }
  0xbc   : > { %1014 = vmatpush.bf16.msra.mxu2 %v3663_v3  ;;  %964 = vmatpush.bf16.msra.mxu0 %v955_v2 }
  0xbf   : > { %3141 = vmatmul.msk.bf16.vlgmr.msra.gmra.mxu0 %vm749_vm2, %v3669_v4  ;;  %3143 = vmatmul.msk.bf16.vlgmr.msra.gmra.mxu2 %vm749_vm2, %v3674_v5 }
  0xc0   : > { %1838 = vrot.lane.b32.xlu0 %v3632_v52, %s4482_s0 }
  0xc1   : > { %v1024_v7 = vpop.permute.xlu1 %1023  ;;  %v1022_v8 = vpop.permute.xlu0 %1021  ;;  %1860 = vrot.lane.b32.xlu2 %v3632_v52, %s4483_s29  ;;  %1840 = vrot.lane.b32.xlu1 %v1705_v61, %s4482_s0 }
  0xc2   : > { %v1025_v9 = vsel %vm793_vm4, %v1022_v8, %v1024_v7  ;;  %v1149_v18 = vpop.permute.xlu2 %1148  ;;  %v3834_v7 = vld [vmem:[%s4448_s6 + $0x50] sm:$0xf]  ;;  %v3841_v8 = vld [vmem:[%s641_s2] sm:$0xff] }
  0xc3   : > { %v3688_v11 = vsel %vm753_vm1, %v1025_v9, 0 }
  0xc4   : > { %1039 = vmatpush.bf16.msra.mxu3 %v3688_v11 }
  0xc7   : > { %3144 = vmatmul.msk.bf16.vlgmr.msra.gmra.mxu3 %vm749_vm2, %v3694_v12  ;;  %3142 = vmatmul.msk.bf16.vlgmr.msra.gmra.mxu1 %vm749_vm2, %v3699_v13 }
  0xc8   : > { %1862 = vrot.lane.b32.xlu0 %v1705_v61, %s4483_s29  ;;  %v3814_v61 = vld [vmem:[%s4448_s6 + $0x44] sm:$0xf] }
  0xc9   : > { %v1047_v14 = vpop.permute.xlu1 %1046  ;;  %v1099_v15 = vpop.permute.xlu0 %1098 }
  0xca   : > { %v1050_v16 = vsel %vm819_vm0, %v1047_v14, %v1049_v60  ;;  %v1100_v17 = vsel %vm871_vm8, %v1097_v48, %v1099_v15  ;;  %v1172_v30 = vpop.permute.xlu2 %1171  ;;  %v2161_v15 = vunpack.c.l.b16 %v3841_v8 }
  0xcb   : > { %v3715_v22 = vsel %vm753_vm1, %v1050_v16, 0  ;;  %v3718_v23 = vsel %vm753_vm1, %v1100_v17, 0 }
  0xcc   : > { %1114 = vmatpush.bf16.msrb.mxu2 %v3718_v23  ;;  %1064 = vmatpush.bf16.msrb.mxu0 %v3715_v22 }
  0xcf   : > { %3145 = vmatmul.msk.bf16.vlgmr.msrb.gmra.mxu0 %vm749_vm2, %v3725_v24  ;;  %3147 = vmatmul.msk.bf16.vlgmr.msrb.gmra.mxu2 %vm749_vm2, %v3730_v10 }
  0xd0   : > { %1209 = vmatpush.bf16.msra.mxu2 %v3712_v19 }
  0xd1   : > { %v1124_v25 = vpop.permute.xlu1 %1123  ;;  %v1122_v26 = vpop.permute.xlu0 %1121 }
  0xd2   : > { %v1125_v27 = vsel %vm897_vm5, %v1122_v26, %v1124_v25  ;;  %v1299_v42 = vpop.permute.xlu2 %1298  ;;  %v3852_v26 = vpack.c.b16 %v2161_v15, %v2161_v15  ;;  %v3986_v15 = vld [vmem:[%s655_s21] sm:$0xff] }
  0xd3   : > { %v3745_v28 = vsel %vm753_vm1, %v1125_v27, 0  ;;  %v3859_v27 = vld [vmem:[%s4448_s6 + $0x54] sm:$0xf]  ;;  %4492 = vst [vmem:[#allocation4_spill] sm:$0xff] %v3986_v15 }
  0xd4   : > { %1139 = vmatpush.bf16.msrb.mxu3 %v3745_v28  ;;  %2187 = vrot.lane.b32.xlu1 %v3852_v26, %s4484_s28 }
  0xd5   : > { %2209 = vrot.lane.b32.xlu0 %v3852_v26, %s4487_s25 }
  0xd7   : > { %3148 = vmatmul.msk.bf16.vlgmr.msrb.gmra.mxu3 %vm749_vm2, %v3751_v29 }
  0xd9   : > { %v1147_v31 = vpop.permute.xlu1 %1146  ;;  %v1074_v32 = vpop.permute.xlu0 %1073 }
  0xda   : > { %v1150_v35 = vsel %vm923_vm7, %v1147_v31, %v1149_v18  ;;  %v1075_v36 = vsel %vm845_vm6, %v1072_v6, %v1074_v32  ;;  %v1322_v52 = vpop.permute.xlu2 %1321 }
  0xdb   : > { %v3760_v37 = vsel %vm753_vm1, %v1150_v35, 0  ;;  %v3763_v38 = vsel %vm753_vm1, %v1075_v36, 0  ;;  %v2162_v36 = vunpack.c.h.b16 %v3841_v8 }
  0xdc   : > { %1089 = vmatpush.bf16.msrb.mxu1 %v3763_v38  ;;  %1164 = vmatpush.bf16.msra.mxu0 %v3760_v37 }
  0xdf   : > { %3146 = vmatmul.msk.bf16.vlgmr.msrb.gmra.mxu1 %vm749_vm2, %v3770_v39  ;;  %3149 = vmatmul.msk.bf16.vlgmr.msra.gmra.mxu0 %vm749_vm2, %v3775_v40 }
  0xe0   : > { %3151 = vmatmul.msk.bf16.vlgmr.msra.gmra.mxu2 %vm749_vm2, %v3780_v41 }
  0xe1   : > { %v1224_v43 = vpop.permute.xlu1 %1223  ;;  %v1222_v44 = vpop.permute.xlu0 %1221 }
  0xe2   : > { %v1225_v45 = vsel %vm747_vm3, %v1222_v44, %v1224_v43  ;;  %v1274_v6 = vpop.permute.xlu2 %1273  ;;  %v3881_v43 = vpack.c.b16 %v2162_v36, %v2162_v36  ;;  %v3887_v44 = vld [vmem:[%s4448_s6 + $0x68] sm:$0xf] }
  0xe3   : > { %v3790_v48 = vsel %vm753_vm1, %v1225_v45, 0 }
  0xe4   : > { %1239 = vmatpush.bf16.msra.mxu3 %v3790_v48  ;;  %2211 = vrot.lane.b32.xlu1 %v3881_v43, %s4487_s25 }
  0xe5   : > { %2167 = vrot.lane.b32.xlu0 %v3881_v43, %s4479_s11  ;;  %2189 = vrot.lane.b32.xlu2 %v3881_v43, %s4484_s28 }
  0xe7   : > { %3152 = vmatmul.msk.bf16.vlgmr.msra.gmra.mxu3 %vm749_vm2, %v3796_v51 }
  0xe9   : > { %v1297_v53 = vpop.permute.xlu1 %1296  ;;  %v1174_v54 = vpop.permute.xlu0 %1173 }
  0xea   : > { %v1300_v55 = vsel %vm845_vm6, %v1297_v53, %v1299_v42  ;;  %v1175_v57 = vsel %vm949_vm9, %v1172_v30, %v1174_v54  ;;  %v3864_v30 = vld [vmem:[%s4448_s6 + $0x5c] sm:$0xf]  ;;  %v1347_v31 = vpop.permute.xlu2 %1346 }
  0xeb   : > { %v3804_v59 = vsel %vm753_vm1, %v1300_v55, 0  ;;  %v3807_v60 = vsel %vm753_vm1, %v1175_v57, 0 }
  0xec   : > { %1189 = vmatpush.bf16.msra.mxu1 %v3807_v60  ;;  %1314 = vmatpush.bf16.msrb.mxu2 %v3804_v59 }
  0xed   : > { %2275 = vrot.lane.b32.xlu1 %v3852_v26, %s4480_s27  ;;  %2231 = vrot.lane.b32.xlu0 %v3852_v26, %s4489_s24 }
  0xee   : > { %2165 = vrot.lane.b32.xlu2 %v3852_v26, %s4479_s11 }
  0xef   : > { %3150 = vmatmul.msk.bf16.vlgmr.msra.gmra.mxu1 %vm749_vm2, %v3814_v61 }
  0xf0   : > { %3155 = vmatmul.msk.bf16.vlgmr.msrb.gmra.mxu2 %vm749_vm2, %v3819_v62 }
  0xf1   : > { %v1249_v63 = vpop.permute.xlu1 %1248  ;;  %v1247_v0 = vpop.permute.xlu0 %1246 }
  0xf2   : > { %v1250_v1 = vsel %vm793_vm4, %v1247_v0, %v1249_v63  ;;  %v1374_v45 = vpop.permute.xlu2 %1373  ;;  %v3917_v0 = vld [vmem:[%s4448_s6 + $0x64] sm:$0xf] }
  0xf3   : > { %v3828_v2 = vsel %vm753_vm1, %v1250_v1, 0 }
  0xf4   : > { %1264 = vmatpush.bf16.msrb.mxu0 %v3828_v2 }
  0xf5   : > { %2233 = vrot.lane.b32.xlu1 %v3881_v43, %s4489_s24  ;;  %2299 = vrot.lane.b32.xlu0 %v3881_v43, %s4482_s0 }
  0xf6   : > { %2277 = vrot.lane.b32.xlu2 %v3881_v43, %s4480_s27 }
  0xf7   : > { %3153 = vmatmul.msk.bf16.vlgmr.msrb.gmra.mxu0 %vm749_vm2, %v3834_v7 }
  0xf9   : > { %v1272_v9 = vpop.permute.xlu1 %1271  ;;  %v1324_v14 = vpop.permute.xlu0 %1323 }
  0xfa   : > { %v1275_v16 = vsel %vm819_vm0, %v1272_v9, %v1274_v6  ;;  %v1325_v17 = vsel %vm871_vm8, %v1322_v52, %v1324_v14 }
  0xfb   : > { %v3847_v18 = vsel %vm753_vm1, %v1275_v16, 0  ;;  %v3850_v25 = vsel %vm753_vm1, %v1325_v17, 0  ;;  %v2621_v16 = vunpack.c.h.b16 %v3986_v15  ;;  %v2620_v17 = vunpack.c.l.b16 %v3986_v15 }
  0xfc   : > { %1289 = vmatpush.bf16.msrb.mxu1 %v3847_v18  ;;  %1339 = vmatpush.bf16.msrb.mxu3 %v3850_v25 }
  0xfd   : > { %2253 = vrot.lane.b32.xlu1 %v3852_v26, %s4486_s12  ;;  %2319 = vrot.lane.b32.xlu0 %v3852_v26, %s4483_s29 }
  0xfe   : > { %2297 = vrot.lane.b32.xlu2 %v3852_v26, %s4482_s0 }
  0xff   : > { %3154 = vmatmul.msk.bf16.vlgmr.msrb.gmra.mxu1 %vm749_vm2, %v3859_v27  ;;  %3156 = vmatmul.msk.bf16.vlgmr.msrb.gmra.mxu3 %vm749_vm2, %v3864_v30 }
 0x100   : > { %1441 = vmatpush.bf16.msra.mxu3 %v3663_v3 }
 0x101   : > { %v1399_v32 = vpop.permute.xlu1 %1398  ;;  %v1397_v35 = vpop.permute.xlu0 %1396 }
 0x102   : > { %v1400_v3 = vsel %vm949_vm9, %v1397_v35, %v1399_v32  ;;  %v3993_v32 = vpack.c.b16 %v2620_v17, %v2620_v17  ;;  %v1729_v35 = vpop.permute.xlu2 %1728 }
 0x103   : > { %v3879_v42 = vsel %vm753_vm1, %v1400_v3, 0 }
 0x104   : > { %1495 = vmatpush.bf16.msrb.mxu3 %v3763_v38  ;;  %1414 = vmatpush.bf16.msra.mxu2 %v3879_v42  ;;  %v785_v38 = vpop.f32.mrf.mxu1 }
 0x105   : > { %2321 = vrot.lane.b32.xlu1 %v3881_v43, %s4483_s29 }
 0x106   : > { %2255 = vrot.lane.b32.xlu2 %v3881_v43, %s4486_s12 }
 0x107   : > { %3159 = vmatmul.msk.bf16.vlgmr.msra.gmra.mxu2 %vm749_vm2, %v3887_v44 }
 0x108   : > { %1481 = vmatpush.bf16.msrb.mxu2 %v3715_v22 }
 0x109   : > { %v1372_v52 = vpop.permute.xlu1 %1371  ;;  %v1349_v53 = vpop.permute.xlu0 %1348 }
 0x10a   : > { %v1375_v22 = vsel %vm923_vm7, %v1372_v52, %v1374_v45  ;;  %v1350_v54 = vsel %vm897_vm5, %v1347_v31, %v1349_v53  ;;  %v3991_v31 = vpack.c.b16 %v2621_v16, %v2621_v16  ;;  %v4043_v16 = vsel %vm753_vm1, %v3620_v49, 0 }
 0x10b   : > { %v3902_v55 = vsel %vm753_vm1, %v1375_v22, 0  ;;  %v3905_v57 = vsel %vm753_vm1, %v1350_v54, 0  ;;  %v836_v63 = vpop.f32.mrf.mxu3 }
 0x10c   : > { %1537 = vmatpush.bf16.msra.mxu2 %v3760_v37  ;;  %1364 = vmatpush.bf16.msra.mxu0 %v3905_v57  ;;  %v3912_v37 = vld [vmem:[%s4448_s6 + $0x60] sm:$0xf]  ;;  %v787_v1 = vpop.f32.mrf.mxu1 }
 0x10d   : > { %1389 = vmatpush.bf16.msra.mxu1 %v3902_v55  ;;  %2670 = vrot.lane.b32.xlu0 %v3991_v31, %s4487_s25 }
 0x10e   : > { %2624 = vrot.lane.b32.xlu1 %v3993_v32, %s4479_s11  ;;  %2668 = vrot.lane.b32.xlu2 %v3993_v32, %s4487_s25 }
 0x10f   : > { %3157 = vmatmul.msk.bf16.vlgmr.msra.gmra.mxu0 %vm749_vm2, %v3912_v37  ;;  %3160 = vmatmul.msk.bf16.vlgmr.msra.gmra.mxu3 %vm749_vm2, %v3589_v33 }
 0x110   : > { %1454 = vmatpush.bf16.msrb.mxu0 %v3643_v56  ;;  %3158 = vmatmul.msk.bf16.vlgmr.msra.gmra.mxu1 %vm749_vm2, %v3917_v0 }
 0x111   : > { %1467 = vmatpush.bf16.msrb.mxu1 %v3688_v11  ;;  %1551 = vmatpush.bf16.msra.mxu3 %v3807_v60 }
 0x112   : > { %v1707_v14 = vpop.permute.xlu0 %1706 }
 0x113   : > { %v838_v56 = vpop.f32.mrf.mxu3  ;;  %v1709_v36 = vpop.permute.xlu1 %1708 }
 0x114   : > { %1509 = vmatpush.bf16.msra.mxu0 %v3718_v23  ;;  %v1710_v45 = vsel %vm747_vm3, %v1707_v14, %v1709_v36 }
 0x115   : > { %1523 = vmatpush.bf16.msra.mxu1 %v3745_v28  ;;  %2690 = vrot.lane.b32.xlu0 %v3993_v32, %s4489_s24  ;;  %v4024_v54 = vsel %vm753_vm1, %v1710_v45, 0 }
 0x116   : > { %2692 = vrot.lane.b32.xlu1 %v3991_v31, %s4489_s24  ;;  %2626 = vrot.lane.b32.xlu2 %v3991_v31, %s4479_s11 }
 0x117   : > { %3163 = vmatmul.msk.bf16.vlgmr.msrb.gmra.mxu2 %vm749_vm2, %v3559_v20 }
 0x118   : > { %1593 = vmatpush.bf16.msrb.mxu2 %v3828_v2 }
 0x11b   : > { %v1795_v1 = vpop.permute.xlu1 %1794 }
 0x11c   : > { %v766_v11 = vpop.f32.mrf.mxu0 }
 0x11d   : > { %v786_v23 = vadd.f32 %v785_v38, %v766_v11  ;;  %v1731_v38 = vpop.permute.xlu0 %1730  ;;  %2648 = vrot.lane.b32.xlu0 %v3991_v31, %s4484_s28 }
 0x11e   : > { %2756 = vrot.lane.b32.xlu1 %v3993_v32, %s4482_s0  ;;  %2646 = vrot.lane.b32.xlu2 %v3993_v32, %s4484_s28 }
 0x11f   : > { %3161 = vmatmul.msk.bf16.vlgmr.msrb.gmra.mxu0 %vm749_vm2, %v3564_v21  ;;  %3164 = vmatmul.msk.bf16.vlgmr.msrb.gmra.mxu3 %vm749_vm2, %v3613_v46 }
 0x120   : > { %3162 = vmatmul.msk.bf16.vlgmr.msrb.gmra.mxu1 %vm749_vm2, %v3594_v34  ;;  %1607 = vmatpush.bf16.msrb.mxu3 %v3847_v18 }
 0x121   : > { %1579 = vmatpush.bf16.msrb.mxu1 %v3790_v48  ;;  %1565 = vmatpush.bf16.msrb.mxu0 %v3712_v19 }
 0x122   : > { %v810_v28 = vpop.f32.mrf.mxu2 }
 0x123   : > { %v814_v60 = vadd.f32 %v810_v28, %v786_v23  ;;  %v1732_v28 = vsel %vm793_vm4, %v1729_v35, %v1731_v38 }
 0x124   : > { %v768_v6 = vpop.f32.mrf.mxu0  ;;  %v4039_v14 = vsel %vm753_vm1, %v1732_v28, 0 }
 0x125   : > { %v3980_v9 = vadd.f32 %v836_v63, %v814_v60  ;;  %v1797_v63 = vpop.permute.xlu2 %1796  ;;  %v1751_v56 = vpop.permute.xlu0 %1750  ;;  %2712 = vrot.lane.b32.xlu0 %v3993_v32, %s4486_s12 }
 0x126   : > { %v1798_v35 = vsel %vm871_vm8, %v1795_v1, %v1797_v63  ;;  %2714 = vrot.lane.b32.xlu1 %v3991_v31, %s4486_s12  ;;  %2758 = vrot.lane.b32.xlu2 %v3991_v31, %s4482_s0  ;;  %s3102_s0 = sshll.u32 %s3363_s13, 2 }
 0x127   : > { %3167 = vmatmul.msk.bf16.vlgmr.msra.gmra.mxu2 %vm749_vm2, %v3625_v50  ;;  %p662_p12 = scmp.lt.s32.totalorder %s3102_s0, 7 }
 0x128   : > { %1649 = vmatpush.bf16.msra.mxu2 %v3905_v57 }
 0x129   : > { %s4519_s0 = smov (!%p662_p12, %s3102_s0), 7 }
 0x12a   : > { %v812_v26 = vpop.f32.mrf.mxu2  ;;  %s665_s11 = sadd.s32 %s3938_s30, %s4519_s0 }
 0x12b   : > { %v1753_v26 = vpop.permute.xlu1 %1752 }
 0x12c   : > { %v3997_v3 = vpop.f32.mrf.mxu0  ;;  %v1754_v28 = vsel %vm819_vm0, %v1751_v56, %v1753_v26 }
 0x12d   : > { %v1817_v17 = vpop.permute.xlu2 %1816  ;;  %v1819_v36 = vpop.permute.xlu0 %1818  ;;  %2780 = vrot.lane.b32.xlu0 %v3991_v31, %s4483_s29 }
 0x12e   : > { %2734 = vrot.lane.b32.xlu1 %v3993_v32, %s4480_s27  ;;  %2778 = vrot.lane.b32.xlu2 %v3993_v32, %s4483_s29 }
 0x12f   : > { %3165 = vmatmul.msk.bf16.vlgmr.msra.gmra.mxu0 %vm749_vm2, %v3649_v58  ;;  %3168 = vmatmul.msk.bf16.vlgmr.msra.gmra.mxu3 %vm749_vm2, %v3669_v4 }
 0x130   : > { %3166 = vmatmul.msk.bf16.vlgmr.msra.gmra.mxu1 %vm749_vm2, %v3618_v47  ;;  %1621 = vmatpush.bf16.msra.mxu0 %v3804_v59 }
 0x131   : > { %1635 = vmatpush.bf16.msra.mxu1 %v3850_v25  ;;  %1663 = vmatpush.bf16.msra.mxu3 %v3902_v55 }
 0x132   : > { %v4012_v43 = vpop.f32.mrf.mxu2 }
 0x133   : > { %v4017_v52 = vpop.f32.mrf.mxu3  ;;  %v1773_v1 = vpop.permute.xlu1 %1772 }
 0x134   : > { %v864_v53 = vpop.f32.mrf.mxu0  ;;  %v4019_v22 = vpop.f32.mrf.mxu1 }
 0x135   : > { %v4064_v53 = vsel %vm753_vm1, %v1798_v35, 0  ;;  %v1775_v63 = vpop.permute.xlu2 %1774  ;;  %v1839_v26 = vpop.permute.xlu0 %1838 }
 0x136   : > { %v1776_v35 = vsel %vm845_vm6, %v1773_v1, %v1775_v63  ;;  %2736 = vrot.lane.b32.xlu2 %v3991_v31, %s4480_s27  ;;  %s3104_s27 = sshll.u32 %s665_s11, 2 }
 0x137   : > { %3171 = vmatmul.msk.bf16.vlgmr.msrb.gmra.mxu2 %vm749_vm2, %v3694_v12  ;;  %v4085_v56 = vsel %vm753_vm1, %v1776_v35, 0  ;;  %s4175_s24 = scalar_lea.vmem %s4450_s8, %s3104_s27 }
 0x138   : > { %1721 = vmatpush.bf16.msrb.mxu2 %v4024_v54 }
 0x13a   : > { %v916_v11 = vpop.f32.mrf.mxu2 }
 0x13b   : > { %v942_v23 = vpop.f32.mrf.mxu3  ;;  %v1841_v1 = vpop.permute.xlu1 %1840 }
 0x13c   : > { %v4034_v60 = vpop.f32.mrf.mxu0  ;;  %v890_v6 = vpop.f32.mrf.mxu1 }
 0x13d   : > { %v1820_v6 = vsel %vm897_vm5, %v1817_v17, %v1819_v36  ;;  %v866_v17 = vadd.f32 %v3997_v3, %v3980_v9 }
 0x13e   : > { %v4082_v12 = vsel %vm753_vm1, %v1820_v6, 0 }
 0x13f   : > { %3169 = vmatmul.msk.bf16.vlgmr.msrb.gmra.mxu0 %vm749_vm2, %v3699_v13  ;;  %3172 = vmatmul.msk.bf16.vlgmr.msrb.gmra.mxu3 %vm749_vm2, %v3725_v24  ;;  %v892_v9 = vadd.f32 %v4019_v22, %v866_v17 }
 0x140   : > { %3170 = vmatmul.msk.bf16.vlgmr.msrb.gmra.mxu1 %vm749_vm2, %v3674_v5  ;;  %1677 = vmatpush.bf16.msrb.mxu0 %v3879_v42 }
 0x141   : > { %1743 = vmatpush.bf16.msrb.mxu3 %v4039_v14  ;;  %1694 = vmatpush.bf16.msrb.mxu1 %v4043_v16  ;;  %v918_v63 = vadd.f32 %v4012_v43, %v892_v9 }
 0x142   : > { %v4056_v49 = vpop.f32.mrf.mxu2 }
 0x143   : > { %v944_v32 = vadd.f32 %v4017_v52, %v918_v63 }
 0x144   : > { %v968_v38 = vpop.f32.mrf.mxu0  ;;  %v986_v45 = vpop.f32.mrf.mxu1 }
 0x145   : > { %v970_v9 = vadd.f32 %v4034_v60, %v944_v32 }
 0x147   : > { %3175 = vmatmul.msk.bf16.vlgmr.msra.gmra.mxu2 %vm749_vm2, %v3751_v29  ;;  %v4079_v29 = vsel %vm753_vm1, %v1754_v28, 0  ;;  %v1863_v28 = vpop.permute.xlu0 %1862 }
 0x148   : > { %1809 = vmatpush.bf16.msra.mxu2 %v4064_v53 }
 0x14a   : > { %v1041_v11 = vpop.f32.mrf.mxu3  ;;  %v1018_v23 = vpop.f32.mrf.mxu2 }
 0x14b   : > { %v1861_v23 = vpop.permute.xlu2 %1860 }
 0x14c   : > { %v1066_v38 = vpop.f32.mrf.mxu0  ;;  %v988_v15 = vpop.f32.mrf.mxu1  ;;  %v1864_v22 = vsel %vm949_vm9, %v1861_v23, %v1863_v28 }
 0x14f   : > { %3173 = vmatmul.msk.bf16.vlgmr.msra.gmra.mxu0 %vm749_vm2, %v3770_v39  ;;  %3176 = vmatmul.msk.bf16.vlgmr.msra.gmra.mxu3 %vm749_vm2, %v3775_v40 }
 0x150   : > { %3174 = vmatmul.msk.bf16.vlgmr.msra.gmra.mxu1 %vm749_vm2, %v3730_v10  ;;  %1765 = vmatpush.bf16.msra.mxu0 %v4079_v29 }
 0x151   : > { %1831 = vmatpush.bf16.msra.mxu3 %v4082_v12  ;;  %1787 = vmatpush.bf16.msra.mxu1 %v4085_v56 }
 0x152   : > { %v1043_v15 = vpop.f32.mrf.mxu3  ;;  %v1116_v36 = vpop.f32.mrf.mxu2 }
 0x153   : > { %v1842_v15 = vsel %vm923_vm7, %v1839_v26, %v1841_v1 }
 0x154   : > { %v1068_v3 = vpop.f32.mrf.mxu0 }
 0x155   : > { %v4114_v3 = vsel %vm753_vm1, %v1842_v15, 0 }
 0x157   : > { %3179 = vmatmul.msk.bf16.vlgmr.msrb.gmra.mxu2 %vm749_vm2, %v3796_v51 }
 0x158   : > { %1900 = vmatpush.bf16.msrb.mxu2 %v3790_v48  ;;  %v4117_v48 = vsel %vm753_vm1, %v1864_v22, 0 }
 0x15a   : > { %v1141_v6 = vpop.f32.mrf.mxu3  ;;  %v1118_v35 = vpop.f32.mrf.mxu2 }
 0x15b   : > { %v990_v35 = vadd.f32 %v986_v45, %v970_v9 }
 0x15c   : > { %v1091_v43 = vpop.f32.mrf.mxu1  ;;  %v1166_v17 = vpop.f32.mrf.mxu0 }
 0x15d   : > { %v1020_v52 = vadd.f32 %v4056_v49, %v990_v35 }
 0x15f   : > { %3177 = vmatmul.msk.bf16.vlgmr.msrb.gmra.mxu0 %vm749_vm2, %v3814_v61  ;;  %3180 = vmatmul.msk.bf16.vlgmr.msrb.gmra.mxu3 %vm749_vm2, %v3834_v7  ;;  %v1045_v63 = vadd.f32 %v1041_v11, %v1020_v52 }
 0x160   : > { %3178 = vmatmul.msk.bf16.vlgmr.msrb.gmra.mxu1 %vm749_vm2, %v3780_v41  ;;  %1853 = vmatpush.bf16.msrb.mxu0 %v4114_v3 }
 0x161   : > { %1875 = vmatpush.bf16.msrb.mxu1 %v4117_v48  ;;  %1913 = vmatpush.bf16.msrb.mxu3 %v3712_v19  ;;  %v1070_v1 = vadd.f32 %v1066_v38, %v1045_v63  ;;  %v2188_v63 = vpop.permute.xlu1 %2187 }
 0x162   : > { %v1143_v31 = vpop.f32.mrf.mxu3 }
 0x163   : > { %v1211_v60 = vpop.f32.mrf.mxu2  ;;  %v1095_v28 = vadd.f32 %v1091_v43, %v1070_v1 }
 0x164   : > { %v1093_v45 = vpop.f32.mrf.mxu1  ;;  %v1168_v26 = vpop.f32.mrf.mxu0 }
 0x165   : > { %v1120_v22 = vadd.f32 %v1116_v36, %v1095_v28  ;;  %v2190_v26 = vpop.permute.xlu2 %2189 }
 0x167   : > { %3183 = vmatmul.msk.bf16.vlgmr.msra.gmra.mxu2 %vm749_vm2, %v3864_v30 }
 0x168   : > { %1954 = vmatpush.bf16.msra.mxu2 %v3804_v59  ;;  %v1145_v59 = vadd.f32 %v1141_v6, %v1120_v22 }
 0x16a   : > { %v1241_v23 = vpop.f32.mrf.mxu3  ;;  %v1170_v36 = vadd.f32 %v1166_v17, %v1145_v59  ;;  %v2212_v59 = vpop.permute.xlu1 %2211 }
 0x16b   : > { %v1213_v15 = vpop.f32.mrf.mxu2 }
 0x16c   : > { %v1191_v32 = vpop.f32.mrf.mxu1 }
 0x16d   : > { %v1195_v43 = vadd.f32 %v1191_v32, %v1170_v36 }
 0x16f   : > { %3181 = vmatmul.msk.bf16.vlgmr.msra.gmra.mxu0 %vm749_vm2, %v3859_v27  ;;  %3184 = vmatmul.msk.bf16.vlgmr.msra.gmra.mxu3 %vm749_vm2, %v3912_v37  ;;  %v1215_v31 = vadd.f32 %v1211_v60, %v1195_v43 }
 0x170   : > { %3182 = vmatmul.msk.bf16.vlgmr.msra.gmra.mxu1 %vm749_vm2, %v3819_v62  ;;  %1926 = vmatpush.bf16.msra.mxu0 %v3828_v2 }
 0x171   : > { %1940 = vmatpush.bf16.msra.mxu1 %v3847_v18  ;;  %1968 = vmatpush.bf16.msra.mxu3 %v3850_v25  ;;  %v1245_v18 = vadd.f32 %v1241_v23, %v1215_v31 }
 0x172   : > { %v1243_v19 = vpop.f32.mrf.mxu3 }
 0x173   : > { %v1316_v49 = vpop.f32.mrf.mxu2  ;;  %v2166_v19 = vpop.permute.xlu2 %2165 }
 0x174   : > { %v1193_v11 = vpop.f32.mrf.mxu1  ;;  %v1266_v38 = vpop.f32.mrf.mxu0 }
 0x175   : > { %v1270_v25 = vadd.f32 %v1266_v38, %v1245_v18 }
 0x177   : > { %3188 = vmatmul.msk.bf16.vlgmr.msrb.gmra.mxu2 %vm749_vm2, %v3589_v33 }
 0x178   : > { %2010 = vmatpush.bf16.msrb.mxu2 %v3879_v42 }
 0x17b   : > { %v1318_v9 = vpop.f32.mrf.mxu2 }
 0x17c   : > { %v1291_v35 = vpop.f32.mrf.mxu1  ;;  %v1268_v2 = vpop.f32.mrf.mxu0 }
 0x17d   : > { %v1295_v6 = vadd.f32 %v1291_v35, %v1270_v25  ;;  %v2191_v35 = vsel %vm793_vm4, %v2188_v63, %v2190_v26  ;;  %v2276_v2 = vpop.permute.xlu1 %2275  ;;  %v4208_v63 = vsel %vm753_vm1, %v3841_v8, 0 }
 0x17f   : > { %3185 = vmatmul.msk.bf16.vlgmr.msrb.gmra.mxu0 %vm749_vm2, %v3917_v0  ;;  %3189 = vmatmul.msk.bf16.vlgmr.msrb.gmra.mxu3 %vm749_vm2, %v3564_v21  ;;  %v1320_v21 = vadd.f32 %v1316_v49, %v1295_v6  ;;  %v2210_v49 = vpop.permute.xlu0 %2209 }
 0x180   : > { %3186 = vmatmul.msk.bf16.vlgmr.msrb.gmra.mxu1 %vm749_vm2, %v3887_v44  ;;  %1982 = vmatpush.bf16.msrb.mxu0 %v3905_v57 }
 0x181   : > { %1996 = vmatpush.bf16.msrb.mxu1 %v3902_v55  ;;  %2024 = vmatpush.bf16.msrb.mxu3 %v4043_v16 }
 0x182   : > { %v1341_v33 = vpop.f32.mrf.mxu3 }
 0x183   : > { %v1345_v52 = vadd.f32 %v1341_v33, %v1320_v21  ;;  %v2213_v21 = vsel %vm819_vm0, %v2210_v49, %v2212_v59 }
 0x184   : > { %v1293_v42 = vpop.f32.mrf.mxu1  ;;  %v4204_v26 = vsel %vm753_vm1, %v2213_v21, 0 }
 0x187   : > { %3192 = vmatmul.msk.bf16.vlgmr.msra.gmra.mxu2 %vm749_vm2, %v3613_v46  ;;  %v4165_v46 = vld [vmem:[%s4449_s7] ss:$0 sm:$0xff]  ;;  %v2168_v18 = vpop.permute.xlu0 %2167 }
 0x188   : > { %2066 = vmatpush.bf16.msra.mxu2 %v4079_v29  ;;  %v2169_v42 = vsel %vm747_vm3, %v2166_v19, %v2168_v18  ;;  %v4494_v18 = vld [vmem:[#allocation3_spill] sm:$0xff] }
 0x18a   : > { %v1343_v57 = vpop.f32.mrf.mxu3  ;;  %v1416_v17 = vpop.f32.mrf.mxu2 }
 0x18c   : > { %v1366_v55 = vpop.f32.mrf.mxu0 }
 0x18d   : > { %v1391_v60 = vpop.f32.mrf.mxu1  ;;  %v1370_v45 = vadd.f32 %v1366_v55, %v1345_v52  ;;  %v4201_v55 = vsel %vm753_vm1, %v2169_v42, 0 }
 0x18f   : > { %v1395_v1 = vadd.f32 %v1391_v60, %v1370_v45  ;;  %3190 = vmatmul.msk.bf16.vlgmr.msra.gmra.mxu0 %vm749_vm2, %v3594_v34  ;;  %3193 = vmatmul.msk.bf16.vlgmr.msra.gmra.mxu3 %vm749_vm2, %v3649_v58  ;;  %v2234_v45 = vpop.permute.xlu1 %2233 }
 0x190   : > { %3191 = vmatmul.msk.bf16.vlgmr.msra.gmra.mxu1 %vm749_vm2, %v3559_v20  ;;  %2038 = vmatpush.bf16.msra.mxu0 %v4024_v54 }
 0x191   : > { %2052 = vmatpush.bf16.msra.mxu1 %v4039_v14  ;;  %2080 = vmatpush.bf16.msra.mxu3 %v4085_v56  ;;  %v1420_v23 = vadd.f32 %v1416_v17, %v1395_v1  ;;  %v4493_v1 = vld [vmem:[#allocation2_spill] sm:$0xff] }
 0x192   : > { %v1418_v20 = vpop.f32.mrf.mxu2  ;;  %v1443_v28 = vpop.f32.mrf.mxu3 }
 0x193   : > { %v1421_v34 = vpack.c.bf16 %v1420_v23, %v1420_v23  ;;  %v1426_v15 = vmul.f32 %v4165_v46, %v1420_v23 }
 0x194   : > { %v1368_v32 = vpop.f32.mrf.mxu0 }
 0x195   : > { %v1393_v58 = vpop.f32.mrf.mxu1  ;;  %1422 = vst [vmem:[%s4175_s24] sm:$0xf] %v1421_v34  ;;  %1427 = vadd.xlane.f32.xlu0 %v1426_v15  ;;  %v1430_v22 = vmul.f32 %v1426_v15, %v1420_v23 }
 0x197   : > { %1431 = vadd.xlane.f32.xlu1 %v1430_v22  ;;  %3196 = vmatmul.msk.bf16.vlgmr.msrb.gmra.mxu2 %vm749_vm2, %v3669_v4  ;;  %v2278_v4 = vpop.permute.xlu2 %2277  ;;  %v2254_v22 = vpop.permute.xlu1 %2253 }
 0x198   : > { %2122 = vmatpush.bf16.msrb.mxu2 %v4114_v3  ;;  %v2279_v8 = vsel %vm897_vm5, %v2276_v2, %v2278_v4 }
 0x199   : > { %v4221_v32 = vsel %vm753_vm1, %v2279_v8, 0 }
 0x19a   : > { %v1483_v11 = vpop.f32.mrf.mxu2  ;;  %v1445_v38 = vpop.f32.mrf.mxu3 }
 0x19c   : > { %v1456_v36 = vpop.f32.mrf.mxu0 }
 0x19d   : > { %v1469_v43 = vpop.f32.mrf.mxu1 }
 0x19f   : > { %3194 = vmatmul.msk.bf16.vlgmr.msrb.gmra.mxu0 %vm749_vm2, %v3618_v47  ;;  %3197 = vmatmul.msk.bf16.vlgmr.msrb.gmra.mxu3 %vm749_vm2, %v3699_v13  ;;  %v1457_v13 = vadd.f32 %v1456_v36, %v1443_v28  ;;  %v2298_v60 = vpop.permute.xlu2 %2297 }
 0x1a0   : > { %3195 = vmatmul.msk.bf16.vlgmr.msrb.gmra.mxu1 %vm749_vm2, %v3625_v50  ;;  %2094 = vmatpush.bf16.msrb.mxu0 %v4064_v53  ;;  %v4193_v50 = vsel %vm753_vm1, %v2191_v35, 0 }
 0x1a1   : > { %2108 = vmatpush.bf16.msrb.mxu1 %v4082_v12  ;;  %2136 = vmatpush.bf16.msrb.mxu3 %v4117_v48  ;;  %v1473_v52 = vadd.f32 %v1469_v43, %v1457_v13 }
 0x1a2   : > { %v1485_v9 = vpop.f32.mrf.mxu2  ;;  %v1497_v31 = vpop.f32.mrf.mxu3 }
 0x1a3   : > { %v1487_v23 = vadd.f32 %v1483_v11, %v1473_v52 }
 0x1a4   : > { %v1458_v47 = vpop.f32.mrf.mxu0 }
 0x1a5   : > { %v1471_v33 = vpop.f32.mrf.mxu1 }
 0x1a7   : > { %3200 = vmatmul.msk.bf16.vlgmr.msra.gmra.mxu2 %vm749_vm2, %v3725_v24  ;;  %v2232_v24 = vpop.permute.xlu0 %2231 }
 0x1a8   : > { %2202 = vmatpush.bf16.msra.mxu2 %v4193_v50  ;;  %v2235_v36 = vsel %vm845_vm6, %v2232_v24, %v2234_v45 }
 0x1aa   : > { %v1539_v25 = vpop.f32.mrf.mxu2  ;;  %v1499_v6 = vpop.f32.mrf.mxu3 }
 0x1ac   : > { %v1511_v57 = vpop.f32.mrf.mxu0 }
 0x1ad   : > { %v1525_v17 = vpop.f32.mrf.mxu1 }
 0x1af   : > { %3198 = vmatmul.msk.bf16.vlgmr.msra.gmra.mxu0 %vm749_vm2, %v3674_v5  ;;  %3201 = vmatmul.msk.bf16.vlgmr.msra.gmra.mxu3 %vm749_vm2, %v3770_v39  ;;  %v1501_v5 = vadd.f32 %v1497_v31, %v1487_v23  ;;  %v2256_v39 = vpop.permute.xlu2 %2255  ;;  %v2300_v19 = vpop.permute.xlu0 %2299 }
 0x1b0   : > { %3199 = vmatmul.msk.bf16.vlgmr.msra.gmra.mxu1 %vm749_vm2, %v4493_v1  ;;  %2224 = vmatpush.bf16.msra.mxu3 %v4204_v26  ;;  %v2257_v49 = vsel %vm871_vm8, %v2254_v22, %v2256_v39  ;;  %v2301_v43 = vsel %vm923_vm7, %v2298_v60, %v2300_v19 }
 0x1b1   : > { %2180 = vmatpush.bf16.msra.mxu1 %v4201_v55  ;;  %2153 = vmatpush.bf16.msra.mxu0 %v4208_v63  ;;  %v1515_v58 = vadd.f32 %v1511_v57, %v1501_v5  ;;  %v4230_v35 = vsel %vm753_vm1, %v2257_v49, 0  ;;  %v4236_v2 = vsel %vm753_vm1, %v2301_v43, 0  ;;  %v3315_v49 = vld [vmem:[%s4448_s6 + $0x4] sm:$0xf] }
 0x1b2   : > { %v1541_v20 = vpop.f32.mrf.mxu2  ;;  %v1553_v34 = vpop.f32.mrf.mxu3 }
 0x1b3   : > { %v1529_v11 = vadd.f32 %v1525_v17, %v1515_v58 }
 0x1b4   : > { %v1513_v28 = vpop.f32.mrf.mxu0 }
 0x1b5   : > { %v1527_v15 = vpop.f32.mrf.mxu1  ;;  %v1543_v31 = vadd.f32 %v1539_v25, %v1529_v11 }
 0x1b7   : > { %3204 = vmatmul.msk.bf16.vlgmr.msrb.gmra.mxu2 %vm749_vm2, %v3775_v40  ;;  %v4233_v40 = vsel %vm753_vm1, %v2235_v36, 0  ;;  %v1557_v33 = vadd.f32 %v1553_v34, %v1543_v31  ;;  %v2320_v57 = vpop.permute.xlu0 %2319 }
 0x1b8   : > { %2290 = vmatpush.bf16.msrb.mxu2 %v4221_v32 }
 0x1ba   : > { %v1595_v59 = vpop.f32.mrf.mxu2  ;;  %v1555_v38 = vpop.f32.mrf.mxu3 }
 0x1bc   : > { %v1567_v4 = vpop.f32.mrf.mxu0 }
 0x1bd   : > { %v1581_v9 = vpop.f32.mrf.mxu1  ;;  %v1571_v6 = vadd.f32 %v1567_v4, %v1557_v33 }
 0x1bf   : > { %3202 = vmatmul.msk.bf16.vlgmr.msrb.gmra.mxu0 %vm749_vm2, %v3730_v10  ;;  %3205 = vmatmul.msk.bf16.vlgmr.msrb.gmra.mxu3 %vm749_vm2, %v3814_v61  ;;  %v2322_v10 = vpop.permute.xlu1 %2321  ;;  %v1585_v21 = vadd.f32 %v1581_v9, %v1571_v6  ;;  %v3317_v9 = vld [vmem:[%s4448_s6 + $0x14] sm:$0xf]  ;;  %v2671_v33 = vpop.permute.xlu0 %2670  ;;  %v3320_v6 = vld [vmem:[%s4448_s6 + $0x18] sm:$0xf] }
 0x1c0   : > { %3203 = vmatmul.msk.bf16.vlgmr.msrb.gmra.mxu1 %vm749_vm2, %v4494_v18  ;;  %2312 = vmatpush.bf16.msrb.mxu3 %v4236_v2  ;;  %v2323_v52 = vsel %vm949_vm9, %v2320_v57, %v2322_v10 }
 0x1c1   : > { %2268 = vmatpush.bf16.msrb.mxu1 %v4230_v35  ;;  %2246 = vmatpush.bf16.msrb.mxu0 %v4233_v40  ;;  %v1599_v24 = vadd.f32 %v1595_v59, %v1585_v21  ;;  %v4252_v1 = vsel %vm753_vm1, %v2323_v52, 0 }
 0x1c2   : > { %v1597_v47 = vpop.f32.mrf.mxu2  ;;  %v1609_v13 = vpop.f32.mrf.mxu3 }
 0x1c4   : > { %v1569_v42 = vpop.f32.mrf.mxu0 }
 0x1c5   : > { %v1583_v25 = vpop.f32.mrf.mxu1  ;;  %v3318_v42 = vld [vmem:[%s4448_s6 + $0xc] sm:$0xf] }
 0x1c6   : > { %v3319_v25 = vld [vmem:[%s4448_s6 + $0x10] sm:$0xf] }
 0x1c7   : > { %3208 = vmatmul.msk.bf16.vlgmr.msra.gmra.mxu2 %vm749_vm2, %v3834_v7  ;;  %v1613_v7 = vadd.f32 %v1609_v13, %v1599_v24 }
 0x1c8   : > { %2372 = vmatpush.bf16.msra.mxu2 %v4043_v16 }
 0x1ca   : > { %v1651_v61 = vpop.f32.mrf.mxu2  ;;  %v1611_v17 = vpop.f32.mrf.mxu3 }
 0x1cb   : > { %v2669_v17 = vpop.permute.xlu2 %2668 }
 0x1cc   : > { %v1623_v60 = vpop.f32.mrf.mxu0 }
 0x1cd   : > { %v1637_v45 = vpop.f32.mrf.mxu1  ;;  %v1627_v23 = vadd.f32 %v1623_v60, %v1613_v7 }
 0x1cf   : > { %3206 = vmatmul.msk.bf16.vlgmr.msra.gmra.mxu0 %vm749_vm2, %v3780_v41  ;;  %3209 = vmatmul.msk.bf16.vlgmr.msra.gmra.mxu3 %vm749_vm2, %v3859_v27  ;;  %v1641_v28 = vadd.f32 %v1637_v45, %v1627_v23  ;;  %v3321_v45 = vld [vmem:[%s4448_s6 + $0x24] sm:$0xf] }
 0x1d0   : > { %3207 = vmatmul.msk.bf16.vlgmr.msra.gmra.mxu1 %vm749_vm2, %v3796_v51  ;;  %2385 = vmatpush.bf16.msra.mxu3 %v4039_v14 }
 0x1d1   : > { %2359 = vmatpush.bf16.msra.mxu1 %v4024_v54  ;;  %2334 = vmatpush.bf16.msra.mxu0 %v4252_v1  ;;  %v1655_v51 = vadd.f32 %v1651_v61, %v1641_v28  ;;  %v3322_v28 = vld [vmem:[%s4448_s6 + $0x1c] sm:$0xf] }
 0x1d2   : > { %v1653_v16 = vpop.f32.mrf.mxu2  ;;  %v1665_v20 = vpop.f32.mrf.mxu3 }
 0x1d3   : > { %v1669_v5 = vadd.f32 %v1665_v20, %v1655_v51  ;;  %v2627_v16 = vpop.permute.xlu2 %2626 }
 0x1d4   : > { %v1625_v8 = vpop.f32.mrf.mxu0 }
 0x1d5   : > { %v1639_v34 = vpop.f32.mrf.mxu1  ;;  %v4495_v8 = vld [vmem:[#allocation4_spill] sm:$0xff] }
 0x1d6   : > { %v2603_v34 = vsel %vm753_vm1, %v4495_v8, 0 }
 0x1d7   : > { %3212 = vmatmul.msk.bf16.vlgmr.msrb.gmra.mxu2 %vm749_vm2, %v3912_v37 }
 0x1d8   : > { %2427 = vmatpush.bf16.msrb.mxu2 %v4064_v53 }
 0x1da   : > { %v1723_v41 = vpop.f32.mrf.mxu2  ;;  %v1667_v27 = vpop.f32.mrf.mxu3 }
 0x1db   : > { %v2672_v27 = vsel %vm819_vm0, %v2669_v17, %v2671_v33 }
 0x1dc   : > { %v1679_v54 = vpop.f32.mrf.mxu0 }
 0x1dd   : > { %v1696_v15 = vpop.f32.mrf.mxu1  ;;  %v1683_v37 = vadd.f32 %v1679_v54, %v1669_v5 }
 0x1df   : > { %3210 = vmatmul.msk.bf16.vlgmr.msrb.gmra.mxu0 %vm749_vm2, %v3819_v62  ;;  %3213 = vmatmul.msk.bf16.vlgmr.msrb.gmra.mxu3 %vm749_vm2, %v3917_v0  ;;  %v1700_v22 = vadd.f32 %v1696_v15, %v1683_v37  ;;  %v3314_v62 = vld [vmem:[%s4448_s6] sm:$0xf]  ;;  %v2647_v15 = vpop.permute.xlu2 %2646 }
 0x1e0   : > { %3211 = vmatmul.msk.bf16.vlgmr.msrb.gmra.mxu1 %vm749_vm2, %v3864_v30  ;;  %2399 = vmatpush.bf16.msrb.mxu0 %v4079_v29 }
 0x1e1   : > { %2413 = vmatpush.bf16.msrb.mxu1 %v4085_v56  ;;  %2441 = vmatpush.bf16.msrb.mxu3 %v4082_v12  ;;  %v1727_v30 = vadd.f32 %v1723_v41, %v1700_v22  ;;  %v3324_v41 = vld [vmem:[%s4448_s6 + $0x28] sm:$0xf]  ;;  %v3325_v22 = vld [vmem:[%s4448_s6 + $0x34] sm:$0xf] }
 0x1e2   : > { %v1725_v14 = vpop.f32.mrf.mxu2  ;;  %v1745_v53 = vpop.f32.mrf.mxu3 }
 0x1e3   : > { %v1749_v59 = vadd.f32 %v1745_v53, %v1727_v30  ;;  %v2674_v53 = vsel %vm753_vm1, %v2672_v27, 0  ;;  %v3333_v27 = vld [vmem:[%s4448_s6 + $0x54] sm:$0xf] }
 0x1e4   : > { %v1681_v58 = vpop.f32.mrf.mxu0 }
 0x1e5   : > { %v1698_v39 = vpop.f32.mrf.mxu1 }
 0x1e7   : > { %3217 = vmatmul.msk.bf16.vlgmr.msra.gmra.mxu2 %vm749_vm2, %v3314_v62 }
 0x1e8   : > { %2483 = vmatpush.bf16.msra.mxu2 %v4208_v63  ;;  %v3316_v63 = vld [vmem:[%s4448_s6 + $0x8] sm:$0xf] }
 0x1ea   : > { %v1811_v29 = vpop.f32.mrf.mxu2  ;;  %v1747_v0 = vpop.f32.mrf.mxu3 }
 0x1ec   : > { %v1767_v19 = vpop.f32.mrf.mxu0 }
 0x1ed   : > { %v1789_v56 = vpop.f32.mrf.mxu1  ;;  %v1771_v12 = vadd.f32 %v1767_v19, %v1749_v59  ;;  %v2759_v19 = vpop.permute.xlu2 %2758 }
 0x1ef   : > { %3214 = vmatmul.msk.bf16.vlgmr.msra.gmra.mxu0 %vm749_vm2, %v3887_v44  ;;  %3218 = vmatmul.msk.bf16.vlgmr.msra.gmra.mxu3 %vm749_vm2, %v3316_v63  ;;  %v1793_v44 = vadd.f32 %v1789_v56, %v1771_v12 }
 0x1f0   : > { %3216 = vmatmul.msk.bf16.vlgmr.msra.gmra.mxu1 %vm749_vm2, %v3315_v49  ;;  %2455 = vmatpush.bf16.msra.mxu0 %v4114_v3 }
 0x1f1   : > { %2469 = vmatpush.bf16.msra.mxu1 %v4117_v48  ;;  %2497 = vmatpush.bf16.msra.mxu3 %v4201_v55  ;;  %v1815_v4 = vadd.f32 %v1811_v29, %v1793_v44 }
 0x1f2   : > { %v1813_v11 = vpop.f32.mrf.mxu2  ;;  %v1833_v38 = vpop.f32.mrf.mxu3 }
 0x1f3   : > { %v1837_v3 = vadd.f32 %v1833_v38, %v1815_v4  ;;  %v3326_v38 = vld [vmem:[%s4448_s6 + $0x2c] sm:$0xf]  ;;  %v3328_v4 = vld [vmem:[%s4448_s6 + $0x38] sm:$0xf] }
 0x1f4   : > { %v1769_v36 = vpop.f32.mrf.mxu0 }
 0x1f5   : > { %v1791_v43 = vpop.f32.mrf.mxu1  ;;  %v3327_v36 = vld [vmem:[%s4448_s6 + $0x30] sm:$0xf] }
 0x1f7   : > { %3221 = vmatmul.msk.bf16.vlgmr.msrb.gmra.mxu2 %vm749_vm2, %v3317_v9 }
 0x1f8   : > { %2539 = vmatpush.bf16.msrb.mxu2 %v4233_v40  ;;  %v2625_v40 = vpop.permute.xlu1 %2624 }
 0x1f9   : > { %v2628_v62 = vsel %vm747_vm3, %v2625_v40, %v2627_v16  ;;  %v3330_v16 = vld [vmem:[%s4448_s6 + $0x3c] sm:$0xf] }
 0x1fa   : > { %v1902_v31 = vpop.f32.mrf.mxu2  ;;  %v1835_v18 = vpop.f32.mrf.mxu3  ;;  %v2630_v49 = vsel %vm753_vm1, %v2628_v62, 0 }
 0x1fc   : > { %v1855_v48 = vpop.f32.mrf.mxu0 }
 0x1fd   : > { %v1877_v47 = vpop.f32.mrf.mxu1  ;;  %v1859_v55 = vadd.f32 %v1855_v48, %v1837_v3  ;;  %v2779_v48 = vpop.permute.xlu2 %2778 }
 0x1ff   : > { %v1881_v13 = vadd.f32 %v1877_v47, %v1859_v55  ;;  %3219 = vmatmul.msk.bf16.vlgmr.msrb.gmra.mxu0 %vm749_vm2, %v3318_v42  ;;  %3222 = vmatmul.msk.bf16.vlgmr.msrb.gmra.mxu3 %vm749_vm2, %v3320_v6 }
 0x200   : > { %3220 = vmatmul.msk.bf16.vlgmr.msrb.gmra.mxu1 %vm749_vm2, %v3319_v25  ;;  %2511 = vmatpush.bf16.msrb.mxu0 %v4193_v50  ;;  %v2691_v50 = vpop.permute.xlu0 %2690  ;;  %v3329_v25 = vld [vmem:[%s4448_s6 + $0x44] sm:$0xf] }
 0x201   : > { %v1882_v10 = vpack.c.bf16 %v1881_v13, %v1881_v13  ;;  %2525 = vmatpush.bf16.msrb.mxu1 %v4204_v26  ;;  %2553 = vmatpush.bf16.msrb.mxu3 %v4230_v35  ;;  %v1885_v21 = vmul.f32 %v4165_v46, %v1881_v13  ;;  %v2693_v35 = vpop.permute.xlu1 %2692 }
 0x202   : > { %v1904_v61 = vpop.f32.mrf.mxu2  ;;  %v1915_v57 = vpop.f32.mrf.mxu3  ;;  %v2694_v30 = vsel %vm845_vm6, %v2691_v50, %v2693_v35 }
 0x203   : > { %3187 = vst [vmem:[%s4175_s24 + $0x4] sm:$0xf] %v1882_v10  ;;  %1886 = vadd.xlane.f32.xlu2 %v1885_v21  ;;  %v1889_v26 = vmul.f32 %v1885_v21, %v1881_v13  ;;  %v1916_v39 = vadd.f32 %v1915_v57, %v1902_v31  ;;  %v2696_v63 = vsel %vm753_vm1, %v2694_v30, 0 }
 0x204   : > { %v1857_v52 = vpop.f32.mrf.mxu0 }
 0x205   : > { %v1879_v60 = vpop.f32.mrf.mxu1  ;;  %v2737_v52 = vpop.permute.xlu2 %2736 }
 0x207   : > { %3225 = vmatmul.msk.bf16.vlgmr.msra.gmra.mxu2 %vm749_vm2, %v3321_v45 }
 0x208   : > { %2595 = vmatpush.bf16.msra.mxu2 %v4252_v1  ;;  %v3323_v1 = vld [vmem:[%s4448_s6 + $0x20] sm:$0xf]  ;;  %v2649_v14 = vpop.permute.xlu0 %2648 }
 0x209   : > { %v2757_v58 = vpop.permute.xlu1 %2756  ;;  %v2650_v0 = vsel %vm793_vm4, %v2647_v15, %v2649_v14 }
 0x20a   : > { %v1956_v24 = vpop.f32.mrf.mxu2  ;;  %v1917_v7 = vpop.f32.mrf.mxu3  ;;  %v2652_v11 = vsel %vm753_vm1, %v2650_v0, 0  ;;  %v2760_v3 = vsel %vm923_vm7, %v2757_v58, %v2759_v19  ;;  %v3334_v58 = vld [vmem:[%s4448_s6 + $0x4c] sm:$0xf] }
 0x20b   : > { %1890 = vadd.xlane.f32.xlu2 %v1889_v26  ;;  %v2762_v13 = vsel %vm753_vm1, %v2760_v3, 0 }
 0x20c   : > { %v1928_v23 = vpop.f32.mrf.mxu0 }
 0x20d   : > { %v1942_v20 = vpop.f32.mrf.mxu1 }
 0x20f   : > { %3223 = vmatmul.msk.bf16.vlgmr.msra.gmra.mxu0 %vm749_vm2, %v3322_v28  ;;  %3226 = vmatmul.msk.bf16.vlgmr.msra.gmra.mxu3 %vm749_vm2, %v3324_v41 }
 0x210   : > { %3224 = vmatmul.msk.bf16.vlgmr.msra.gmra.mxu1 %vm749_vm2, %v3323_v1  ;;  %2567 = vmatpush.bf16.msra.mxu0 %v4221_v32  ;;  %v1932_v32 = vadd.f32 %v1928_v23, %v1916_v39  ;;  %v2713_v44 = vpop.permute.xlu0 %2712  ;;  %v3331_v23 = vld [vmem:[%s4448_s6 + $0x40] sm:$0xf]  ;;  %v3335_v39 = vld [vmem:[%s4448_s6 + $0x50] sm:$0xf] }
 0x211   : > { %2581 = vmatpush.bf16.msra.mxu1 %v4236_v2  ;;  %2612 = vmatpush.bf16.msra.mxu3 %v2603_v34  ;;  %v2715_v43 = vpop.permute.xlu1 %2714 }
 0x212   : > { %v1958_v51 = vpop.f32.mrf.mxu2  ;;  %v1970_v54 = vpop.f32.mrf.mxu3  ;;  %v1946_v12 = vadd.f32 %v1942_v20, %v1932_v32  ;;  %v2716_v6 = vsel %vm871_vm8, %v2713_v44, %v2715_v43  ;;  %v3332_v20 = vld [vmem:[%s4448_s6 + $0x48] sm:$0xf] }
 0x213   : > { %v2718_v26 = vsel %vm753_vm1, %v2716_v6, 0  ;;  %v3340_v43 = vld [vmem:[%s4448_s6 + $0x68] sm:$0xf] }
 0x214   : > { %v1930_v5 = vpop.f32.mrf.mxu0  ;;  %v1960_v9 = vadd.f32 %v1956_v24, %v1946_v12 }
 0x215   : > { %v1944_v37 = vpop.f32.mrf.mxu1 }
 0x216   : > { %v1974_v33 = vadd.f32 %v1970_v54, %v1960_v9 }
 0x217   : > { %3229 = vmatmul.msk.bf16.vlgmr.msrb.gmra.mxu2 %vm749_vm2, %v3325_v22  ;;  %v3336_v22 = vld [vmem:[%s4448_s6 + $0x58] sm:$0xf] }
 0x218   : > { %2683 = vmatpush.bf16.msrb.mxu2 %v2674_v53  ;;  %v2781_v40 = vpop.permute.xlu0 %2780 }
 0x219   : > { %v2735_v10 = vpop.permute.xlu1 %2734  ;;  %v2782_v17 = vsel %vm949_vm9, %v2779_v48, %v2781_v40 }
 0x21a   : > { %v2012_v2 = vpop.f32.mrf.mxu2  ;;  %v1972_v29 = vpop.f32.mrf.mxu3  ;;  %v2738_v50 = vsel %vm897_vm5, %v2735_v10, %v2737_v52  ;;  %v2784_v35 = vsel %vm753_vm1, %v2782_v17, 0 }
 0x21b   : > { %v2740_v24 = vsel %vm753_vm1, %v2738_v50, 0 }
 0x21c   : > { %v1984_v56 = vpop.f32.mrf.mxu0 }
 0x21d   : > { %v1998_v59 = vpop.f32.mrf.mxu1  ;;  %v1988_v42 = vadd.f32 %v1984_v56, %v1974_v33  ;;  %v3337_v56 = vld [vmem:[%s4448_s6 + $0x64] sm:$0xf] }
 0x21f   : > { %3227 = vmatmul.msk.bf16.vlgmr.msrb.gmra.mxu0 %vm749_vm2, %v3326_v38  ;;  %3230 = vmatmul.msk.bf16.vlgmr.msrb.gmra.mxu3 %vm749_vm2, %v3328_v4  ;;  %v2002_v61 = vadd.f32 %v1998_v59, %v1988_v42  ;;  %v3338_v38 = vld [vmem:[%s4448_s6 + $0x5c] sm:$0xf] }
 0x220   : > { %3228 = vmatmul.msk.bf16.vlgmr.msrb.gmra.mxu1 %vm749_vm2, %v3327_v36  ;;  %2639 = vmatpush.bf16.msrb.mxu0 %v2630_v49  ;;  %v3339_v36 = vld [vmem:[%s4448_s6 + $0x60] sm:$0xf] }
 0x221   : > { %2705 = vmatpush.bf16.msrb.mxu3 %v2696_v63  ;;  %2661 = vmatpush.bf16.msrb.mxu1 %v2652_v11  ;;  %v2016_v7 = vadd.f32 %v2012_v2, %v2002_v61 }
 0x222   : > { %v2014_v31 = vpop.f32.mrf.mxu2  ;;  %v2026_v18 = vpop.f32.mrf.mxu3 }
 0x223   : > { %v2030_v34 = vadd.f32 %v2026_v18, %v2016_v7 }
 0x224   : > { %v1986_v47 = vpop.f32.mrf.mxu0 }
 0x225   : > { %v2000_v55 = vpop.f32.mrf.mxu1 }
 0x227   : > { %3233 = vmatmul.msk.bf16.vlgmr.msra.gmra.mxu2 %vm749_vm2, %v3329_v25 }
 0x228   : > { %2771 = vmatpush.bf16.msra.mxu2 %v2762_v13 }
 0x22a   : > { %v2068_v21 = vpop.f32.mrf.mxu2  ;;  %v2028_v57 = vpop.f32.mrf.mxu3 }
 0x22c   : > { %v2040_v60 = vpop.f32.mrf.mxu0 }
 0x22d   : > { %v2054_v45 = vpop.f32.mrf.mxu1  ;;  %v2044_v51 = vadd.f32 %v2040_v60, %v2030_v34 }
 0x22f   : > { %3231 = vmatmul.msk.bf16.vlgmr.msra.gmra.mxu0 %vm749_vm2, %v3330_v16  ;;  %3234 = vmatmul.msk.bf16.vlgmr.msra.gmra.mxu3 %vm749_vm2, %v3332_v20  ;;  %v2058_v54 = vadd.f32 %v2054_v45, %v2044_v51 }
 0x230   : > { %3232 = vmatmul.msk.bf16.vlgmr.msra.gmra.mxu1 %vm749_vm2, %v3331_v23  ;;  %2727 = vmatpush.bf16.msra.mxu0 %v2718_v26 }
 0x231   : > { %2793 = vmatpush.bf16.msra.mxu3 %v2784_v35  ;;  %2749 = vmatpush.bf16.msra.mxu1 %v2740_v24  ;;  %v2072_v53 = vadd.f32 %v2068_v21, %v2058_v54 }
 0x232   : > { %v2070_v8 = vpop.f32.mrf.mxu2  ;;  %v2082_v28 = vpop.f32.mrf.mxu3 }
 0x233   : > { %v2086_v32 = vadd.f32 %v2082_v28, %v2072_v53 }
 0x234   : > { %v2042_v1 = vpop.f32.mrf.mxu0 }
 0x235   : > { %v2056_v41 = vpop.f32.mrf.mxu1 }
 0x237   : > { %3237 = vmatmul.msk.bf16.vlgmr.msrb.gmra.mxu2 %vm749_vm2, %v3333_v27 }
 0x23a   : > { %v2124_v15 = vpop.f32.mrf.mxu2  ;;  %v2084_v5 = vpop.f32.mrf.mxu3 }
 0x23c   : > { %v2096_v37 = vpop.f32.mrf.mxu0 }
 0x23d   : > { %v2110_v14 = vpop.f32.mrf.mxu1  ;;  %v2100_v62 = vadd.f32 %v2096_v37, %v2086_v32 }
 0x23f   : > { %3235 = vmatmul.msk.bf16.vlgmr.msrb.gmra.mxu0 %vm749_vm2, %v3334_v58  ;;  %3238 = vmatmul.msk.bf16.vlgmr.msrb.gmra.mxu3 %vm749_vm2, %v3336_v22  ;;  %v2114_v19 = vadd.f32 %v2110_v14, %v2100_v62 }
 0x240   : > { %3236 = vmatmul.msk.bf16.vlgmr.msrb.gmra.mxu1 %vm749_vm2, %v3335_v39 }
 0x241   : > { %v2128_v12 = vadd.f32 %v2124_v15, %v2114_v19 }
 0x242   : > { %v2126_v2 = vpop.f32.mrf.mxu2  ;;  %v2138_v30 = vpop.f32.mrf.mxu3 }
 0x243   : > { %v2142_v44 = vadd.f32 %v2138_v30, %v2128_v12 }
 0x244   : > { %v2098_v29 = vpop.f32.mrf.mxu0 }
 0x245   : > { %v2112_v0 = vpop.f32.mrf.mxu1 }
 0x247   : > { %3241 = vmatmul.msk.bf16.vlgmr.msra.gmra.mxu2 %vm749_vm2, %v3337_v56 }
 0x24a   : > { %v2204_v59 = vpop.f32.mrf.mxu2  ;;  %v2140_v49 = vpop.f32.mrf.mxu3 }
 0x24c   : > { %v2155_v63 = vpop.f32.mrf.mxu0 }
 0x24d   : > { %v2182_v11 = vpop.f32.mrf.mxu1  ;;  %v2159_v4 = vadd.f32 %v2155_v63, %v2142_v44 }
 0x24f   : > { %3239 = vmatmul.msk.bf16.vlgmr.msra.gmra.mxu0 %vm749_vm2, %v3338_v38  ;;  %3242 = vmatmul.msk.bf16.vlgmr.msra.gmra.mxu3 %vm749_vm2, %v3340_v43  ;;  %v2186_v48 = vadd.f32 %v2182_v11, %v2159_v4 }
 0x250   : > { %3240 = vmatmul.msk.bf16.vlgmr.msra.gmra.mxu1 %vm749_vm2, %v3339_v36 }
 0x251   : > { %v2208_v47 = vadd.f32 %v2204_v59, %v2186_v48 }
 0x252   : > { %v2206_v9 = vpop.f32.mrf.mxu2  ;;  %v2226_v31 = vpop.f32.mrf.mxu3 }
 0x253   : > { %v2230_v25 = vadd.f32 %v2226_v31, %v2208_v47 }
 0x254   : > { %v2157_v3 = vpop.f32.mrf.mxu0 }
 0x255   : > { %v2184_v18 = vpop.f32.mrf.mxu1 }
 0x25a   : > { %v2292_v55 = vpop.f32.mrf.mxu2  ;;  %v2228_v33 = vpop.f32.mrf.mxu3 }
 0x25c   : > { %v2248_v13 = vpop.f32.mrf.mxu0 }
 0x25d   : > { %v2270_v42 = vpop.f32.mrf.mxu1  ;;  %v2252_v40 = vadd.f32 %v2248_v13, %v2230_v25 }
 0x25f   : > { %v2274_v10 = vadd.f32 %v2270_v42, %v2252_v40 }
 0x261   : > { %v2296_v17 = vadd.f32 %v2292_v55, %v2274_v10 }
 0x262   : > { %v2294_v6 = vpop.f32.mrf.mxu2  ;;  %v2314_v21 = vpop.f32.mrf.mxu3 }
 0x263   : > { %v2318_v60 = vadd.f32 %v2314_v21, %v2296_v17 }
 0x264   : > { %v2250_v61 = vpop.f32.mrf.mxu0 }
 0x265   : > { %v2272_v57 = vpop.f32.mrf.mxu1 }
 0x26a   : > { %v2374_v52 = vpop.f32.mrf.mxu2  ;;  %v2316_v45 = vpop.f32.mrf.mxu3 }
 0x26c   : > { %v2336_v50 = vpop.f32.mrf.mxu0 }
 0x26d   : > { %v2361_v26 = vpop.f32.mrf.mxu1  ;;  %v2340_v35 = vadd.f32 %v2336_v50, %v2318_v60 }
 0x26e   : > { %v2375_v54 = vadd.f32 %v2374_v52, %v2361_v26 }
 0x26f   : > { %v2341_v24 = vpack.c.bf16 %v2340_v35, %v2340_v35  ;;  %v2344_v7 = vmul.f32 %v4165_v46, %v2340_v35 }
 0x271   : > { %3215 = vst [vmem:[%s4175_s24 + $0x8] sm:$0xf] %v2341_v24  ;;  %2345 = vadd.xlane.f32.xlu0 %v2344_v7  ;;  %v2348_v16 = vmul.f32 %v2344_v7, %v2340_v35 }
 0x272   : > { %v2376_v23 = vpop.f32.mrf.mxu2  ;;  %v2387_v20 = vpop.f32.mrf.mxu3 }
 0x273   : > { %2349 = vadd.xlane.f32.xlu1 %v2348_v16  ;;  %v2391_v14 = vadd.f32 %v2387_v20, %v2375_v54 }
 0x274   : > { %v2338_v8 = vpop.f32.mrf.mxu0 }
 0x275   : > { %v2363_v34 = vpop.f32.mrf.mxu1 }
 0x27a   : > { %v2429_v28 = vpop.f32.mrf.mxu2  ;;  %v2389_v1 = vpop.f32.mrf.mxu3 }
 0x27c   : > { %v2401_v41 = vpop.f32.mrf.mxu0 }
 0x27d   : > { %v2415_v51 = vpop.f32.mrf.mxu1  ;;  %v2405_v53 = vadd.f32 %v2401_v41, %v2391_v14 }
 0x27f   : > { %v2419_v39 = vadd.f32 %v2415_v51, %v2405_v53 }
 0x281   : > { %v2433_v62 = vadd.f32 %v2429_v28, %v2419_v39 }
 0x282   : > { %v2431_v27 = vpop.f32.mrf.mxu2  ;;  %v2443_v15 = vpop.f32.mrf.mxu3 }
 0x283   : > { %v2447_v29 = vadd.f32 %v2443_v15, %v2433_v62  ;;  %v1428_v62 = vpop.xlane.xlu0 %1427 }
 0x284   : > { %v2403_v5 = vpop.f32.mrf.mxu0 }
 0x285   : > { %v2417_v37 = vpop.f32.mrf.mxu1 }
 0x28a   : > { %v2485_v58 = vpop.f32.mrf.mxu2  ;;  %v2445_v22 = vpop.f32.mrf.mxu3 }
 0x28c   : > { %v2457_v32 = vpop.f32.mrf.mxu0 }
 0x28d   : > { %v2471_v2 = vpop.f32.mrf.mxu1  ;;  %v2461_v59 = vadd.f32 %v2457_v32, %v2447_v29 }
 0x28f   : > { %v2475_v12 = vadd.f32 %v2471_v2, %v2461_v59  ;;  %v1887_v2 = vpop.xlane.xlu2 %1886 }
 0x291   : > { %v2489_v38 = vadd.f32 %v2485_v58, %v2475_v12 }
 0x292   : > { %v2487_v30 = vpop.f32.mrf.mxu2  ;;  %v2499_v0 = vpop.f32.mrf.mxu3 }
 0x293   : > { %v2503_v36 = vadd.f32 %v2499_v0, %v2489_v38  ;;  %v1432_v30 = vpop.xlane.xlu1 %1431 }
 0x294   : > { %v2459_v19 = vpop.f32.mrf.mxu0 }
 0x295   : > { %v2473_v56 = vpop.f32.mrf.mxu1  ;;  %v1888_v19 = vadd.f32 %v1887_v2, %v1428_v62 }
 0x297   : > { %v1891_v29 = vpop.xlane.xlu2 %1890 }
 0x298   : > { %v1892_v59 = vadd.f32 %v1891_v29, %v1432_v30 }
 0x29a   : > { %v2541_v49 = vpop.f32.mrf.mxu2  ;;  %v2501_v63 = vpop.f32.mrf.mxu3 }
 0x29c   : > { %v2513_v11 = vpop.f32.mrf.mxu0 }
 0x29d   : > { %v2527_v44 = vpop.f32.mrf.mxu1  ;;  %v2517_v4 = vadd.f32 %v2513_v11, %v2503_v36 }
 0x29f   : > { %v2531_v18 = vadd.f32 %v2527_v44, %v2517_v4 }
 0x2a1   : > { %v2545_v47 = vadd.f32 %v2541_v49, %v2531_v18 }
 0x2a2   : > { %v2543_v43 = vpop.f32.mrf.mxu2  ;;  %v2555_v9 = vpop.f32.mrf.mxu3 }
 0x2a3   : > { %v2559_v42 = vadd.f32 %v2555_v9, %v2545_v47 }
 0x2a4   : > { %v2515_v31 = vpop.f32.mrf.mxu0 }
 0x2a5   : > { %v2529_v3 = vpop.f32.mrf.mxu1 }
 0x2aa   : > { %v2597_v48 = vpop.f32.mrf.mxu2  ;;  %v2557_v55 = vpop.f32.mrf.mxu3 }
 0x2ac   : > { %v2569_v33 = vpop.f32.mrf.mxu0 }
 0x2ad   : > { %v2583_v13 = vpop.f32.mrf.mxu1  ;;  %v2573_v25 = vadd.f32 %v2569_v33, %v2559_v42 }
 0x2af   : > { %v2587_v61 = vadd.f32 %v2583_v13, %v2573_v25 }
 0x2b1   : > { %v2601_v57 = vadd.f32 %v2597_v48, %v2587_v61 }
 0x2b2   : > { %v2599_v40 = vpop.f32.mrf.mxu2  ;;  %v2614_v6 = vpop.f32.mrf.mxu3 }
 0x2b3   : > { %v2618_v50 = vadd.f32 %v2614_v6, %v2601_v57 }
 0x2b4   : > { %v2571_v10 = vpop.f32.mrf.mxu0 }
 0x2b5   : > { %v2585_v21 = vpop.f32.mrf.mxu1 }
 0x2ba   : > { %v2685_v17 = vpop.f32.mrf.mxu2  ;;  %v2616_v52 = vpop.f32.mrf.mxu3 }
 0x2bc   : > { %v2641_v60 = vpop.f32.mrf.mxu0 }
 0x2bd   : > { %v2663_v45 = vpop.f32.mrf.mxu1  ;;  %v2645_v26 = vadd.f32 %v2641_v60, %v2618_v50 }
 0x2bf   : > { %v2667_v24 = vadd.f32 %v2663_v45, %v2645_v26 }
 0x2c1   : > { %v2689_v20 = vadd.f32 %v2685_v17, %v2667_v24 }
 0x2c2   : > { %v2687_v35 = vpop.f32.mrf.mxu2  ;;  %v2707_v7 = vpop.f32.mrf.mxu3 }
 0x2c3   : > { %v2711_v34 = vadd.f32 %v2707_v7, %v2689_v20 }
 0x2c4   : > { %v2643_v16 = vpop.f32.mrf.mxu0 }
 0x2c5   : > { %v2665_v23 = vpop.f32.mrf.mxu1 }
 0x2ca   : > { %v2773_v8 = vpop.f32.mrf.mxu2  ;;  %v2709_v28 = vpop.f32.mrf.mxu3 }
 0x2cc   : > { %v2729_v1 = vpop.f32.mrf.mxu0 }
 0x2cd   : > { %v2751_v41 = vpop.f32.mrf.mxu1  ;;  %v2733_v51 = vadd.f32 %v2729_v1, %v2711_v34 }
 0x2cf   : > { %v2755_v27 = vadd.f32 %v2751_v41, %v2733_v51 }
 0x2d1   : > { %v2777_v54 = vadd.f32 %v2773_v8, %v2755_v27 }
 0x2d2   : > { %v2775_v15 = vpop.f32.mrf.mxu2  ;;  %v2795_v5 = vpop.f32.mrf.mxu3 }
 0x2d3   : > { %v2799_v37 = vadd.f32 %v2795_v5, %v2777_v54 }
 0x2d4   : > { %v2731_v14 = vpop.f32.mrf.mxu0 }
 0x2d5   : > { %v2753_v53 = vpop.f32.mrf.mxu1  ;;  %v2800_v58 = vpack.c.bf16 %v2799_v37, %v2799_v37  ;;  %v2803_v39 = vmul.f32 %v4165_v46, %v2799_v37 }
 0x2d7   : > { %3243 = vst [vmem:[%s4175_s24 + $0xc] sm:$0xf] %v2800_v58  ;;  %2804 = vadd.xlane.f32.xlu2 %v2803_v39  ;;  %v2807_v22 = vmul.f32 %v2803_v39, %v2799_v37 }
 0x2d9   : > { %2808 = vadd.xlane.f32.xlu0 %v2807_v22 }
 0x2da   : > { %v2797_v32 = vpop.f32.mrf.mxu3 }
 0x2e4   : > { %v2346_v0 = vpop.xlane.xlu0 %2345 }
 0x2e5   : > { %v2347_v12 = vadd.f32 %v2346_v0, %v1888_v19 }
 0x2e6   : > { %v2350_v56 = vpop.xlane.xlu1 %2349 }
 0x2e7   : > { %v2351_v63 = vadd.f32 %v2350_v56, %v1892_v59 }
 0x349   : > { %2814 = sbr.rel (%p3244_p13) target bundleno = 849 (0x351), region = 56 }
 0x34a   : > { %v2805_v49 = vpop.xlane.xlu2 %2804 }
 0x34b   : > { %v2806_v11 = vadd.f32 %v2805_v49, %v2347_v12 }
 0x34c   : > { %v2809_v44 = vpop.xlane.xlu0 %2808 }
 0x34d   : > { %v2810_v38 = vadd.f32 %v2809_v44, %v2351_v63 }
 0x34e   : > { %vm2815_vm10 = vcmask 7168   ;;  %v3389_v46 = vmov 0.0  }
 0x34f   : > { %2816 = vst.msk [vmem:[%s3944_s3] sm:$0xff] %vm2815_vm10, %v3389_v46 }
 0x350   : > { %2817 = vst.msk [vmem:[%s3950_s4] sm:$0xff] %vm2815_vm10, %v3389_v46 }
 0x351 PF: > { %vm2820_vm11 = vcmask 7168  }
 0x356   : > { %v2818_v36 = vld [vmem:[%s3944_s3] sm:$0xff] }
 0x357   : > { %v2822_v43 = vld [vmem:[%s3950_s4] sm:$0xff]  ;;  %v2819_v4 = vadd.f32 %v2818_v36, %v2806_v11 }
 0x358   : > { %v2823_v9 = vadd.f32 %v2822_v43, %v2810_v38 }
 0x359   : > { %2821 = vst.msk [vmem:[%s3944_s3] sm:$0xff] %vm2820_vm11, %v2819_v4 }
 0x35a   : > { %2824 = vst.msk [vmem:[%s3950_s4] sm:$0xff] %vm2820_vm11, %v2823_v9 }
 0x35b PF: > { %s21_s17 = sadd.s32 1, %s3379_s17   ;;  %s4496_s13 = smov %s3371_s15 }
 0x35c   : > { %p18_p0 = scmp.ge.s32.totalorder %s21_s17, 6   ;;  %s4497_s14 = smov %s3375_s16 }
 0x35d   : > { %s4498_s15 = smov %s4501_s18  ;;  %s4499_s16 = smov %s4505_s19 }
 0x35e   :  { %20 = sbr.rel (!%p18_p0) target bundleno = 6 (0x6), region = 154 }

</bundles_post_ra>
